<compile_context>
chip_gen: v7x
topology: tpu7x:2x2x1
jax: 0.10.0
libtpu: 0.0.40
codegen_flags: <defaults>
</compile_context>

<pallas_src>
import numpy as np
import jax
import jax.numpy as jnp
from jax.experimental import pallas as pl
from jax.experimental.pallas import tpu as pltpu

# ----------------------------- small synthetic config -----------------------------
B        = 32         # batch (2 chunks of 16 -> 128-lane folded batch*time per step)
SR       = 2048       # sample rate
N_FFT    = 64         # window_size
HOP      = 32         # hop_size
MEL      = 16         # mel_bins
FRAMES   = 256        # time frames produced by the (center=True) STFT
L        = HOP * (FRAMES - 1)          # 8160 audio samples -> exactly FRAMES frames
C_FEAT   = 64         # stand-in for the 2048 encoder features
FC_OUT   = 32         # stand-in for encoder.fc's 1000 outputs
CLASSES  = 8          # classes_num
T_ENC    = 8          # encoder time steps   (FRAMES / 32, ResNet-style /32 downsample)
W_ENC    = 4          # encoder "width"      (MEL / 4)
INTERP_RATIO = 29     # self.interpolate_ratio

B_CHUNK    = 16                     # batches per grid step
N_CHUNKS   = B // B_CHUNK           # grid extent ("parallel" -> both TCs on v7x)
BT_CHUNK   = B_CHUNK * T_ENC        # 128  folded batch*time lanes per step
BTW_CHUNK  = BT_CHUNK * W_ENC       # 512  folded batch*time*width lanes per step
CLIP_LANES = 128                    # lane-dense clipwise store (sliced to B_CHUNK later)
FW_LANES   = B_CHUNK * FRAMES       # 4096 lane-dense framewise store per chunk


# ====================== trace-time (numpy) constant matrices =======================
def _head_constants():
    """Constant matrices for the head, built once in numpy and DMA'd as kernel inputs."""
    T, W, Bc = T_ENC, W_ENC, B_CHUNK
    bt = BT_CHUNK
    # width-mean: torch.mean(x, dim=3) as (BTW_CHUNK, BT_CHUNK) block matrix
    mean_w = np.repeat(np.eye(bt, dtype=np.float32), W, axis=0) / float(W)
    # +-1 time shifts (never crossing a batch segment), stacked: (bt, 2*bt)
    r = np.arange(bt)[:, None]
    c = np.arange(bt)[None, :]
    prev_m = ((c == r + 1) & (c % T != 0)).astype(np.float32)          # col c <- row c-1
    next_m = ((r == c + 1) & (r % T != 0)).astype(np.float32)          # col c <- row c+1
    shifts = np.concatenate([prev_m, next_m], axis=1)
    # max-pool boundary pads (-inf-like) at segment edges: (2, bt)
    pads = np.zeros((2, bt), np.float32)
    lane = np.arange(bt)
    pads[0, lane % T == 0] = -1e30          # no left neighbour
    pads[1, lane % T == T - 1] = -1e30      # no right neighbour
    # segmented time-sum, lane-replicated to CLIP_LANES so the clip store is unmasked
    g = ((lane[:, None] // T) == (np.arange(CLIP_LANES)[None, :] % Bc)).astype(np.float32)
    # interpolate(x29) + pad_framewise_output as a block-diagonal one-hot: (bt, Bc*FRAMES)
    expand = np.zeros((bt, Bc * FRAMES), np.float32)
    tmap = np.minimum(np.arange(FRAMES) // INTERP_RATIO, T - 1)        # frame -> seg step
    for b in range(Bc):
        for t in range(T):
            expand[b * T + t, b * FRAMES:(b + 1) * FRAMES] = (tmap == t)
    return mean_w, shifts, pads, g, expand


# ================================ Pallas kernel =====================================
def _head_kernel(feat_ref, mean_ref, shift_ref, pad_ref, g_ref, expand_ref,
                 w1_ref, b1_ref, w2_ref, b2_ref, clip_ref, fw_ref):
    """Post-encoder hot path for one batch chunk (B_CHUNK batches, BT_CHUNK=128 lanes).

    feat_ref   : (C_FEAT, BTW_CHUNK)        lane-packed encoder features (this chunk)
    mean_ref   : (BTW_CHUNK, BT_CHUNK)      width-mean constant
    shift_ref  : (BT_CHUNK, 2*BT_CHUNK)     [prev | next] time-shift constants
    pad_ref    : (2, BT_CHUNK)              -1e30 pads for max-pool segment edges
    g_ref      : (BT_CHUNK, CLIP_LANES)     segmented-sum constant (lane-replicated)
    expand_ref : (BT_CHUNK, FW_LANES)       block-diag interpolation one-hot
    w1_ref     : (FC_OUT, C_FEAT)  bf16     encoder.fc weight
    b1_ref     : (FC_OUT, 1)                encoder.fc bias
    w2_ref     : (2*CLASSES, FC_OUT)        stacked [conv_attention; conv_classes] weight
    b2_ref     : (2*CLASSES, 1)             stacked head biases
    clip_ref   : (1, CLASSES, CLIP_LANES)   clipwise (lane-padded; first B_CHUNK valid)
    fw_ref     : (1, CLASSES, FW_LANES)     framewise, interpolated + padded, lane-dense
    All cross-lane work (width-mean, +-1 shifts, segmented softmax, x29 interpolation)
    is a constant MXU matmul; the VPU/EUP only do elementwise work.
    """
    f32 = jnp.float32

    # ---- x = torch.mean(x, dim=3): width-mean as one constant matmul ---------------
    x = jnp.dot(feat_ref[...], mean_ref[...], preferred_element_type=f32)   # (C, BT)

    # ---- F.max_pool1d + F.avg_pool1d (k=3, s=1, p=1) along time --------------------
    sh = jnp.dot(x, shift_ref[...], preferred_element_type=f32)             # (C, 2*BT)
    prev = sh[:, :BT_CHUNK]
    nxt = sh[:, BT_CHUNK:]
    pads = pad_ref[...]                                     # (2, BT)
    x1 = jnp.maximum(jnp.maximum(prev + pads[0:1], x), nxt + pads[1:2])     # max pool
    x2 = (prev + x + nxt) * (1.0 / 3.0)        # avg pool (count_include_pad, 0-padded)
    xp = x1 + x2                                                            # (C, BT)

    # ---- F.relu_(encoder.fc(x)): bf16 operands, f32 accumulation -------------------
    h = jnp.dot(w1_ref[...], xp.astype(jnp.bfloat16), preferred_element_type=f32)
    h = jnp.maximum(h + b1_ref[...], 0.0)                                   # (FC_OUT, BT)

    # ---- AttentionHead: both 1x1 convs fused into ONE stacked matmul ---------------
    logits = jnp.dot(w2_ref[...], h, preferred_element_type=f32) + b2_ref[...]
    att_logit = logits[:CLASSES]
    cls_logit = logits[CLASSES:]

    # softmax over time: tanh output is bounded in [-1, 1] -> max-subtraction is
    # unnecessary (would lose stability if the tanh were ever removed).
    e = jnp.exp(jnp.tanh(att_logit))                                        # (CLASSES, BT)
    classes = 1.0 / (1.0 + jnp.exp(-cls_logit))     # exact sigmoid (IS the framewise out)

    # ---- clipwise: segmented softmax-weighted sum, one matmul, lane-dense store ----
    nd = jnp.dot(jnp.concatenate([e * classes, e], axis=0), g_ref[...],
                 preferred_element_type=f32)                                # (2C, 128)
    clip_ref[0] = nd[:CLASSES] / nd[CLASSES:]       # exact divide (no approx reciprocal)

    # ---- interpolate(x29) + pad_framewise_output: one block-diag one-hot matmul ----
    fw_ref[0] = jnp.dot(classes, expand_ref[...], preferred_element_type=f32)


def attention_head_pallas(feat_cbtw, params):
    """feat_cbtw: (C_FEAT, B, T, W) channels-first encoder features.
    Returns clipwise (B, CLASSES) and framewise (B, FRAMES, CLASSES)."""
    # Lane-pack (C, B, T, W) -> (C, B*T*W): a FREE reshape (no HBM transpose) because the
    # encoder already emits channels-first.  (A real encoder port should do the same, or
    # the BlockSpec should tile the native layout and fold inside the kernel.)
    feat_packed = feat_cbtw.reshape(C_FEAT, B * T_ENC * W_ENC)

    mean_w, shifts, pads, g, expand = (jnp.asarray(a) for a in _head_constants())
    w1 = params["fc_w"].astype(jnp.bfloat16)                 # bf16 weight (f32 accum)
    b1 = params["fc_b"]
    w2 = jnp.concatenate([params["att_w"], params["cls_w"]], axis=0)
    b2 = jnp.concatenate([params["att_b"], params["cls_b"]], axis=0)

    def const_spec(shape):
        # Grid-invariant inputs: Pallas DMAs them once (index never changes).
        # TODO(synk): at production sizes also set pipeline_mode=pl.Buffered(1) here to
        #             avoid double-buffering multi-MB weights on v7x/v5e.
        return pl.BlockSpec(shape, lambda i: (0,) * len(shape))

    grid_spec = pltpu.PrefetchScalarGridSpec(
        num_scalar_prefetch=0,
        grid=(N_CHUNKS,),                                    # pipelined / megacore-parallel
        in_specs=[
            pl.BlockSpec((C_FEAT, BTW_CHUNK), lambda i: (0, i)),   # per-chunk feat block
            const_spec((BTW_CHUNK, BT_CHUNK)),
            const_spec((BT_CHUNK, 2 * BT_CHUNK)),
            const_spec((2, BT_CHUNK)),
            const_spec((BT_CHUNK, CLIP_LANES)),
            const_spec((BT_CHUNK, FW_LANES)),
            const_spec((FC_OUT, C_FEAT)),
            const_spec((FC_OUT, 1)),
            const_spec((2 * CLASSES, FC_OUT)),
            const_spec((2 * CLASSES, 1)),
        ],
        out_specs=[
            pl.BlockSpec((1, CLASSES, CLIP_LANES), lambda i: (i, 0, 0)),
            pl.BlockSpec((1, CLASSES, FW_LANES), lambda i: (i, 0, 0)),
        ],
    )
    clip_raw, fw_raw = pl.pallas_call(
        _head_kernel,
        out_shape=(
            jax.ShapeDtypeStruct((N_CHUNKS, CLASSES, CLIP_LANES), jnp.float32),
            jax.ShapeDtypeStruct((N_CHUNKS, CLASSES, FW_LANES), jnp.float32),
        ),
        grid_spec=grid_spec,
        compiler_params=pltpu.CompilerParams(
            dimension_semantics=("parallel",),
            vmem_limit_bytes=32 * 1024 * 1024,
        ),
    )(feat_packed, mean_w, shifts, pads, g, expand, w1, b1, w2, b2)

    # Tiny wrapper-side layout fixups on the (small) outputs only.
    clipwise = jnp.transpose(clip_raw[:, :, :B_CHUNK], (0, 2, 1)).reshape(B, CLASSES)
    framewise = jnp.transpose(
        fw_raw.reshape(N_CHUNKS, CLASSES, B_CHUNK, FRAMES), (0, 2, 3, 1)
    ).reshape(B, FRAMES, CLASSES)
    return clipwise, framewise


# ============================= plain-JAX glue (frontend) ===========================
def _mel_filterbank(n_mels, n_fft, sr, fmin, fmax):
    # TODO(synk): librosa slaney-normalized mel filterbank not reproduced; simplified
    #             HTK-style triangular filters used instead (same shape / semantics).
    def hz_to_mel(f): return 2595.0 * np.log10(1.0 + f / 700.0)
    def mel_to_hz(m): return 700.0 * (10.0 ** (m / 2595.0) - 1.0)
    mels = np.linspace(hz_to_mel(fmin), hz_to_mel(fmax), n_mels + 2)
    hz = mel_to_hz(mels)
    bins = np.floor((n_fft + 1) * hz / sr).astype(int)
    fb = np.zeros((n_mels, n_fft // 2 + 1), dtype=np.float32)
    for m in range(1, n_mels + 1):
        l, c, r = bins[m - 1], bins[m], bins[m + 1]
        for k in range(l, c):
            if c > l:
                fb[m - 1, k] = (k - l) / (c - l)
        for k in range(c, r):
            if r > c:
                fb[m - 1, k] = (r - k) / (r - c)
    return jnp.asarray(fb)


def logmel_frontend(wav, mel_fb):
    """torchlibrosa Spectrogram(power=2, hann, center=True, reflect) + LogmelFilterBank
    (ref=1, amin=1e-10, top_db=None).  wav: (B, L) -> (B, 1, FRAMES, MEL)."""
    pad = N_FFT // 2
    x = jnp.pad(wav, ((0, 0), (pad, pad)), mode="reflect")
    n = np.arange(N_FFT)
    window = (0.5 - 0.5 * np.cos(2.0 * np.pi * n / N_FFT)).astype(np.float32)  # periodic hann
    frame_idx = np.arange(FRAMES)[:, None] * HOP + np.arange(N_FFT)[None, :]
    frames = x[:, frame_idx] * window[None, None, :]                  # (B, FRAMES, N_FFT)
    k = np.arange(N_FFT // 2 + 1)
    ang = 2.0 * np.pi * np.outer(n, k) / N_FFT
    cos_m = jnp.asarray(np.cos(ang), dtype=jnp.float32)
    sin_m = jnp.asarray(-np.sin(ang), dtype=jnp.float32)
    power = (frames @ cos_m) ** 2 + (frames @ sin_m) ** 2             # (B, FRAMES, bins)
    mel = power @ mel_fb.T                                            # (B, FRAMES, MEL)
    logmel = 10.0 * jnp.log10(jnp.maximum(mel, 1e-10))                # ref=1.0, top_db=None
    return logmel[:, None, :, :]


def encoder_forward_features(x, enc_w, enc_b):
    # TODO(synk): timm resnest50d backbone is not reproducible here; deterministic
    #             stand-in = (32,4) average-pool downsample + 1x1 channel expansion +
    #             ReLU, emitted channels-first (C, B, T, W) so the head's lane-packed
    #             layout is a free reshape (no wrapper-side HBM transpose).
    Bv = x.shape[0]
    x2 = x[:, 0]                                                      # (B, FRAMES, MEL)
    x2 = x2.reshape(Bv, T_ENC, FRAMES // T_ENC, W_ENC, MEL // W_ENC).mean(axis=(2, 4))
    feat = jax.nn.relu(
        enc_w[:, None, None, None] * x2[None] + enc_b[:, None, None, None]
    )
    return feat                                                       # (C_FEAT, B, T, W)


def compute_encoder_features(wav, params):
    # 1) spectrogram + logmel   (spec_augmenter / mixup skipped: eval mode)
    x = logmel_frontend(wav.astype(jnp.float32), params["mel_fb"])    # (B,1,FRAMES,MEL)
    # 2) transpose(1,3) -> BatchNorm2d(mel_bins) -> transpose back  (eval-mode affine)
    x = (x - params["bn_mean"]) / jnp.sqrt(params["bn_var"] + 1e-5) * params["bn_gamma"] \
        + params["bn_beta"]
    # 3) encoder.forward_features (stand-in), channels-first
    return encoder_forward_features(x, params["enc_w"], params["enc_b"])


def audio_classifier_forward(wav, params):
    feat = compute_encoder_features(wav, params)                      # (C_FEAT, B, T, W)
    # 4) Pallas hot path: mean(dim=3), pools, fc+ReLU, attention head,
    #    interpolate(x29) + pad_framewise_output — all inside the kernel.
    clipwise, framewise = attention_head_pallas(feat, params)
    return {"framewise_output": framewise, "clipwise_output": clipwise}


# ========================= pure-JAX reference of the head ==========================
def head_reference(feat_bctw, params):
    """Plain-JAX replica of the kernelized post-encoder path (PyTorch semantics),
    with precision=HIGHEST matmuls as the comparison baseline."""
    HI = jax.lax.Precision.HIGHEST
    x = jnp.mean(feat_bctw, axis=3)                                   # (B, C, T)
    xm = jnp.pad(x, ((0, 0), (0, 0), (1, 1)), constant_values=-jnp.inf)
    x1 = jnp.maximum(jnp.maximum(xm[..., :-2], xm[..., 1:-1]), xm[..., 2:])
    xa = jnp.pad(x, ((0, 0), (0, 0), (1, 1)))
    x2 = (xa[..., :-2] + xa[..., 1:-1] + xa[..., 2:]) / 3.0
    xp = x1 + x2
    h = jax.nn.relu(jnp.einsum("oc,bct->bot", params["fc_w"], xp, precision=HI)
                    + params["fc_b"][None])
    att = jnp.tanh(jnp.einsum("of,bft->bot", params["att_w"], h, precision=HI)
                   + params["att_b"][None])
    norm_att = jax.nn.softmax(att, axis=-1)
    classes = jax.nn.sigmoid(jnp.einsum("of,bft->bot", params["cls_w"], h, precision=HI)
                             + params["cls_b"][None])
    clip = jnp.sum(norm_att * classes, axis=-1)                       # (B, CLASSES)
    seg = jnp.transpose(classes, (0, 2, 1))                           # (B, T, CLASSES)
    fw = jnp.repeat(seg, INTERP_RATIO, axis=1)                        # (B, 232, CLASSES)
    pad_n = FRAMES - fw.shape[1]
    fw = jnp.concatenate([fw, jnp.repeat(fw[:, -1:], pad_n, axis=1)], axis=1)
    return clip, fw


# ===================================== main ========================================
if __name__ == "__main__":
    key = jax.random.PRNGKey(0)
    k_wav, k_enc, k_fc, k_fcb, k_att, k_attb, k_cls, k_clsb = jax.random.split(key, 8)

    wav = jax.random.normal(k_wav, (B, L), dtype=jnp.float32)

    params = {
        "mel_fb": _mel_filterbank(MEL, N_FFT, SR, 0.0, SR / 2.0),
        # BatchNorm2d(mel_bins) after init_bn, eval mode: gamma=1, beta=0, stats=(0,1)
        "bn_gamma": jnp.ones((MEL,), jnp.float32),
        "bn_beta": jnp.zeros((MEL,), jnp.float32),
        "bn_mean": jnp.zeros((MEL,), jnp.float32),
        "bn_var": jnp.ones((MEL,), jnp.float32),
        # stand-in encoder channel expansion (kept O(1) in magnitude)
        "enc_w": 0.06 * jax.random.normal(k_enc, (C_FEAT,), dtype=jnp.float32),
        "enc_b": 0.1 * jnp.ones((C_FEAT,), jnp.float32),
        # encoder.fc : Linear(C_FEAT -> FC_OUT)   (stored as (out, in))
        "fc_w": jax.random.normal(k_fc, (FC_OUT, C_FEAT), dtype=jnp.float32)
                / np.sqrt(C_FEAT),
        "fc_b": 0.05 * jax.random.normal(k_fcb, (FC_OUT, 1), dtype=jnp.float32),
        # AttentionHead conv_attention / conv_classes : Conv1d(FC_OUT -> CLASSES, k=1)
        "att_w": jax.random.normal(k_att, (CLASSES, FC_OUT), dtype=jnp.float32)
                 / np.sqrt(FC_OUT),
        "att_b": 0.05 * jax.random.normal(k_attb, (CLASSES, 1), dtype=jnp.float32),
        "cls_w": jax.random.normal(k_cls, (CLASSES, FC_OUT), dtype=jnp.float32)
                 / np.sqrt(FC_OUT),
        "cls_b": 0.05 * jax.random.normal(k_clsb, (CLASSES, 1), dtype=jnp.float32),
    }

    out = audio_classifier_forward(wav, params)
    jax.block_until_ready(out)

    assert out["clipwise_output"].shape == (B, CLASSES)
    assert out["framewise_output"].shape == (B, FRAMES, CLASSES)
    assert bool(jnp.all(jnp.isfinite(out["clipwise_output"])))
    assert bool(jnp.all(jnp.isfinite(out["framewise_output"])))

    # Correctness check of the kernelized path against a HIGHEST-precision f32 reference
    # (kernel uses bf16 on the fc matmul -> tolerances sized for that, tighter than before).
    feat = compute_encoder_features(wav, params)                      # (C_FEAT, B, T, W)
    ref_clip, ref_fw = head_reference(jnp.transpose(feat, (1, 0, 2, 3)), params)
    assert bool(jnp.allclose(out["clipwise_output"], ref_clip, atol=3e-2, rtol=3e-2)), \
        float(jnp.max(jnp.abs(out["clipwise_output"] - ref_clip)))
    assert bool(jnp.allclose(out["framewise_output"], ref_fw, atol=2e-2, rtol=2e-2)), \
        float(jnp.max(jnp.abs(out["framewise_output"] - ref_fw)))

    print("KERNEL_OK")
</pallas_src>

<mosaic_0001>
module attributes {stable_mosaic.version = 11 : i64} {
  func.func @_head_kernel(%arg0: i32, %arg1: memref<64x512xf32, #tpu.memory_space<vmem>>, %arg2: memref<512x128xf32, #tpu.memory_space<vmem>>, %arg3: memref<128x256xf32, #tpu.memory_space<vmem>>, %arg4: memref<2x128xf32, #tpu.memory_space<vmem>>, %arg5: memref<128x128xf32, #tpu.memory_space<vmem>>, %arg6: memref<128x4096xf32, #tpu.memory_space<vmem>>, %arg7: memref<32x64xbf16, #tpu.memory_space<vmem>>, %arg8: memref<32x1xf32, #tpu.memory_space<vmem>>, %arg9: memref<16x32xf32, #tpu.memory_space<vmem>>, %arg10: memref<16x1xf32, #tpu.memory_space<vmem>>, %arg11: memref<1x8x128xf32, #tpu.memory_space<vmem>>, %arg12: memref<1x8x4096xf32, #tpu.memory_space<vmem>>) attributes {dimension_semantics = [#tpu.dimension_semantics<parallel>], iteration_bounds = array<i64: 2>, scalar_prefetch = 0 : i64, scratch_operands = 0 : i64, tpu.core_type = #tpu.core_type<tc>, window_params = [{transform_indices = @transform_0, window_bounds = array<i64: 64, 512>}, {pipeline_mode = #tpu.pipeline_mode<synchronous>, transform_indices = @transform_1, window_bounds = array<i64: 512, 128>}, {pipeline_mode = #tpu.pipeline_mode<synchronous>, transform_indices = @transform_2, window_bounds = array<i64: 128, 256>}, {pipeline_mode = #tpu.pipeline_mode<synchronous>, transform_indices = @transform_3, window_bounds = array<i64: 2, 128>}, {pipeline_mode = #tpu.pipeline_mode<synchronous>, transform_indices = @transform_4, window_bounds = array<i64: 128, 128>}, {pipeline_mode = #tpu.pipeline_mode<synchronous>, transform_indices = @transform_5, window_bounds = array<i64: 128, 4096>}, {pipeline_mode = #tpu.pipeline_mode<synchronous>, transform_indices = @transform_6, window_bounds = array<i64: 32, 64>}, {pipeline_mode = #tpu.pipeline_mode<synchronous>, transform_indices = @transform_7, window_bounds = array<i64: 32, 1>}, {pipeline_mode = #tpu.pipeline_mode<synchronous>, transform_indices = @transform_8, window_bounds = array<i64: 16, 32>}, {pipeline_mode = #tpu.pipeline_mode<synchronous>, transform_indices = @transform_9, window_bounds = array<i64: 16, 1>}, {transform_indices = @transform_10, window_bounds = array<i64: 1, 8, 128>}, {transform_indices = @transform_11, window_bounds = array<i64: 1, 8, 4096>}]} {
    %c0 = arith.constant 0 : index
    %c0_0 = arith.constant 0 : index
    %0 = vector.load %arg1[%c0, %c0_0] : memref<64x512xf32, #tpu.memory_space<vmem>>, vector<64x512xf32>
    %c0_1 = arith.constant 0 : index
    %c0_2 = arith.constant 0 : index
    %1 = vector.load %arg2[%c0_1, %c0_2] : memref<512x128xf32, #tpu.memory_space<vmem>>, vector<512x128xf32>
    %cst = arith.constant dense<0.000000e+00> : vector<64x128xf32>
    %2 = tpu.matmul %0, %1, %cst {dimension_numbers = #tpu.dot_dimension_numbers<[1], [0], [0], [1], [0, 0, 1, 1], [], []>} : vector<64x512xf32>, vector<512x128xf32>, vector<64x128xf32> -> vector<64x128xf32>
    %c0_3 = arith.constant 0 : index
    %c0_4 = arith.constant 0 : index
    %3 = vector.load %arg3[%c0_3, %c0_4] : memref<128x256xf32, #tpu.memory_space<vmem>>, vector<128x256xf32>
    %cst_5 = arith.constant dense<0.000000e+00> : vector<64x256xf32>
    %4 = tpu.matmul %2, %3, %cst_5 {dimension_numbers = #tpu.dot_dimension_numbers<[1], [0], [0], [1], [0, 0, 1, 1], [], []>} : vector<64x128xf32>, vector<128x256xf32>, vector<64x256xf32> -> vector<64x256xf32>
    %5 = vector.extract_strided_slice %4 {offsets = [0, 0], sizes = [64, 128], strides = [1, 1]} : vector<64x256xf32> to vector<64x128xf32>
    %6 = vector.extract_strided_slice %4 {offsets = [0, 128], sizes = [64, 128], strides = [1, 1]} : vector<64x256xf32> to vector<64x128xf32>
    %c0_6 = arith.constant 0 : index
    %c0_7 = arith.constant 0 : index
    %7 = vector.load %arg4[%c0_6, %c0_7] : memref<2x128xf32, #tpu.memory_space<vmem>>, vector<2x128xf32>
    %8 = vector.extract_strided_slice %7 {offsets = [0, 0], sizes = [1, 128], strides = [1, 1]} : vector<2x128xf32> to vector<1x128xf32>
    %9 = vector.broadcast %8 : vector<1x128xf32> to vector<64x128xf32>
    %10 = arith.addf %5, %9 : vector<64x128xf32>
    %11 = arith.maximumf %10, %2 : vector<64x128xf32>
    %12 = vector.extract_strided_slice %7 {offsets = [1, 0], sizes = [1, 128], strides = [1, 1]} : vector<2x128xf32> to vector<1x128xf32>
    %13 = vector.broadcast %12 : vector<1x128xf32> to vector<64x128xf32>
    %14 = arith.addf %6, %13 : vector<64x128xf32>
    %15 = arith.maximumf %11, %14 : vector<64x128xf32>
    %16 = arith.addf %5, %2 : vector<64x128xf32>
    %17 = arith.addf %16, %6 : vector<64x128xf32>
    %cst_8 = arith.constant 0.333333343 : f32
    %18 = vector.broadcast %cst_8 : f32 to vector<64x128xf32>
    %19 = arith.mulf %17, %18 : vector<64x128xf32>
    %20 = arith.addf %15, %19 : vector<64x128xf32>
    %c0_9 = arith.constant 0 : index
    %c0_10 = arith.constant 0 : index
    %21 = vector.load %arg7[%c0_9, %c0_10] : memref<32x64xbf16, #tpu.memory_space<vmem>>, vector<32x64xbf16>
    %22 = arith.truncf %20 : vector<64x128xf32> to vector<64x128xbf16>
    %cst_11 = arith.constant dense<0.000000e+00> : vector<32x128xf32>
    %23 = tpu.matmul %21, %22, %cst_11 {dimension_numbers = #tpu.dot_dimension_numbers<[1], [0], [0], [1], [0, 0, 1, 1], [], []>} : vector<32x64xbf16>, vector<64x128xbf16>, vector<32x128xf32> -> vector<32x128xf32>
    %c0_12 = arith.constant 0 : index
    %c0_13 = arith.constant 0 : index
    %24 = vector.load %arg8[%c0_12, %c0_13] : memref<32x1xf32, #tpu.memory_space<vmem>>, vector<32x1xf32>
    %25 = vector.broadcast %24 : vector<32x1xf32> to vector<32x128xf32>
    %26 = arith.addf %23, %25 : vector<32x128xf32>
    %cst_14 = arith.constant 0.000000e+00 : f32
    %27 = vector.broadcast %cst_14 : f32 to vector<32x128xf32>
    %28 = arith.maximumf %26, %27 : vector<32x128xf32>
    %c0_15 = arith.constant 0 : index
    %c0_16 = arith.constant 0 : index
    %29 = vector.load %arg9[%c0_15, %c0_16] : memref<16x32xf32, #tpu.memory_space<vmem>>, vector<16x32xf32>
    %cst_17 = arith.constant dense<0.000000e+00> : vector<16x128xf32>
    %30 = tpu.matmul %29, %28, %cst_17 {dimension_numbers = #tpu.dot_dimension_numbers<[1], [0], [0], [1], [0, 0, 1, 1], [], []>} : vector<16x32xf32>, vector<32x128xf32>, vector<16x128xf32> -> vector<16x128xf32>
    %c0_18 = arith.constant 0 : index
    %c0_19 = arith.constant 0 : index
    %31 = vector.load %arg10[%c0_18, %c0_19] : memref<16x1xf32, #tpu.memory_space<vmem>>, vector<16x1xf32>
    %32 = vector.broadcast %31 : vector<16x1xf32> to vector<16x128xf32>
    %33 = arith.addf %30, %32 : vector<16x128xf32>
    %34 = vector.extract_strided_slice %33 {offsets = [0, 0], sizes = [8, 128], strides = [1, 1]} : vector<16x128xf32> to vector<8x128xf32>
    %35 = vector.extract_strided_slice %33 {offsets = [8, 0], sizes = [8, 128], strides = [1, 1]} : vector<16x128xf32> to vector<8x128xf32>
    %36 = math.tanh %34 : vector<8x128xf32>
    %37 = math.exp %36 : vector<8x128xf32>
    %cst_20 = arith.constant 0.000000e+00 : f32
    %38 = vector.broadcast %cst_20 : f32 to vector<8x128xf32>
    %39 = arith.subf %38, %35 : vector<8x128xf32>
    %40 = math.exp %39 : vector<8x128xf32>
    %cst_21 = arith.constant 1.000000e+00 : f32
    %41 = vector.broadcast %cst_21 : f32 to vector<8x128xf32>
    %42 = arith.addf %41, %40 : vector<8x128xf32>
    %cst_22 = arith.constant 1.000000e+00 : f32
    %43 = vector.broadcast %cst_22 : f32 to vector<8x128xf32>
    %44 = arith.divf %43, %42 : vector<8x128xf32>
    %45 = arith.mulf %37, %44 : vector<8x128xf32>
    %46 = tpu.concatenate %45, %37 in 0 : vector<8x128xf32>, vector<8x128xf32> -> vector<16x128xf32>
    %c0_23 = arith.constant 0 : index
    %c0_24 = arith.constant 0 : index
    %47 = vector.load %arg5[%c0_23, %c0_24] : memref<128x128xf32, #tpu.memory_space<vmem>>, vector<128x128xf32>
    %cst_25 = arith.constant dense<0.000000e+00> : vector<16x128xf32>
    %48 = tpu.matmul %46, %47, %cst_25 {dimension_numbers = #tpu.dot_dimension_numbers<[1], [0], [0], [1], [0, 0, 1, 1], [], []>} : vector<16x128xf32>, vector<128x128xf32>, vector<16x128xf32> -> vector<16x128xf32>
    %49 = vector.extract_strided_slice %48 {offsets = [0, 0], sizes = [8, 128], strides = [1, 1]} : vector<16x128xf32> to vector<8x128xf32>
    %50 = vector.extract_strided_slice %48 {offsets = [8, 0], sizes = [8, 128], strides = [1, 1]} : vector<16x128xf32> to vector<8x128xf32>
    %51 = arith.divf %49, %50 : vector<8x128xf32>
    %c0_26 = arith.constant 0 : index
    %c0_27 = arith.constant 0 : index
    %c0_28 = arith.constant 0 : index
    %52 = vector.load %arg11[%c0_26, %c0_27, %c0_28] : memref<1x8x128xf32, #tpu.memory_space<vmem>>, vector<1x8x128xf32>
    %53 = vector.shape_cast %52 : vector<1x8x128xf32> to vector<8x128xf32>
    %54 = vector.shape_cast %51 : vector<8x128xf32> to vector<1x8x128xf32>
    tpu.vector_store %arg11[%c0_26, %c0_27, %c0_28], %54 {strides = array<i32>} : memref<1x8x128xf32, #tpu.memory_space<vmem>>, vector<1x8x128xf32>,
    %c0_29 = arith.constant 0 : index
    %c0_30 = arith.constant 0 : index
    %55 = vector.load %arg6[%c0_29, %c0_30] : memref<128x4096xf32, #tpu.memory_space<vmem>>, vector<128x4096xf32>
    %cst_31 = arith.constant dense<0.000000e+00> : vector<8x4096xf32>
    %56 = tpu.matmul %44, %55, %cst_31 {dimension_numbers = #tpu.dot_dimension_numbers<[1], [0], [0], [1], [0, 0, 1, 1], [], []>} : vector<8x128xf32>, vector<128x4096xf32>, vector<8x4096xf32> -> vector<8x4096xf32>
    %c0_32 = arith.constant 0 : index
    %c0_33 = arith.constant 0 : index
    %c0_34 = arith.constant 0 : index
    %57 = vector.load %arg12[%c0_32, %c0_33, %c0_34] : memref<1x8x4096xf32, #tpu.memory_space<vmem>>, vector<1x8x4096xf32>
    %58 = vector.shape_cast %57 : vector<1x8x4096xf32> to vector<8x4096xf32>
    %59 = vector.shape_cast %56 : vector<8x4096xf32> to vector<1x8x4096xf32>
    tpu.vector_store %arg12[%c0_32, %c0_33, %c0_34], %59 {strides = array<i32>} : memref<1x8x4096xf32, #tpu.memory_space<vmem>>, vector<1x8x4096xf32>,
    return
  }
  func.func @transform_0(%arg0: i32) -> (i32, i32) {
    %c0_i32 = arith.constant 0 : i32
    %c0_i32_0 = arith.constant 0 : i32
    return %c0_i32, %arg0 : i32, i32
  }
  func.func @transform_1(%arg0: i32) -> (i32, i32) {
    %c0_i32 = arith.constant 0 : i32
    %c0_i32_0 = arith.constant 0 : i32
    %c0_i32_1 = arith.constant 0 : i32
    return %c0_i32, %c0_i32_0 : i32, i32
  }
  func.func @transform_2(%arg0: i32) -> (i32, i32) {
    %c0_i32 = arith.constant 0 : i32
    %c0_i32_0 = arith.constant 0 : i32
    %c0_i32_1 = arith.constant 0 : i32
    return %c0_i32, %c0_i32_0 : i32, i32
  }
  func.func @transform_3(%arg0: i32) -> (i32, i32) {
    %c0_i32 = arith.constant 0 : i32
    %c0_i32_0 = arith.constant 0 : i32
    %c0_i32_1 = arith.constant 0 : i32
    return %c0_i32, %c0_i32_0 : i32, i32
  }
  func.func @transform_4(%arg0: i32) -> (i32, i32) {
    %c0_i32 = arith.constant 0 : i32
    %c0_i32_0 = arith.constant 0 : i32
    %c0_i32_1 = arith.constant 0 : i32
    return %c0_i32, %c0_i32_0 : i32, i32
  }
  func.func @transform_5(%arg0: i32) -> (i32, i32) {
    %c0_i32 = arith.constant 0 : i32
    %c0_i32_0 = arith.constant 0 : i32
    %c0_i32_1 = arith.constant 0 : i32
    return %c0_i32, %c0_i32_0 : i32, i32
  }
  func.func @transform_6(%arg0: i32) -> (i32, i32) {
    %c0_i32 = arith.constant 0 : i32
    %c0_i32_0 = arith.constant 0 : i32
    %c0_i32_1 = arith.constant 0 : i32
    return %c0_i32, %c0_i32_0 : i32, i32
  }
  func.func @transform_7(%arg0: i32) -> (i32, i32) {
    %c0_i32 = arith.constant 0 : i32
    %c0_i32_0 = arith.constant 0 : i32
    %c0_i32_1 = arith.constant 0 : i32
    return %c0_i32, %c0_i32_0 : i32, i32
  }
  func.func @transform_8(%arg0: i32) -> (i32, i32) {
    %c0_i32 = arith.constant 0 : i32
    %c0_i32_0 = arith.constant 0 : i32
    %c0_i32_1 = arith.constant 0 : i32
    return %c0_i32, %c0_i32_0 : i32, i32
  }
  func.func @transform_9(%arg0: i32) -> (i32, i32) {
    %c0_i32 = arith.constant 0 : i32
    %c0_i32_0 = arith.constant 0 : i32
    %c0_i32_1 = arith.constant 0 : i32
    return %c0_i32, %c0_i32_0 : i32, i32
  }
  func.func @transform_10(%arg0: i32) -> (i32, i32, i32) {
    %c0_i32 = arith.constant 0 : i32
    %c0_i32_0 = arith.constant 0 : i32
    %c0_i32_1 = arith.constant 0 : i32
    return %arg0, %c0_i32, %c0_i32_0 : i32, i32, i32
  }
  func.func @transform_11(%arg0: i32) -> (i32, i32, i32) {
    %c0_i32 = arith.constant 0 : i32
    %c0_i32_0 = arith.constant 0 : i32
    %c0_i32_1 = arith.constant 0 : i32
    return %arg0, %c0_i32, %c0_i32_0 : i32, i32, i32
  }
}

</mosaic_0001>

<bundles_post_ra>
// kernel: tpu_custom_call.1
= control target key start
LH: loop header
LB: loop body
LE: loop exit
PB: predicated region body
PF: predicated region fallthrough
CT: control target
= control target key end

     0   :  { %s5262_s0 = inlined_call_operand.hbm [shape: f32[64,1024], index: 0, kind: input, shape index: {}]   ;;  %s5263_s1 = inlined_call_operand.hbm [shape: f32[512,128], index: 1, kind: input, shape index: {}]   ;;  %s5264_s2 = inlined_call_operand.hbm [shape: f32[128,256], index: 2, kind: input, shape index: {}]   ;;  %s5265_s3 = inlined_call_operand.hbm [shape: f32[2,128], index: 3, kind: input, shape index: {}]   ;;  %s5266_s4 = inlined_call_operand.hbm [shape: f32[128,128], index: 4, kind: input, shape index: {}]   ;;  %s5267_s5 = inlined_call_operand.hbm [shape: f32[128,4096], index: 5, kind: input, shape index: {}]   ;;  %s5268_s6 = inlined_call_operand.hbm [shape: bf16[32,64], index: 6, kind: input, shape index: {}]   ;;  %s5269_s7 = inlined_call_operand.vmem [shape: f32[32,1], index: 7, kind: input, shape index: {}]   ;;  %s5270_s8 = inlined_call_operand.hbm [shape: f32[16,32], index: 8, kind: input, shape index: {}]   ;;  %s5271_s9 = inlined_call_operand.vmem [shape: f32[16,1], index: 9, kind: input, shape index: {}]   ;;  %s5272_s10 = inlined_call_operand.hbm [shape: f32[2,8,128], index: 10, kind: output, shape index: {0}]   ;;  %s5273_s11 = inlined_call_operand.hbm [shape: f32[2,8,4096], index: 11, kind: output, shape index: {1}]  }
   0x1   :  { %5284 = sst [smem:[#allocation26_spill]] %s5263_s1 }
   0x2   :  { %5285 = sst [smem:[#allocation27_spill]] %s5264_s2 }
   0x3   :  { %5286 = sst [smem:[#allocation28_spill]] %s5271_s9 }
   0x4   :  { %5287 = sst [smem:[#allocation29_spill]] %s5272_s10 }
   0x5   :  { %5288 = sst [smem:[#allocation30_spill]] %s5273_s11 }
   0x6   :  { %17 = vsyncpa [#allocation3], 0 }
   0x7   :  { %19 = vsyncpa [#allocation3 + $0x1], 0 }
   0x8   :  { %20 = vsyncpa [#allocation6], 0 }
   0x9   :  { %21 = vsyncpa [#allocation9], 0 }
   0xa   :  { %22 = vsyncpa [#allocation12], 0 }
   0xb   :  { %23 = vsyncpa [#allocation15], 0 }
   0xc   :  { %24 = vsyncpa [#allocation4], 0 }
   0xd   :  { %26 = vsyncpa [#allocation4 + $0x1], 0 }
   0xe   :  { %27 = vsyncpa [#allocation18], 0 }
   0xf   :  { %29 = vsyncpa [#allocation18 + $0x1], 0  ;;  %s4685_s17 = smov 0   ;;  %s4687_s18 = smov 0  }
  0x10   :  { %s4689_s19 = smov 0   ;;  %s4691_s20 = smov 0  }
  0x11 LB: > { %s4603_s21 = smov [#allocation5]   ;;  %s4706_s23 = sadd.s32 4294967295, %s4601_s20   ;;  %s4601_s20 = sphi %s4691_s20, %s5320_s20   ;;  %s4597_s19 = sphi %s4689_s19, %s5319_s19   ;;  %s4593_s18 = sphi %s4687_s18, %s5318_s18   ;;  %s4589_s17 = sphi %s4685_s17, %s5317_s17  }
  0x12   : > { %s319_s22 = sshll.u32 %s4603_s21, 4  ;;  %p3227_p0 = scmp.ge.s32.totalorder %s4601_s20, 1  ;;  %s4711_s22 = int_to_ptr.vmem [resolvable:$true] %s319_s22 }
  0x13   : > { %p5277_p1 = scmp.eq.s32.totalorder %s4706_s23, 0  ;;  %p307_p2 = scmp.lt.s32.totalorder %s4601_s20, 3 }
  0x14   : > { %s4604_s25 = smov [#allocation8]   ;;  %s4605_s28 = smov [#allocation11]  }
  0x15   : > { %p4713_p3 = pnand %p3227_p0, %p307_p2  ;;  %s346_s26 = sshll.u32 %s4604_s25, 4  ;;  %s4726_s26 = int_to_ptr.vmem [resolvable:$true] %s346_s26 }
  0x16   : > { %s4728_s29 = sshll.u32 %s4605_s28, 4  ;;  %s5291_s1 = sld [smem:[#allocation26_spill]]  ;;  %s370_s29 = int_to_ptr.vmem [resolvable:$true] %s4728_s29 }
  0x17   : > { %s5289_s24 = scalar_select %p4713_p3, 1, 0 }
  0x18   : > { %p4147_p5 = pneg %p4713_p3 }
  0x1a   : > { %p4722_p6 = pnand %p4147_p5, %p5277_p1 }
  0x1c   : > { %s4261_s13 = scalar_lea.hbm %s5291_s1, 8192  ;;  %p4738_p8 = pneg %p4722_p6 }
  0x1d   : > { %p4262_p7 = scmp.ne.s32.totalorder %s5291_s1, %s4261_s13  ;;  %p4268_p11 = scmp.lt.u32.totalorder %s4261_s13, %s5291_s1 }
  0x1f   : > { %p4264_p9 = pnand %p4738_p8, %p4262_p7 }
  0x21   : > { %p4265_p10 = pneg %p4264_p9 }
  0x23   : > { %p4270_p12 = pnand %p4268_p11, %p4265_p10 }
  0x25   : > { %4273 = shalt.err (!%p4270_p12)
}
  0x26   : > { %s4274_s28 = scalar_lea.vmem %s4711_s22, 8192  ;;  %p4282_p5 = scmp.lt.s32.totalorder %s4711_s22, %s4711_s22 }
  0x27   : > { %p4275_p13 = scmp.ne.s32.totalorder %s4711_s22, %s4274_s28  ;;  %p4283_p4 = scmp.lt.s32.totalorder %s4274_s28, %s4274_s28 }
  0x29   : > { %p4277_p0 = pnand %p4275_p13, %p4738_p8  ;;  %p4284_p7 = por %p4283_p4, %p4282_p5 }
  0x2b   : > { %p4278_p2 = pneg %p4277_p0 }
  0x2d   : > { %p4285_p9 = pnand %p4284_p7, %p4278_p2 }
  0x2f   : > { %4288 = shalt.err (!%p4285_p9)
}
  0x30   : > { %s5279_s30 = smov 128   ;;  %s5281_s12 = smov 8  }
  0x31   : > { %4150 = dma.hbm_to_vmem [thread:$0]  (!%p4722_p6), %s5291_s1, 8192, %s4711_s22, [#allocation6], %s5279_s30, %s5279_s30, %s5281_s12  }
  0x32   : > { %s4289_s25 = scalar_lea.hbm %s5265_s3, 32 }
  0x33   : > { %p4290_p4 = scmp.ne.s32.totalorder %s5265_s3, %s4289_s25  ;;  %p4296_p12 = scmp.lt.u32.totalorder %s4289_s25, %s5265_s3 }
  0x35   : > { %p4292_p10 = pnand %p4290_p4, %p4738_p8 }
  0x37   : > { %p4293_p11 = pneg %p4292_p10 }
  0x39   : > { %p4298_p13 = pnand %p4296_p12, %p4293_p11 }
  0x3b   : > { %4301 = shalt.err (!%p4298_p13)
}
  0x3c   : > { %s4302_s22 = scalar_lea.vmem %s4726_s26, 32  ;;  %p4310_p7 = scmp.lt.s32.totalorder %s4726_s26, %s4726_s26 }
  0x3d   : > { %p4303_p0 = scmp.ne.s32.totalorder %s4726_s26, %s4302_s22  ;;  %p4311_p9 = scmp.lt.s32.totalorder %s4302_s22, %s4302_s22 }
  0x3f   : > { %p4305_p2 = pnand %p4303_p0, %p4738_p8  ;;  %p4312_p4 = por %p4311_p9, %p4310_p7 }
  0x41   : > { %p4306_p5 = pneg %p4305_p2 }
  0x43   : > { %p4313_p10 = pnand %p4312_p4, %p4306_p5 }
  0x45   : > { %4316 = shalt.err (!%p4313_p10)
}
  0x46   : > { %4156 = dma.hbm_to_vmem [thread:$0]  (!%p4722_p6), %s5265_s3, 32, %s4726_s26, [#allocation9]  }
  0x47   : > { %s4317_s14 = scalar_lea.hbm %s5267_s5, 65536 }
  0x48   : > { %p4318_p11 = scmp.ne.s32.totalorder %s5267_s5, %s4317_s14  ;;  %p4324_p0 = scmp.lt.u32.totalorder %s4317_s14, %s5267_s5 }
  0x4a   : > { %p4320_p12 = pnand %p4318_p11, %p4738_p8 }
  0x4c   : > { %p4321_p13 = pneg %p4320_p12 }
  0x4e   : > { %p4326_p2 = pnand %p4324_p0, %p4321_p13 }
  0x50   : > { %4329 = shalt.err (!%p4326_p2)
}
  0x51   : > { %s4330_s22 = scalar_lea.vmem %s370_s29, 65536  ;;  %p4338_p4 = scmp.lt.s32.totalorder %s370_s29, %s370_s29 }
  0x52   : > { %p4331_p5 = scmp.ne.s32.totalorder %s370_s29, %s4330_s22  ;;  %p4339_p10 = scmp.lt.s32.totalorder %s4330_s22, %s4330_s22 }
  0x54   : > { %p4333_p7 = pnand %p4331_p5, %p4738_p8  ;;  %p4340_p1 = por %p4339_p10, %p4338_p4 }
  0x56   : > { %p4334_p9 = pneg %p4333_p7 }
  0x58   : > { %p4341_p3 = pnand %p4340_p1, %p4334_p9 }
  0x5a   : > { %4344 = shalt.err (!%p4341_p3)
}
  0x5b   : > { %s4608_s26 = smov 4096   ;;  %s4609_s9 = smov 256  }
  0x5c   : > { %4162 = dma.hbm_to_vmem [thread:$0]  (!%p4722_p6), %s5267_s5, 65536, %s370_s29, [#allocation12], %s4608_s26, %s4608_s26, %s4609_s9  }
  0x5d   : > { %s4610_s13 = smov [#allocation7]   ;;  %s5293_s2 = sld [smem:[#allocation27_spill]] }
  0x5e   : > { %s332_s14 = sshll.u32 %s4610_s13, 4  ;;  %s333_s14 = int_to_ptr.vmem [resolvable:$true] %s332_s14 }
  0x63   : > { %s4345_s25 = scalar_lea.hbm %s5293_s2, 4096 }
  0x64   : > { %p4346_p1 = scmp.ne.s32.totalorder %s5293_s2, %s4345_s25  ;;  %p4352_p12 = scmp.lt.u32.totalorder %s4345_s25, %s5293_s2 }
  0x66   : > { %p4348_p3 = pnand %p4346_p1, %p4738_p8 }
  0x68   : > { %p4349_p11 = pneg %p4348_p3 }
  0x6a   : > { %p4354_p13 = pnand %p4352_p12, %p4349_p11 }
  0x6c   : > { %4357 = shalt.err (!%p4354_p13)
}
  0x6d   : > { %s4358_s29 = scalar_lea.vmem %s333_s14, 4096  ;;  %p4366_p7 = scmp.lt.s32.totalorder %s333_s14, %s333_s14 }
  0x6e   : > { %p4359_p0 = scmp.ne.s32.totalorder %s333_s14, %s4358_s29  ;;  %p4367_p9 = scmp.lt.s32.totalorder %s4358_s29, %s4358_s29 }
  0x70   : > { %p4361_p2 = pnand %p4359_p0, %p4738_p8  ;;  %p4368_p4 = por %p4367_p9, %p4366_p7 }
  0x72   : > { %p4362_p5 = pneg %p4361_p2 }
  0x74   : > { %p4369_p10 = pnand %p4368_p4, %p4362_p5 }
  0x76   : > { %4372 = shalt.err (!%p4369_p10)
}
  0x77   : > { %s4611_s26 = smov 16   ;;  %s4612_s30 = smov [#allocation10]  }
  0x78   : > { %4153 = dma.hbm_to_vmem [thread:$0]  (!%p4722_p6), %s5293_s2, 4096, %s333_s14, [#allocation6], %s4609_s9, %s4609_s9, %s4611_s26  }
  0x79   : > { %s356_s12 = sshll.u32 %s4612_s30, 4  ;;  %s4613_s13 = smov [#allocation13]   ;;  %s357_s12 = int_to_ptr.vmem [resolvable:$true] %s356_s12 }
  0x7a   : > { %s382_s15 = sshll.u32 %s4613_s13, 4  ;;  %s4373_s28 = scalar_lea.hbm %s5266_s4, 2048  ;;  %s383_s15 = int_to_ptr.vmem [resolvable:$true] %s382_s15 }
  0x7b   : > { %p4374_p1 = scmp.ne.s32.totalorder %s5266_s4, %s4373_s28  ;;  %p4380_p12 = scmp.lt.u32.totalorder %s4373_s28, %s5266_s4 }
  0x7d   : > { %p4376_p3 = pnand %p4374_p1, %p4738_p8 }
  0x7f   : > { %p4377_p11 = pneg %p4376_p3 }
  0x81   : > { %p4382_p13 = pnand %p4380_p12, %p4377_p11 }
  0x83   : > { %4385 = shalt.err (!%p4382_p13)
}
  0x84   : > { %s4386_s9 = scalar_lea.vmem %s357_s12, 2048  ;;  %p4394_p7 = scmp.lt.s32.totalorder %s357_s12, %s357_s12 }
  0x85   : > { %p4387_p0 = scmp.ne.s32.totalorder %s357_s12, %s4386_s9  ;;  %p4395_p9 = scmp.lt.s32.totalorder %s4386_s9, %s4386_s9 }
  0x87   : > { %p4389_p2 = pnand %p4387_p0, %p4738_p8  ;;  %p4396_p4 = por %p4395_p9, %p4394_p7 }
  0x89   : > { %p4390_p5 = pneg %p4389_p2 }
  0x8b   : > { %p4397_p10 = pnand %p4396_p4, %p4390_p5 }
  0x8d   : > { %4400 = shalt.err (!%p4397_p10)
}
  0x8e   : > { %s5294_s14 = smov 8   ;;  %s5295_s26 = smov 128  }
  0x8f   : > { %4159 = dma.hbm_to_vmem [thread:$0]  (!%p4722_p6), %s5266_s4, 2048, %s357_s12, [#allocation9], %s5295_s26, %s5295_s26, %s5294_s14  }
  0x90   : > { %s4401_s21 = scalar_lea.hbm %s5268_s6, 256 }
  0x91   : > { %p4402_p1 = scmp.ne.s32.totalorder %s5268_s6, %s4401_s21  ;;  %p4408_p12 = scmp.lt.u32.totalorder %s4401_s21, %s5268_s6 }
  0x93   : > { %p4404_p3 = pnand %p4402_p1, %p4738_p8 }
  0x95   : > { %p4405_p11 = pneg %p4404_p3 }
  0x97   : > { %p4410_p13 = pnand %p4408_p12, %p4405_p11 }
  0x99   : > { %4413 = shalt.err (!%p4410_p13)
}
  0x9a   : > { %s4414_s10 = scalar_lea.vmem %s383_s15, 256  ;;  %p4422_p7 = scmp.lt.s32.totalorder %s383_s15, %s383_s15 }
  0x9b   : > { %p4415_p0 = scmp.ne.s32.totalorder %s383_s15, %s4414_s10  ;;  %p4423_p9 = scmp.lt.s32.totalorder %s4414_s10, %s4414_s10 }
  0x9d   : > { %p4417_p2 = pnand %p4415_p0, %p4738_p8  ;;  %p4424_p4 = por %p4423_p9, %p4422_p7 }
  0x9f   : > { %p4418_p5 = pneg %p4417_p2 }
  0xa1   : > { %p4425_p10 = pnand %p4424_p4, %p4418_p5 }
  0xa3   : > { %4428 = shalt.err (!%p4425_p10)
}
  0xa4   : > { %s4614_s12 = smov 64   ;;  %s4615_s9 = smov 4  }
  0xa5   : > { %4165 = dma.hbm_to_vmem [thread:$0]  (!%p4722_p6), %s5268_s6, 256, %s383_s15, [#allocation12], %s4614_s12, %s4614_s12, %s4615_s9  }
  0xa6   : > { %s4616_s30 = smov [#allocation14]   ;;  %s4429_s28 = scalar_lea.hbm %s5270_s8, 256 }
  0xa7   : > { %s398_s13 = sshll.u32 %s4616_s30, 4  ;;  %p4430_p1 = scmp.ne.s32.totalorder %s5270_s8, %s4429_s28  ;;  %s399_s13 = int_to_ptr.vmem [resolvable:$true] %s398_s13 }
  0xa8   : > { %p4436_p12 = scmp.lt.u32.totalorder %s4429_s28, %s5270_s8 }
  0xa9   : > { %p4432_p3 = pnand %p4430_p1, %p4738_p8 }
  0xab   : > { %p4433_p11 = pneg %p4432_p3 }
  0xad   : > { %p4438_p13 = pnand %p4436_p12, %p4433_p11 }
  0xaf   : > { %4441 = shalt.err (!%p4438_p13)
}
  0xb0   : > { %s4442_s15 = scalar_lea.vmem %s399_s13, 256  ;;  %p4450_p7 = scmp.lt.s32.totalorder %s399_s13, %s399_s13 }
  0xb1   : > { %p4443_p0 = scmp.ne.s32.totalorder %s399_s13, %s4442_s15  ;;  %p4451_p9 = scmp.lt.s32.totalorder %s4442_s15, %s4442_s15 }
  0xb3   : > { %p4445_p2 = pnand %p4443_p0, %p4738_p8  ;;  %p4452_p4 = por %p4451_p9, %p4450_p7 }
  0xb5   : > { %p4446_p5 = pneg %p4445_p2 }
  0xb7   : > { %p4453_p10 = pnand %p4452_p4, %p4446_p5 }
  0xb9   : > { %4456 = shalt.err (!%p4453_p10)
}
  0xba   : > { %4168 = dma.hbm_to_vmem [thread:$0]  (!%p4722_p6), %s5270_s8, 256, %s399_s13, [#allocation15], %s5295_s26, %s5295_s26, %s5294_s14  }
  0xbb   : > { %s3226_s27 = sadd.s32 4294967294, %s4601_s20   ;;  %s4884_s16 = sadd.s32 1, %s4601_s20  }
  0xbc   : > { %s39_s9 = ssub.s32 %s4601_s20, %s4884_s16  ;;  %s42_s1 = sadd.s32 1, %s4597_s19 }
  0xbd   : > { %p40_p8 = scmp.eq.s32.totalorder %s39_s9, 0  ;;  %p49_p1 = scmp.ne.s32.totalorder %s4597_s19, %s4593_s18 }
  0xbe   : > { %p50_p3 = scmp.eq.s32.totalorder %s4601_s20, 0  ;;  %p55_p11 = scmp.ne.s32.totalorder %s4593_s18, %s4589_s17 }
  0xbf   : > { %s4895_s11 = scalar_select %p40_p8, %s4597_s19, %s42_s1  }
  0xc0   : > { %p4897_p12 = por %p50_p3, %p49_p1  ;;  %p5297_p13 = scmp.eq.s32.totalorder %s4706_s23, 0 }
  0xc1   : > { %p268_p0 = scmp.eq.s32.totalorder %s4706_s23, 1  ;;  %p274_p2 = scmp.eq.s32.totalorder %s3226_s27, 1 }
  0xc2   : > { %p4903_p6 = por %p5297_p13, %p55_p11  ;;  %p4187_p5 = scmp.lt.s32.totalorder %s4601_s20, 2 }
  0xc3   : > { %s415_s26 = sand.u32 1, %s4597_s19   ;;  %p4910_p7 = por %p268_p0, %p49_p1 }
  0xc4   : > { %p4914_p9 = por %p274_p2, %p55_p11  ;;  %s3236_s25 = sshll.u32 %s415_s26, 8 }
  0xc5   : > { %s5299_s13 = scalar_select %p4910_p7, 1, 0 }
  0xc6   : > { %s5300_s21 = scalar_select %p4914_p9, 1, 0 }
  0xc7   : > { %s3263_s28 = sshll.u32 %s4601_s20, 9  ;;  %s419_s15 = scalar_lea.vmem [#allocation2], %s3236_s25 }
  0xc8   : > { %s4922_s10 = scalar_lea.hbm %s5262_s0, %s3263_s28  ;;  %s426_s2 = sshll.u32 %s419_s15, 4  ;;  %s4924_s2 = int_to_ptr.vmem [resolvable:$true] %s426_s2 }
  0xc9   : > { %p4928_p4 = pnand %p4187_p5, %p4897_p12  ;;  %s4932_s27 = scalar_lea.sflag [#allocation3], %s415_s26 }
  0xca   : > { %s4457_s9 = scalar_lea.hbm %s4922_s10, 4096  ;;  %s4462_s30 = scalar_lea.hbm %s5262_s0, 8192 }
  0xcb   : > { %p4458_p10 = scmp.ne.s32.totalorder %s4922_s10, %s4457_s9  ;;  %p4459_p8 = pneg %p4928_p4 }
  0xcc   : > { %p4463_p11 = scmp.lt.u32.totalorder %s4922_s10, %s5262_s0  ;;  %p4464_p12 = scmp.lt.u32.totalorder %s4462_s30, %s4457_s9 }
  0xcd   : > { %p4460_p1 = pnand %p4459_p8, %p4458_p10  ;;  %p4466_p0 = scmp.lt.u32.totalorder %s4457_s9, %s4922_s10 }
  0xce   : > { %p4465_p13 = por %p4464_p12, %p4463_p11 }
  0xcf   : > { %p4461_p3 = pneg %p4460_p1 }
  0xd0   : > { %p4467_p2 = por %p4466_p0, %p4465_p13 }
  0xd2   : > { %p4468_p5 = pnand %p4467_p2, %p4461_p3 }
  0xd4   : > { %4471 = shalt.err (!%p4468_p5)
}
  0xd5   : > { %s4472_s26 = scalar_lea.vmem %s4924_s2, 4096  ;;  %s4617_s29 = smov [#allocation2]  }
  0xd6   : > { %p4473_p10 = scmp.ne.s32.totalorder %s4924_s2, %s4472_s26  ;;  %s4477_s15 = sshll.u32 %s4617_s29, 4  ;;  %s4478_s15 = int_to_ptr.vmem [resolvable:$false] %s4477_s15 }
  0xd7   : > { %s4479_s1 = scalar_lea.vmem %s4478_s15, 8192  ;;  %p4480_p7 = scmp.lt.s32.totalorder %s4924_s2, %s4478_s15 }
  0xd8   : > { %p4475_p1 = pnand %p4473_p10, %p4459_p8  ;;  %p4481_p11 = scmp.lt.s32.totalorder %s4479_s1, %s4472_s26 }
  0xda   : > { %p4476_p9 = pneg %p4475_p1  ;;  %p4482_p12 = por %p4481_p11, %p4480_p7 }
  0xdc   : > { %p4483_p13 = pnand %p4482_p12, %p4476_p9 }
  0xde   : > { %4486 = shalt.err (!%p4483_p13)
}
  0xdf   : > { %s4618_s9 = smov 1024   ;;  %s4619_s25 = smov 512  }
  0xe0   : > { %s4620_s30 = smov 32   ;;  %p5302_p8 = scmp.ne.s32.totalorder %s5289_s24, 0 }
  0xe1   : > { %4172 = dma.hbm_to_vmem [thread:$0]  (!%p4928_p4), %s4922_s10, 4096, %s4924_s2, %s4932_s27, %s4618_s9, %s4619_s25, %s4620_s30  }
  0xe2   : > { %438 = sbr.rel (%p5302_p8) target bundleno = 1712 (0x6b0), region = 60  ;;  %s4963_s28 = sand.u32 (!%p5302_p8), 1, %s4593_s18  }
  0xe3   : > { %s3240_s22 = sshll.u32 (!%p5302_p8), %s4963_s28, 8  ;;  %s441_s26 = scalar_lea.sflag (!%p5302_p8), [#allocation3], %s4963_s28 }
  0xe4   : > { %s4969_s29 = scalar_lea.vmem (!%p5302_p8), [#allocation2], %s3240_s22 }
  0xe9   : > { %4560 = dma.done.wait (%p4903_p6), %s441_s26, 4096  }
  0xea   : > { %4562 = vsyncadd (%p4903_p6), %s441_s26, 4294963200  ;;  %p5303_p7 = scmp.eq.s32.totalorder %s4706_s23, 0 }
  0xec   : > { %4564 = dma.done.wait (%p5303_p7), [#allocation6], 12288   ;;  %p5304_p9 = pmov %p5303_p7 }
  0xed   : > { %p5305_p4 = pmov %p5303_p7 }
  0xee   : > { %4566 = vsyncadd (%p5304_p9), [#allocation6], 4294955008 }
  0xef   : > { %4568 = dma.done.wait (%p5305_p4), [#allocation9], 2080   ;;  %p5306_p3 = pmov %p5305_p4 }
  0xf1   : > { %4570 = vsyncadd (%p5306_p3), [#allocation9], 4294965216  ;;  %p5307_p0 = pmov %p5306_p3 }
  0xf3   : > { %4572 = dma.done.wait (%p5307_p0), [#allocation12], 65792   ;;  %p5308_p2 = pmov %p5307_p0 }
  0xf4   : > { %p5309_p6 = pmov %p5307_p0 }
  0xf5   : > { %4574 = vsyncadd (%p5308_p2), [#allocation12], 4294901504 }
  0xf6   : > { %4576 = dma.done.wait (%p5309_p6), [#allocation15], 256   ;;  %p5310_p5 = pmov %p5307_p0 }
  0xf7   : > { %v566_v0 = vld [vmem:[#allocation5 + $0x80] sm:$0xff]  ;;  %v567_v1 = vld [vmem:[#allocation5 + $0x88] sm:$0xff]  ;;  %v568_v11 = vld [vmem:[#allocation5 + $0x90] sm:$0xff]  ;;  %vm1084_vm0 = vcmask 523264   ;;  %s5311_s30 = sld [smem:[#allocation28_spill]]  ;;  %vm1158_vm1 = vcmask 261120  }
  0xf8   : > { %4578 = vsyncadd (%p5310_p5), [#allocation15], 4294967040  ;;  %v598_v2 = vld [vmem:[#allocation5 + $0x180] sm:$0xff]  ;;  %v3465_v3 = vpack.c.bf16 %v567_v1, %v566_v0  ;;  %v599_v4 = vld [vmem:[#allocation5 + $0x188] sm:$0xff]  ;;  %s5146_s24 = scalar_lea.vmem [#allocation17], %s3240_s22  ;;  %s3248_s22 = sshll.u32 %s4963_s28, 3 }
  0xf9   : > { %v550_v5 = vld [vmem:[#allocation5] sm:$0xff]  ;;  %v551_v6 = vld [vmem:[#allocation5 + $0x8] sm:$0xff]  ;;  %v3497_v7 = vpack.c.bf16 %v599_v4, %v598_v2  ;;  %v569_v13 = vld [vmem:[#allocation5 + $0x98] sm:$0xff]  ;;  %s5153_s14 = scalar_lea.vmem [#allocation16], %s3248_s22  ;;  %s3258_s10 = sshll.u32 %s4706_s23, 7 }
  0xfa   : > { %v3467_v8 = vpack.c.bf16 %v551_v6, %v550_v5  ;;  %v582_v9 = vld [vmem:[#allocation5 + $0x100] sm:$0xff]  ;;  %v583_v10 = vld [vmem:[#allocation5 + $0x108] sm:$0xff]  ;;  %3466 = vmatprep.subr.bf16.mxu0 %v3465_v3  ;;  %v600_v14 = vld [vmem:[#allocation5 + $0x190] sm:$0xff]  ;;  %v3469_v16 = vpack.c.bf16 %v569_v13, %v568_v11  ;;  %s3043_s2 = sshll.u32 %s5153_s14, 4  ;;  %s5312_s15 = sld [smem:[#allocation29_spill]]  ;;  %s3044_s2 = int_to_ptr.vmem [resolvable:$true] %s3043_s2 }
  0xfb   : > { %v3499_v12 = vpack.c.bf16 %v583_v10, %v582_v9  ;;  %v601_v15 = vld [vmem:[#allocation5 + $0x198] sm:$0xff]  ;;  %3498 = vmatprep.subr.bf16.mxu1 %v3497_v7  ;;  %v552_v18 = vld [vmem:[#allocation5 + $0x10] sm:$0xff]  ;;  %v570_v23 = vld [vmem:[#allocation5 + $0xa0] sm:$0xff]  ;;  %s3025_s9 = scalar_lea.sflag [#allocation4], %s4963_s28  ;;  %s4487_s25 = scalar_lea.vmem %s3044_s2, 128 }
  0xfc   : > { %3468 = vmatpush3.bf16.msra.mxu0 %v3467_v8  ;;  %v3501_v17 = vpack.c.bf16 %v601_v15, %v600_v14  ;;  %v553_v19 = vld [vmem:[#allocation5 + $0x18] sm:$0xff]  ;;  %v584_v20 = vld [vmem:[#allocation5 + $0x110] sm:$0xff]  ;;  %v571_v24 = vld [vmem:[#allocation5 + $0xa8] sm:$0xff]  ;;  %p4488_p10 = scmp.ne.s32.totalorder %s3044_s2, %s4487_s25  ;;  %p5313_p1 = scmp.ne.s32.totalorder %s5299_s13, 0 }
  0xfd   : > { %3500 = vmatpush3.bf16.msra.mxu1 %v3499_v12  ;;  %v3471_v21 = vpack.c.bf16 %v553_v19, %v552_v18  ;;  %v585_v22 = vld [vmem:[#allocation5 + $0x118] sm:$0xff]  ;;  %3470 = vmatprep.subr.bf16.mxu0 %v3469_v16  ;;  %v3473_v26 = vpack.c.bf16 %v571_v24, %v570_v23  ;;  %v602_v27 = vld [vmem:[#allocation5 + $0x1a0] sm:$0xff]  ;;  %v603_v28 = vld [vmem:[#allocation5 + $0x1a8] sm:$0xff]  ;;  %s4623_s26 = smov [#allocation16]  }
  0xfe   : > { %3502 = vmatprep.subr.bf16.mxu1 %v3501_v17  ;;  %v3503_v25 = vpack.c.bf16 %v585_v22, %v584_v20  ;;  %v554_v29 = vld [vmem:[#allocation5 + $0x20] sm:$0xff]  ;;  %v3505_v30 = vpack.c.bf16 %v603_v28, %v602_v27  ;;  %v555_v31 = vld [vmem:[#allocation5 + $0x28] sm:$0xff]  ;;  %v572_v35 = vld [vmem:[#allocation5 + $0xb0] sm:$0xff]  ;;  %p4489_p11 = pnand %p4488_p10, %p5313_p1 }
  0xff   : > { %v586_v32 = vld [vmem:[#allocation5 + $0x120] sm:$0xff]  ;;  %v587_v33 = vld [vmem:[#allocation5 + $0x128] sm:$0xff]  ;;  %v3475_v34 = vpack.c.bf16 %v555_v31, %v554_v29  ;;  %v573_v36 = vld [vmem:[#allocation5 + $0xb8] sm:$0xff] }
 0x100   : > { %3472 = vmatpush3.bf16.msra.mxu0 %v3471_v21  ;;  %v604_v37 = vld [vmem:[#allocation5 + $0x1b0] sm:$0xff]  ;;  %v3507_v38 = vpack.c.bf16 %v587_v33, %v586_v32  ;;  %v3477_v39 = vpack.c.bf16 %v573_v36, %v572_v35  ;;  %v605_v40 = vld [vmem:[#allocation5 + $0x1b8] sm:$0xff]  ;;  %v574_v46 = vld [vmem:[#allocation5 + $0xc0] sm:$0xff]  ;;  %s5179_s1 = scalar_lea.hbm %s5312_s15, %s3258_s10  ;;  %p4490_p12 = pneg %p4489_p11 }
 0x101   : > { %3504 = vmatpush3.bf16.msra.mxu1 %v3503_v25  ;;  %3474 = vmatprep.subr.bf16.mxu0 %v3473_v26  ;;  %v556_v41 = vld [vmem:[#allocation5 + $0x30] sm:$0xff]  ;;  %v557_v42 = vld [vmem:[#allocation5 + $0x38] sm:$0xff]  ;;  %v3509_v43 = vpack.c.bf16 %v605_v40, %v604_v37  ;;  %v575_v47 = vld [vmem:[#allocation5 + $0xc8] sm:$0xff] }
 0x102   : > { %3506 = vmatprep.subr.bf16.mxu1 %v3505_v30  ;;  %v588_v44 = vld [vmem:[#allocation5 + $0x130] sm:$0xff]  ;;  %v589_v45 = vld [vmem:[#allocation5 + $0x138] sm:$0xff]  ;;  %v606_v48 = vld [vmem:[#allocation5 + $0x1c0] sm:$0xff]  ;;  %v3479_v50 = vpack.c.bf16 %v557_v42, %v556_v41  ;;  %v3481_v52 = vpack.c.bf16 %v575_v47, %v574_v46 }
 0x103   : > { %v607_v49 = vld [vmem:[#allocation5 + $0x1c8] sm:$0xff]  ;;  %v3511_v51 = vpack.c.bf16 %v589_v45, %v588_v44  ;;  %v558_v53 = vld [vmem:[#allocation5 + $0x40] sm:$0xff]  ;;  %v576_v58 = vld [vmem:[#allocation5 + $0xd0] sm:$0xff] }
 0x104   : > { %3476 = vmatpush3.bf16.msra.mxu0 %v3475_v34  ;;  %v559_v54 = vld [vmem:[#allocation5 + $0x48] sm:$0xff]  ;;  %v590_v55 = vld [vmem:[#allocation5 + $0x140] sm:$0xff]  ;;  %v3513_v56 = vpack.c.bf16 %v607_v49, %v606_v48  ;;  %v577_v59 = vld [vmem:[#allocation5 + $0xd8] sm:$0xff] }
 0x105   : > { %3508 = vmatpush3.bf16.msra.mxu1 %v3507_v38  ;;  %3478 = vmatprep.subr.bf16.mxu0 %v3477_v39  ;;  %v591_v57 = vld [vmem:[#allocation5 + $0x148] sm:$0xff]  ;;  %v608_v60 = vld [vmem:[#allocation5 + $0x1d0] sm:$0xff]  ;;  %v609_v61 = vld [vmem:[#allocation5 + $0x1d8] sm:$0xff]  ;;  %v3483_v62 = vpack.c.bf16 %v559_v54, %v558_v53  ;;  %v3485_v0 = vpack.c.bf16 %v577_v59, %v576_v58 }
 0x106   : > { %3510 = vmatprep.subr.bf16.mxu1 %v3509_v43  ;;  %v3515_v63 = vpack.c.bf16 %v591_v57, %v590_v55  ;;  %v560_v1 = vld [vmem:[#allocation5 + $0x50] sm:$0xff]  ;;  %v561_v2 = vld [vmem:[#allocation5 + $0x58] sm:$0xff]  ;;  %v3517_v4 = vpack.c.bf16 %v609_v61, %v608_v60  ;;  %v578_v6 = vld [vmem:[#allocation5 + $0xe0] sm:$0xff] }
 0x107   : > { %v592_v3 = vld [vmem:[#allocation5 + $0x150] sm:$0xff]  ;;  %v593_v5 = vld [vmem:[#allocation5 + $0x158] sm:$0xff]  ;;  %v579_v7 = vld [vmem:[#allocation5 + $0xe8] sm:$0xff]  ;;  %v3487_v10 = vpack.c.bf16 %v561_v2, %v560_v1 }
 0x108   : > { %3480 = vmatpush3.bf16.msra.mxu0 %v3479_v50  ;;  %v610_v8 = vld [vmem:[#allocation5 + $0x1e0] sm:$0xff]  ;;  %v611_v9 = vld [vmem:[#allocation5 + $0x1e8] sm:$0xff]  ;;  %v3519_v13 = vpack.c.bf16 %v593_v5, %v592_v3  ;;  %v3489_v14 = vpack.c.bf16 %v579_v7, %v578_v6  ;;  %v521_v17 = vld [vmem:[%s4969_s29 + $0x18] sm:$0xff] }
 0x109   : > { %3512 = vmatpush3.bf16.msra.mxu1 %v3511_v51  ;;  %3482 = vmatprep.subr.bf16.mxu0 %v3481_v52  ;;  %v562_v11 = vld [vmem:[#allocation5 + $0x60] sm:$0xff]  ;;  %v563_v12 = vld [vmem:[#allocation5 + $0x68] sm:$0xff]  ;;  %v3521_v18 = vpack.c.bf16 %v611_v9, %v610_v8  ;;  %v580_v20 = vld [vmem:[#allocation5 + $0xf0] sm:$0xff] }
 0x10a   : > { %3514 = vmatprep.subr.bf16.mxu1 %v3513_v56  ;;  %v594_v15 = vld [vmem:[#allocation5 + $0x160] sm:$0xff]  ;;  %v519_v16 = vld [vmem:[%s4969_s29 + $0x8] sm:$0xff]  ;;  %v581_v21 = vld [vmem:[#allocation5 + $0xf8] sm:$0xff]  ;;  %783 = vmatprep.mubr.f32.mxu1 %v521_v17  ;;  %v3491_v24 = vpack.c.bf16 %v563_v12, %v562_v11 }
 0x10b   : > { %v595_v19 = vld [vmem:[#allocation5 + $0x168] sm:$0xff]  ;;  %678 = vmatprep.mubr.f32.mxu0 %v519_v16  ;;  %v612_v22 = vld [vmem:[#allocation5 + $0x1f0] sm:$0xff]  ;;  %v613_v23 = vld [vmem:[#allocation5 + $0x1f8] sm:$0xff]  ;;  %v3493_v26 = vpack.c.bf16 %v581_v21, %v580_v20 }
 0x10c   : > { %3484 = vmatpush3.bf16.msra.mxu0 %v3483_v62  ;;  %v3523_v25 = vpack.c.bf16 %v595_v19, %v594_v15  ;;  %v564_v27 = vld [vmem:[#allocation5 + $0x70] sm:$0xff]  ;;  %v565_v28 = vld [vmem:[#allocation5 + $0x78] sm:$0xff]  ;;  %v3525_v29 = vpack.c.bf16 %v613_v23, %v612_v22  ;;  %v518_v34 = vld [vmem:[%s4969_s29] sm:$0xff] }
 0x10d   : > { %3516 = vmatpush3.bf16.msra.mxu1 %v3515_v63  ;;  %3486 = vmatprep.subr.bf16.mxu0 %v3485_v0  ;;  %v596_v30 = vld [vmem:[#allocation5 + $0x170] sm:$0xff]  ;;  %v597_v31 = vld [vmem:[#allocation5 + $0x178] sm:$0xff]  ;;  %v3495_v32 = vpack.c.bf16 %v565_v28, %v564_v27  ;;  %v523_v36 = vld [vmem:[%s4969_s29 + $0x28] sm:$0xff] }
 0x10e   : > { %3518 = vmatprep.subr.bf16.mxu1 %v3517_v4  ;;  %v3527_v33 = vpack.c.bf16 %v597_v31, %v596_v30  ;;  %v520_v35 = vld [vmem:[%s4969_s29 + $0x10] sm:$0xff]  ;;  %v825_v37 = vld [vmem:[#allocation7 + $0x8] sm:$0xff]  ;;  %v827_v38 = vld [vmem:[#allocation7 + $0x18] sm:$0xff] }
 0x10f   : > { %v824_v39 = vld [vmem:[#allocation7] sm:$0xff]  ;;  %v3529_v40 = vpack.c.bf16 %v827_v38, %v825_v37  ;;  %v826_v41 = vld [vmem:[#allocation7 + $0x10] sm:$0xff]  ;;  %v829_v42 = vld [vmem:[#allocation7 + $0x28] sm:$0xff] }
 0x110   : > { %3488 = vmatpush3.bf16.msra.mxu0 %v3487_v10  ;;  %v831_v43 = vld [vmem:[#allocation7 + $0x38] sm:$0xff]  ;;  %v3531_v45 = vpack.c.bf16 %v826_v41, %v824_v39  ;;  %v828_v47 = vld [vmem:[#allocation7 + $0x20] sm:$0xff]  ;;  %v830_v48 = vld [vmem:[#allocation7 + $0x30] sm:$0xff] }
 0x111   : > { %3520 = vmatpush3.bf16.msra.mxu1 %v3519_v13  ;;  %3490 = vmatprep.subr.bf16.mxu0 %v3489_v14  ;;  %v525_v44 = vld [vmem:[%s4969_s29 + $0x38] sm:$0xff]  ;;  %v3533_v46 = vpack.c.bf16 %v831_v43, %v829_v42  ;;  %v833_v49 = vld [vmem:[#allocation7 + $0x48] sm:$0xff]  ;;  %v522_v51 = vld [vmem:[%s4969_s29 + $0x20] sm:$0xff]  ;;  %v3535_v54 = vpack.c.bf16 %v830_v48, %v828_v47  ;;  %v4621_v48 = vmov 0.0  }
 0x112   : > { %3522 = vmatprep.subr.bf16.mxu1 %v3521_v18  ;;  %v835_v50 = vld [vmem:[#allocation7 + $0x58] sm:$0xff]  ;;  %v524_v52 = vld [vmem:[%s4969_s29 + $0x30] sm:$0xff]  ;;  %v527_v53 = vld [vmem:[%s4969_s29 + $0x48] sm:$0xff] }
 0x113   : > { %v529_v55 = vld [vmem:[%s4969_s29 + $0x58] sm:$0xff]  ;;  %v3537_v56 = vpack.c.bf16 %v835_v50, %v833_v49  ;;  %v832_v57 = vld [vmem:[#allocation7 + $0x40] sm:$0xff]  ;;  %v834_v58 = vld [vmem:[#allocation7 + $0x50] sm:$0xff] }
 0x114   : > { %3492 = vmatpush3.bf16.msra.mxu0 %v3491_v24  ;;  %v526_v59 = vld [vmem:[%s4969_s29 + $0x40] sm:$0xff]  ;;  %v837_v60 = vld [vmem:[#allocation7 + $0x68] sm:$0xff]  ;;  %v839_v61 = vld [vmem:[#allocation7 + $0x78] sm:$0xff]  ;;  %v3539_v1 = vpack.c.bf16 %v834_v58, %v832_v57 }
 0x115   : > { %3524 = vmatpush3.bf16.msra.mxu1 %v3523_v25  ;;  %3494 = vmatprep.subr.bf16.mxu0 %v3493_v26  ;;  %v528_v62 = vld [vmem:[%s4969_s29 + $0x50] sm:$0xff]  ;;  %v531_v63 = vld [vmem:[%s4969_s29 + $0x68] sm:$0xff]  ;;  %v533_v0 = vld [vmem:[%s4969_s29 + $0x78] sm:$0xff]  ;;  %v3541_v3 = vpack.c.bf16 %v839_v61, %v837_v60 }
 0x116   : > { %3526 = vmatprep.subr.bf16.mxu1 %v3525_v29  ;;  %v836_v2 = vld [vmem:[#allocation7 + $0x60] sm:$0xff]  ;;  %v838_v4 = vld [vmem:[#allocation7 + $0x70] sm:$0xff]  ;;  %v841_v5 = vld [vmem:[#allocation7 + $0x88] sm:$0xff] }
 0x117   : > { %v843_v6 = vld [vmem:[#allocation7 + $0x98] sm:$0xff]  ;;  %v530_v7 = vld [vmem:[%s4969_s29 + $0x60] sm:$0xff]  ;;  %v532_v8 = vld [vmem:[%s4969_s29 + $0x70] sm:$0xff]  ;;  %v3543_v10 = vpack.c.bf16 %v838_v4, %v836_v2 }
 0x118   : > { %3496 = vmatpush3.bf16.msra.mxu0 %v3495_v32  ;;  %v535_v9 = vld [vmem:[%s4969_s29 + $0x88] sm:$0xff]  ;;  %v537_v11 = vld [vmem:[%s4969_s29 + $0x98] sm:$0xff]  ;;  %v3545_v12 = vpack.c.bf16 %v843_v6, %v841_v5  ;;  %v840_v13 = vld [vmem:[#allocation7 + $0x80] sm:$0xff] }
 0x119   : > { %3528 = vmatpush3.bf16.msra.mxu1 %v3527_v33  ;;  %3530 = vmatprep.subr.bf16.mxu0 %v3529_v40  ;;  %v842_v14 = vld [vmem:[#allocation7 + $0x90] sm:$0xff]  ;;  %v845_v15 = vld [vmem:[#allocation7 + $0xa8] sm:$0xff]  ;;  %v847_v16 = vld [vmem:[#allocation7 + $0xb8] sm:$0xff] }
 0x11a   : > { %v534_v17 = vld [vmem:[%s4969_s29 + $0x80] sm:$0xff]  ;;  %v536_v18 = vld [vmem:[%s4969_s29 + $0x90] sm:$0xff]  ;;  %v539_v19 = vld [vmem:[%s4969_s29 + $0xa8] sm:$0xff]  ;;  %v3547_v20 = vpack.c.bf16 %v842_v14, %v840_v13  ;;  %v3549_v22 = vpack.c.bf16 %v847_v16, %v845_v15 }
 0x11b   : > { %679 = vmatmul.mubr.f32.vlgmr.msra.gmra.mrb[0].mxu0 %v518_v34  ;;  %v541_v21 = vld [vmem:[%s4969_s29 + $0xb8] sm:$0xff]  ;;  %v844_v23 = vld [vmem:[#allocation7 + $0xa0] sm:$0xff]  ;;  %v846_v24 = vld [vmem:[#allocation7 + $0xb0] sm:$0xff] }
 0x11c   : > { %784 = vmatmul.mubr.f32.vlgmr.msra.gmra.mrb[0].mxu1 %v520_v35  ;;  %683 = vmatprep.mubr.f32.mxu0 %v523_v36  ;;  %v849_v25 = vld [vmem:[#allocation7 + $0xc8] sm:$0xff]  ;;  %v851_v26 = vld [vmem:[#allocation7 + $0xd8] sm:$0xff]  ;;  %v538_v27 = vld [vmem:[%s4969_s29 + $0xa0] sm:$0xff]  ;;  %v3551_v30 = vpack.c.bf16 %v846_v24, %v844_v23 }
 0x11d   : > { %788 = vmatprep.mubr.f32.mxu1 %v525_v44  ;;  %3532 = vmatpush1.bf16.msra.mxu0 %v3531_v45  ;;  %v540_v28 = vld [vmem:[%s4969_s29 + $0xb0] sm:$0xff]  ;;  %v543_v29 = vld [vmem:[%s4969_s29 + $0xc8] sm:$0xff]  ;;  %v545_v31 = vld [vmem:[%s4969_s29 + $0xd8] sm:$0xff]  ;;  %v3553_v32 = vpack.c.bf16 %v851_v26, %v849_v25 }
 0x11e   : > { %3534 = vmatprep.subr.bf16.mxu0 %v3533_v46  ;;  %v848_v33 = vld [vmem:[#allocation7 + $0xc0] sm:$0xff]  ;;  %v850_v34 = vld [vmem:[#allocation7 + $0xd0] sm:$0xff]  ;;  %v547_v37 = vld [vmem:[%s4969_s29 + $0xe8] sm:$0xff] }
 0x11f   : > { %684 = vmatmul.mubr.f32.gmra.mrb[2].mxu0 %v522_v51  ;;  %v542_v35 = vld [vmem:[%s4969_s29 + $0xc0] sm:$0xff]  ;;  %v544_v36 = vld [vmem:[%s4969_s29 + $0xd0] sm:$0xff]  ;;  %v3555_v38 = vpack.c.bf16 %v850_v34, %v848_v33  ;;  %v549_v39 = vld [vmem:[%s4969_s29 + $0xf8] sm:$0xff] }
 0x120   : > { %789 = vmatmul.mubr.f32.gmra.mrb[2].mxu1 %v524_v52  ;;  %688 = vmatprep.mubr.f32.mxu0 %v527_v53  ;;  %v546_v40 = vld [vmem:[%s4969_s29 + $0xe0] sm:$0xff]  ;;  %v548_v41 = vld [vmem:[%s4969_s29 + $0xf0] sm:$0xff]  ;;  %v853_v42 = vld [vmem:[#allocation7 + $0xe8] sm:$0xff]  ;;  %s4491_s29 = sshll.u32 %s4623_s26, 4  ;;  %s4492_s29 = int_to_ptr.vmem [resolvable:$false] %s4491_s29 }
 0x121   : > { %793 = vmatprep.mubr.f32.mxu1 %v529_v55  ;;  %3536 = vmatpush1.bf16.msra.mxu0 %v3535_v54  ;;  %v855_v43 = vld [vmem:[#allocation7 + $0xf8] sm:$0xff]  ;;  %v852_v45 = vld [vmem:[#allocation7 + $0xe0] sm:$0xff]  ;;  %v854_v46 = vld [vmem:[#allocation7 + $0xf0] sm:$0xff]  ;;  %s4493_s22 = scalar_lea.vmem %s4492_s29, 256  ;;  %p4494_p13 = scmp.lt.s32.totalorder %s3044_s2, %s4492_s29 }
 0x122   : > { %3538 = vmatprep.subr.bf16.mxu0 %v3537_v56  ;;  %v3557_v44 = vpack.c.bf16 %v855_v43, %v853_v42  ;;  %v3559_v47 = vpack.c.bf16 %v854_v46, %v852_v45  ;;  %v1050_v42 = vld [vmem:[%s5269_s7] sm:$0xff]  ;;  %v1052_v43 = vld [vmem:[%s5269_s7 + $0x10] sm:$0xff]  ;;  %v1051_v45 = vld [vmem:[%s5269_s7 + $0x8] sm:$0xff]  ;;  %p4495_p8 = scmp.lt.s32.totalorder %s4493_s22, %s4487_s25 }
 0x123   : > { %689 = vmatmul.mubr.f32.gmra.mrb[4].mxu0 %v526_v59  ;;  %v1053_v46 = vld [vmem:[%s5269_s7 + $0x18] sm:$0xff] }
 0x124   : > { %794 = vmatmul.mubr.f32.gmra.mrb[4].mxu1 %v528_v62  ;;  %693 = vmatprep.mubr.f32.mxu0 %v531_v63  ;;  %p4496_p7 = por %p4495_p8, %p4494_p13 }
 0x125   : > { %798 = vmatprep.mubr.f32.mxu1 %v533_v0  ;;  %3540 = vmatpush1.bf16.msra.mxu0 %v3539_v1 }
 0x126   : > { %3542 = vmatprep.subr.bf16.mxu0 %v3541_v3  ;;  %p4497_p9 = pnand %p4496_p7, %p4490_p12 }
 0x127   : > { %694 = vmatmul.mubr.f32.gmra.mrb[6].mxu0 %v530_v7 }
 0x128   : > { %799 = vmatmul.mubr.f32.gmra.mrb[6].mxu1 %v532_v8  ;;  %698 = vmatprep.mubr.f32.mxu0 %v535_v9 }
 0x129   : > { %803 = vmatprep.mubr.f32.mxu1 %v537_v11  ;;  %3544 = vmatpush1.bf16.msra.mxu0 %v3543_v10 }
 0x12a   : > { %3546 = vmatprep.subr.bf16.mxu0 %v3545_v12 }
 0x12b   : > { %699 = vmatmul.mubr.f32.gmra.mrb[8].mxu0 %v534_v17 }
 0x12c   : > { %804 = vmatmul.mubr.f32.gmra.mrb[8].mxu1 %v536_v18  ;;  %703 = vmatprep.mubr.f32.mxu0 %v539_v19 }
 0x12d   : > { %808 = vmatprep.mubr.f32.mxu1 %v541_v21  ;;  %3548 = vmatpush1.bf16.msra.mxu0 %v3547_v20 }
 0x12e   : > { %3550 = vmatprep.subr.bf16.mxu0 %v3549_v22 }
 0x12f   : > { %704 = vmatmul.mubr.f32.gmra.mrb[10].mxu0 %v538_v27 }
 0x130   : > { %809 = vmatmul.mubr.f32.gmra.mrb[10].mxu1 %v540_v28  ;;  %708 = vmatprep.mubr.f32.mxu0 %v543_v29 }
 0x131   : > { %813 = vmatprep.mubr.f32.mxu1 %v545_v31  ;;  %3552 = vmatpush1.bf16.msra.mxu0 %v3551_v30 }
 0x132   : > { %3554 = vmatprep.subr.bf16.mxu0 %v3553_v32 }
 0x133   : > { %709 = vmatmul.mubr.f32.gmra.mrb[12].mxu0 %v542_v35 }
 0x134   : > { %814 = vmatmul.mubr.f32.gmra.mrb[12].mxu1 %v544_v36  ;;  %713 = vmatprep.mubr.f32.mxu0 %v547_v37 }
 0x135   : > { %818 = vmatprep.mubr.f32.mxu1 %v549_v39  ;;  %3556 = vmatpush1.bf16.msra.mxu0 %v3555_v38 }
 0x136   : > { %3558 = vmatprep.subr.bf16.mxu0 %v3557_v44  ;;  %v4622_v44 = vmov 0  }
 0x137   : > { %714 = vmatmul.mubr.f32.gmra.mrb[14].mxu0 %v546_v40  ;;  %4247 = vset.pattern.permute.xlu0 %v4622_v44 }
 0x138   : > { %819 = vmatmul.mubr.f32.gmra.mrb[14].mxu1 %v548_v41  ;;  %920 = vmatprep.mubr.f32.mxu0 %v4621_v48  ;;  %v4249_v41 = vld [vmem:[#allocation13] sm:$0xff]  }
 0x139   : > { %3560 = vmatpush1.bf16.msra.mxu0 %v3559_v47  ;;  %3415 = vmatprep.mubr.msk.bf16.mxu1 %vm1084_vm0, %v4249_v41  ;;  %v1147_v47 = vld [vmem:[%s5311_s30 + $0x8] sm:$0xff] }
 0x13a   : > { %4248 = vset.pattern.permute.xlu1 %v4622_v44  ;;  %1056 = vperm.xlu0 %4247, %v1050_v42  }
 0x13b   : > { %1066 = vperm.xlu1 %4248, %v1052_v43  }
 0x13e   : > { %1061 = vperm.xlu0 %4247, %v1051_v45  }
 0x13f   : > { %1071 = vperm.xlu1 %4248, %v1053_v46  }
 0x142   : > { %1155 = vperm.xlu0 %4247, %v1147_v47  }
 0x1ee   : > { %v3297_v49 = vpop.f32.mrb[0].mxu0 }
 0x1ef   : > { %v3353_v50 = vpop.f32.mrb[0].mxu1  ;;  %v3298_v51 = vpop.f32.mrb[1].mxu0 }
 0x1f0   : > { %v3299_v52 = vadd.f32 %v3298_v51, %v3297_v49  ;;  %v3354_v53 = vpop.f32.mrb[1].mxu1  ;;  %v1146_v49 = vld [vmem:[%s5311_s30] sm:$0xff] }
 0x1f1   : > { %v3355_v54 = vadd.f32 %v3354_v53, %v3353_v50  ;;  %1150 = vperm.xlu1 %4248, %v1146_v49   ;;  %v970_v50 = vlaneseq  ;;  %v969_v53 = vld [vmem:[#allocation8] sm:$0x3] }
 0x1f2   : > { %v3300_v55 = vpop.f32.mrb[2].mxu0 }
 0x1f3   : > { %v5024_v56 = vadd.f32 %v3355_v54, %v3299_v52  ;;  %v3356_v57 = vpop.f32.mrb[2].mxu1  ;;  %v3301_v58 = vpop.f32.mrb[3].mxu0  ;;  %v971_v51 = vshrl.u32 %v970_v50, 7 }
 0x1f4   : > { %v3302_v59 = vadd.f32 %v3301_v58, %v3300_v55  ;;  %v3357_v60 = vpop.f32.mrb[3].mxu1 }
 0x1f5   : > { %v3358_v61 = vadd.f32 %v3357_v60, %v3356_v57  ;;  %921 = vmatmul.mubr.f32.vlgmr.msra.gmra.mrb[16].mxu0 %v5024_v56  ;;  %v972_v52 = vsub.s32 0, %v971_v51  ;;  %v992_v54 = vsub.s32 1, %v971_v51 }
 0x1f6   : > { %v3303_v62 = vpop.f32.mrb[4].mxu0  ;;  %926 = vmatprep.mubr.f32.mxu0 %v4621_v48 }
 0x1f7   : > { %v5028_v63 = vadd.f32 %v3358_v61, %v3302_v59  ;;  %v3359_v0 = vpop.f32.mrb[4].mxu1  ;;  %v3304_v1 = vpop.f32.mrb[5].mxu0  ;;  %v5074_v55 = vrot.slane %v969_v53, %v972_v52  ;;  %v5076_v57 = vrot.slane %v969_v53, %v992_v54 }
 0x1f8   : > { %v3305_v2 = vadd.f32 %v3304_v1, %v3303_v62  ;;  %v3360_v3 = vpop.f32.mrb[5].mxu1 }
 0x1f9   : > { %v3361_v4 = vadd.f32 %v3360_v3, %v3359_v0  ;;  %927 = vmatmul.mubr.f32.gmra.mrb[18].mxu0 %v5028_v63 }
 0x1fa   : > { %v3306_v5 = vpop.f32.mrb[6].mxu0  ;;  %932 = vmatprep.mubr.f32.mxu0 %v4621_v48 }
 0x1fb   : > { %v5032_v6 = vadd.f32 %v3361_v4, %v3305_v2  ;;  %v3362_v7 = vpop.f32.mrb[6].mxu1  ;;  %v3307_v8 = vpop.f32.mrb[7].mxu0 }
 0x1fc   : > { %v3308_v9 = vadd.f32 %v3307_v8, %v3306_v5  ;;  %v3363_v10 = vpop.f32.mrb[7].mxu1 }
 0x1fd   : > { %v3364_v11 = vadd.f32 %v3363_v10, %v3362_v7  ;;  %933 = vmatmul.mubr.f32.gmra.mrb[20].mxu0 %v5032_v6 }
 0x1fe   : > { %v3309_v12 = vpop.f32.mrb[8].mxu0  ;;  %938 = vmatprep.mubr.f32.mxu0 %v4621_v48 }
 0x1ff   : > { %v5036_v13 = vadd.f32 %v3364_v11, %v3308_v9  ;;  %v3365_v14 = vpop.f32.mrb[8].mxu1  ;;  %v3310_v15 = vpop.f32.mrb[9].mxu0 }
 0x200   : > { %v3311_v16 = vadd.f32 %v3310_v15, %v3309_v12  ;;  %v3366_v17 = vpop.f32.mrb[9].mxu1 }
 0x201   : > { %v3367_v18 = vadd.f32 %v3366_v17, %v3365_v14  ;;  %939 = vmatmul.mubr.f32.gmra.mrb[22].mxu0 %v5036_v13 }
 0x202   : > { %v3312_v19 = vpop.f32.mrb[10].mxu0  ;;  %944 = vmatprep.mubr.f32.mxu0 %v4621_v48 }
 0x203   : > { %v5040_v20 = vadd.f32 %v3367_v18, %v3311_v16  ;;  %v3368_v21 = vpop.f32.mrb[10].mxu1  ;;  %v3313_v22 = vpop.f32.mrb[11].mxu0 }
 0x204   : > { %v3314_v23 = vadd.f32 %v3313_v22, %v3312_v19  ;;  %v3369_v24 = vpop.f32.mrb[11].mxu1 }
 0x205   : > { %v3370_v25 = vadd.f32 %v3369_v24, %v3368_v21  ;;  %945 = vmatmul.mubr.f32.gmra.mrb[24].mxu0 %v5040_v20 }
 0x206   : > { %v3315_v26 = vpop.f32.mrb[12].mxu0  ;;  %950 = vmatprep.mubr.f32.mxu0 %v4621_v48 }
 0x207   : > { %v5044_v27 = vadd.f32 %v3370_v25, %v3314_v23  ;;  %v3371_v28 = vpop.f32.mrb[12].mxu1  ;;  %v3316_v29 = vpop.f32.mrb[13].mxu0 }
 0x208   : > { %v3317_v30 = vadd.f32 %v3316_v29, %v3315_v26  ;;  %v3372_v31 = vpop.f32.mrb[13].mxu1 }
 0x209   : > { %v3373_v32 = vadd.f32 %v3372_v31, %v3371_v28  ;;  %951 = vmatmul.mubr.f32.gmra.mrb[26].mxu0 %v5044_v27 }
 0x20a   : > { %v3318_v33 = vpop.f32.mrb[14].mxu0  ;;  %956 = vmatprep.mubr.f32.mxu0 %v4621_v48 }
 0x20b   : > { %v5048_v34 = vadd.f32 %v3373_v32, %v3317_v30  ;;  %v3374_v35 = vpop.f32.mrb[14].mxu1  ;;  %v3319_v36 = vpop.f32.mrb[15].mxu0 }
 0x20c   : > { %v3320_v37 = vadd.f32 %v3319_v36, %v3318_v33  ;;  %v3375_v38 = vpop.f32.mrb[15].mxu1 }
 0x20d   : > { %v3376_v39 = vadd.f32 %v3375_v38, %v3374_v35  ;;  %957 = vmatmul.mubr.f32.gmra.mrb[28].mxu0 %v5048_v34 }
 0x20e   : > { %962 = vmatprep.mubr.f32.mxu0 %v4621_v48 }
 0x20f   : > { %v5052_v40 = vadd.f32 %v3376_v39, %v3320_v37 }
 0x211   : > { %963 = vmatmul.mubr.f32.gmra.mrb[30].mxu0 %v5052_v40 }
 0x2c8   : > { %v922_v58 = vpop.f32.mrb[16].mxu0 }
 0x2c9   : > { %v974_v59 = vadd.f32 %v5074_v55, %v922_v58  ;;  %v1010_v60 = vadd.f32 %v922_v58, %v5024_v56  ;;  %v924_v61 = vpop.f32.mrb[17].mxu0 }
 0x2ca   : > { %v994_v62 = vadd.f32 %v5076_v57, %v924_v61 }
 0x2cb   : > { %v982_v0 = vmax.f32 %v974_v59, %v5024_v56  ;;  %v1018_v1 = vadd.f32 %v1010_v60, %v924_v61 }
 0x2cc   : > { %v928_v2 = vpop.f32.mrb[18].mxu0 }
 0x2cd   : > { %v1002_v3 = vmax.f32 %v982_v0, %v994_v62  ;;  %v1026_v4 = vmul.f32 0.33333334, %v1018_v1  ;;  %v975_v5 = vadd.f32 %v5074_v55, %v928_v2  ;;  %v1011_v7 = vadd.f32 %v928_v2, %v5028_v63  ;;  %v930_v8 = vpop.f32.mrb[19].mxu0 }
 0x2ce   : > { %v995_v9 = vadd.f32 %v5076_v57, %v930_v8 }
 0x2cf   : > { %v1034_v10 = vadd.f32 %v1026_v4, %v1002_v3  ;;  %v983_v11 = vmax.f32 %v975_v5, %v5028_v63  ;;  %v1019_v12 = vadd.f32 %v1011_v7, %v930_v8 }
 0x2d0   : > { %v934_v14 = vpop.f32.mrb[20].mxu0 }
 0x2d1   : > { %v1003_v15 = vmax.f32 %v983_v11, %v995_v9  ;;  %v1027_v16 = vmul.f32 0.33333334, %v1019_v12  ;;  %v976_v56 = vadd.f32 %v5074_v55, %v934_v14  ;;  %v1012_v17 = vadd.f32 %v934_v14, %v5032_v6  ;;  %v936_v18 = vpop.f32.mrb[21].mxu0 }
 0x2d2   : > { %v996_v19 = vadd.f32 %v5076_v57, %v936_v18 }
 0x2d3   : > { %v1035_v21 = vadd.f32 %v1027_v16, %v1003_v15  ;;  %v984_v22 = vmax.f32 %v976_v56, %v5032_v6  ;;  %v1020_v23 = vadd.f32 %v1012_v17, %v936_v18 }
 0x2d4   : > { %v940_v24 = vpop.f32.mrb[22].mxu0 }
 0x2d5   : > { %v1004_v25 = vmax.f32 %v984_v22, %v996_v19  ;;  %v1028_v26 = vmul.f32 0.33333334, %v1020_v23  ;;  %v977_v63 = vadd.f32 %v5074_v55, %v940_v24  ;;  %v1013_v28 = vadd.f32 %v940_v24, %v5036_v13  ;;  %v942_v29 = vpop.f32.mrb[23].mxu0  ;;  %v1057_v22 = vpop.permute.xlu0 %1056 }
 0x2d6   : > { %v997_v30 = vadd.f32 %v5076_v57, %v942_v29  ;;  %v1046_v31 = vpack.c.bf16 %v1035_v21, %v1034_v10  ;;  %v4250_v21 = vld [vmem:[#allocation13 + $0x8] sm:$0xff]  }
 0x2d7   : > { %v1036_v32 = vadd.f32 %v1028_v26, %v1004_v25  ;;  %v985_v33 = vmax.f32 %v977_v63, %v5036_v13  ;;  %v1021_v35 = vadd.f32 %v1013_v28, %v942_v29 }
 0x2d8   : > { %3407 = vmatprep.subr.bf16.mxu1 %v1046_v31  ;;  %v946_v36 = vpop.f32.mrb[24].mxu0 }
 0x2d9   : > { %v1005_v37 = vmax.f32 %v985_v33, %v997_v30  ;;  %v1029_v6 = vmul.f32 0.33333334, %v1021_v35  ;;  %v978_v38 = vadd.f32 %v5074_v55, %v946_v36  ;;  %v1014_v39 = vadd.f32 %v946_v36, %v5040_v20  ;;  %3408 = vmatpush3.bf16.msra.mxu1 %v1046_v31  ;;  %v948_v41 = vpop.f32.mrb[25].mxu0  ;;  %v1062_v28 = vpop.permute.xlu0 %1061 }
 0x2da   : > { %v998_v42 = vadd.f32 %v5076_v57, %v948_v41 }
 0x2db   : > { %v1037_v43 = vadd.f32 %v1029_v6, %v1005_v37  ;;  %v986_v44 = vmax.f32 %v978_v38, %v5040_v20  ;;  %v1022_v45 = vadd.f32 %v1014_v39, %v948_v41  ;;  %v1345_v38 = vld [vmem:[#allocation11 + $0x8] sm:$0xff] }
 0x2dc   : > { %v952_v46 = vpop.f32.mrb[26].mxu0  ;;  %v1377_v39 = vld [vmem:[#allocation11 + $0x108] sm:$0xff] }
 0x2dd   : > { %v1006_v47 = vmax.f32 %v986_v44, %v998_v42  ;;  %v1030_v13 = vmul.f32 0.33333334, %v1022_v45  ;;  %v979_v49 = vadd.f32 %v5074_v55, %v952_v46  ;;  %v1015_v50 = vadd.f32 %v952_v46, %v5044_v27  ;;  %v954_v51 = vpop.f32.mrb[27].mxu0  ;;  %v1344_v42 = vld [vmem:[#allocation11] sm:$0xff]  ;;  %v1145_v44 = vld [vmem:[#allocation14 + $0x8] sm:$0xff] }
 0x2de   : > { %v999_v52 = vadd.f32 %v5076_v57, %v954_v51  ;;  %v1047_v53 = vpack.c.bf16 %v1037_v43, %v1036_v32  ;;  %v3601_v41 = vpack.c.bf16 %v1377_v39, %v1345_v38  ;;  %v1376_v43 = vld [vmem:[#allocation11 + $0x100] sm:$0xff]  ;;  %v1793_v39 = vld [vmem:[#allocation11 + $0xe08] sm:$0xff] }
 0x2df   : > { %v1038_v54 = vadd.f32 %v1030_v13, %v1006_v47  ;;  %v987_v58 = vmax.f32 %v979_v49, %v5044_v27  ;;  %v1023_v59 = vadd.f32 %v1015_v50, %v954_v51  ;;  %v3603_v45 = vpack.c.bf16 %v1376_v43, %v1344_v42  ;;  %v1250_v46 = vld [vmem:[#allocation10] sm:$0xff]  ;;  %v1251_v47 = vld [vmem:[#allocation10 + $0x8] sm:$0xff] }
 0x2e0   : > { %3409 = vmatprep.subr.bf16.mxu1 %v1047_v53  ;;  %v958_v60 = vpop.f32.mrb[28].mxu0  ;;  %v3569_v13 = vpack.c.bf16 %v1251_v47, %v1250_v46  ;;  %v1409_v49 = vld [vmem:[#allocation11 + $0x208] sm:$0xff]  ;;  %v1792_v42 = vld [vmem:[#allocation11 + $0xe00] sm:$0xff]  ;;  %v1265_v46 = vld [vmem:[#allocation10 + $0x78] sm:$0xff] }
 0x2e1   : > { %v1007_v61 = vmax.f32 %v987_v58, %v999_v52  ;;  %v1031_v20 = vmul.f32 0.33333334, %v1023_v59  ;;  %v980_v62 = vadd.f32 %v5074_v55, %v958_v60  ;;  %v1016_v0 = vadd.f32 %v958_v60, %v5048_v34  ;;  %3410 = vmatpush3.bf16.msra.mxu1 %v1047_v53  ;;  %v960_v1 = vpop.f32.mrb[29].mxu0  ;;  %v1441_v50 = vld [vmem:[#allocation11 + $0x308] sm:$0xff]  ;;  %v1408_v52 = vld [vmem:[#allocation11 + $0x200] sm:$0xff]  ;;  %v1252_v58 = vld [vmem:[#allocation10 + $0x10] sm:$0xff] }
 0x2e2   : > { %v1000_v2 = vadd.f32 %v5076_v57, %v960_v1  ;;  %v3605_v51 = vpack.c.bf16 %v1441_v50, %v1409_v49  ;;  %v1440_v53 = vld [vmem:[#allocation11 + $0x300] sm:$0xff]  ;;  %3570 = vmatprep.subr.bf16.mxu0 %v3569_v13  ;;  %v1253_v59 = vld [vmem:[#allocation10 + $0x18] sm:$0xff]  ;;  %v1349_v49 = vld [vmem:[#allocation11 + $0x28] sm:$0xff] }
 0x2e3   : > { %v1039_v3 = vadd.f32 %v1031_v20, %v1007_v61  ;;  %v988_v4 = vmax.f32 %v980_v62, %v5048_v34  ;;  %v1024_v5 = vadd.f32 %v1016_v0, %v960_v1  ;;  %3572 = vmatpush3.bf16.msra.mxu0 %v3569_v13  ;;  %v3573_v60 = vpack.c.bf16 %v1253_v59, %v1252_v58  ;;  %v1473_v61 = vld [vmem:[#allocation11 + $0x408] sm:$0xff]  ;;  %v1472_v0 = vld [vmem:[#allocation11 + $0x400] sm:$0xff]  ;;  %v1156_v58 = vpop.permute.xlu0 %1155 }
 0x2e4   : > { %v964_v7 = vpop.f32.mrb[30].mxu0  ;;  %v1505_v20 = vld [vmem:[#allocation11 + $0x508] sm:$0xff]  ;;  %v1504_v1 = vld [vmem:[#allocation11 + $0x500] sm:$0xff] }
 0x2e5   : > { %v1008_v8 = vmax.f32 %v988_v4, %v1000_v2  ;;  %v1032_v27 = vmul.f32 0.33333334, %v1024_v5  ;;  %v981_v9 = vadd.f32 %v5074_v55, %v964_v7  ;;  %v1017_v10 = vadd.f32 %v964_v7, %v5052_v40  ;;  %v966_v11 = vpop.f32.mrb[31].mxu0  ;;  %v1144_v55 = vld [vmem:[#allocation14] sm:$0xff]  ;;  %3574 = vmatprep.subr.bf16.mxu0 %v3573_v60  ;;  %v1255_v4 = vld [vmem:[#allocation10 + $0x28] sm:$0xff] }
 0x2e6   : > { %v1001_v12 = vadd.f32 %v5076_v57, %v966_v11  ;;  %v1048_v14 = vpack.c.bf16 %v1039_v3, %v1038_v54  ;;  %v1067_v57 = vpop.permute.xlu1 %1066  ;;  %v3607_v54 = vpack.c.bf16 %v1440_v53, %v1408_v52  ;;  %v3609_v62 = vpack.c.bf16 %v1505_v20, %v1473_v61  ;;  %v1254_v3 = vld [vmem:[#allocation10 + $0x20] sm:$0xff]  ;;  %v1537_v7 = vld [vmem:[#allocation11 + $0x608] sm:$0xff]  ;;  %v1347_v52 = vld [vmem:[#allocation11 + $0x18] sm:$0xff] }
 0x2e7   : > { %v1040_v15 = vadd.f32 %v1032_v27, %v1008_v8  ;;  %v989_v16 = vmax.f32 %v981_v9, %v5052_v40  ;;  %v1025_v56 = vadd.f32 %v1017_v10, %v966_v11  ;;  %v3611_v2 = vpack.c.bf16 %v1504_v1, %v1472_v0  ;;  %3576 = vmatpush3.bf16.msra.mxu0 %v3573_v60  ;;  %v1569_v8 = vld [vmem:[#allocation11 + $0x708] sm:$0xff]  ;;  %v1536_v9 = vld [vmem:[#allocation11 + $0x600] sm:$0xff]  ;;  %v1379_v53 = vld [vmem:[#allocation11 + $0x118] sm:$0xff] }
 0x2e8   : > { %3411 = vmatprep.subr.bf16.mxu1 %v1048_v14  ;;  %v3577_v5 = vpack.c.bf16 %v1255_v4, %v1254_v3  ;;  %v3613_v27 = vpack.c.bf16 %v1569_v8, %v1537_v7  ;;  %v1568_v10 = vld [vmem:[#allocation11 + $0x700] sm:$0xff]  ;;  %v1381_v50 = vld [vmem:[#allocation11 + $0x128] sm:$0xff] }
 0x2e9   : > { %v1009_v17 = vmax.f32 %v989_v16, %v1001_v12  ;;  %v1033_v18 = vmul.f32 0.33333334, %v1025_v56  ;;  %3412 = vmatpush3.bf16.msra.mxu1 %v1048_v14  ;;  %v3615_v11 = vpack.c.bf16 %v1568_v10, %v1536_v9  ;;  %v1256_v12 = vld [vmem:[#allocation10 + $0x30] sm:$0xff]  ;;  %v1257_v14 = vld [vmem:[#allocation10 + $0x38] sm:$0xff]  ;;  %v1601_v16 = vld [vmem:[#allocation11 + $0x808] sm:$0xff] }
 0x2ea   : > { %v1072_v63 = vpop.permute.xlu1 %1071  ;;  %3578 = vmatprep.subr.bf16.mxu0 %v3577_v5  ;;  %v1633_v56 = vld [vmem:[#allocation11 + $0x908] sm:$0xff]  ;;  %v1348_v7 = vld [vmem:[#allocation11 + $0x20] sm:$0xff] }
 0x2eb   : > { %v1041_v34 = vadd.f32 %v1033_v18, %v1009_v17  ;;  %3580 = vmatpush3.bf16.msra.mxu0 %v3577_v5  ;;  %v3617_v17 = vpack.c.bf16 %v1633_v56, %v1601_v16  ;;  %v1600_v18 = vld [vmem:[#allocation11 + $0x800] sm:$0xff]  ;;  %v1445_v9 = vld [vmem:[#allocation11 + $0x328] sm:$0xff] }
 0x2ec   : > { %v1380_v8 = vld [vmem:[#allocation11 + $0x120] sm:$0xff] }
 0x2ed   : > { %v1049_v19 = vpack.c.bf16 %v1041_v34, %v1040_v15  ;;  %v3581_v15 = vpack.c.bf16 %v1257_v14, %v1256_v12  ;;  %v1632_v34 = vld [vmem:[#allocation11 + $0x900] sm:$0xff]  ;;  %v3667_v10 = vpack.c.bf16 %v1380_v8, %v1348_v7  ;;  %v1378_v12 = vld [vmem:[#allocation11 + $0x110] sm:$0xff]  ;;  %v1733_v7 = vld [vmem:[#allocation11 + $0xc28] sm:$0xff] }
 0x2ee   : > { %v1151_v60 = vpop.permute.xlu1 %1150  ;;  %v1412_v14 = vld [vmem:[#allocation11 + $0x220] sm:$0xff]  ;;  %v1765_v8 = vld [vmem:[#allocation11 + $0xd28] sm:$0xff] }
 0x2ef   : > { %3413 = vmatprep.subr.bf16.mxu1 %v1049_v19  ;;  %3582 = vmatprep.subr.bf16.mxu0 %v3581_v15  ;;  %v1444_v56 = vld [vmem:[#allocation11 + $0x320] sm:$0xff] }
 0x2f0   : > { %3414 = vmatpush3.bf16.msra.mxu1 %v1049_v19  ;;  %v3619_v19 = vpack.c.bf16 %v1632_v34, %v1600_v18  ;;  %3584 = vmatpush3.bf16.msra.mxu0 %v3581_v15  ;;  %v1443_v18 = vld [vmem:[#allocation11 + $0x318] sm:$0xff] }
 0x2f3   : > { %3416 = vmatmul.mubr.msk.bf16.vlgmr.msra.gmra.mrb[16].mxu1 %vm1084_vm0, %v4250_v21  ;;  %v1258_v21 = vld [vmem:[#allocation10 + $0x40] sm:$0xff] }
 0x2f4   : > { %3427 = vmatprep.mubr.msk.f32.mxu1 %vm1158_vm1, %v1144_v55  ;;  %v1259_v55 = vld [vmem:[#allocation10 + $0x48] sm:$0xff] }
 0x3c6   : > { %v3417_v23 = vpop.f32.mrb[16].mxu1 }
 0x3c7   : > { %v1134_v40 = vadd.f32 %v3417_v23, %v1067_v57  ;;  %v1125_v24 = vpop.f32.mrb[17].mxu1  ;;  %v3585_v57 = vpack.c.bf16 %v1259_v55, %v1258_v21  ;;  %v1697_v23 = vld [vmem:[#allocation11 + $0xb08] sm:$0xff] }
 0x3c8   : > { %v1126_v25 = vadd.f32 %v1125_v24, %v1057_v22  ;;  %v3418_v26 = vpop.f32.mrb[18].mxu1  ;;  %v1665_v22 = vld [vmem:[#allocation11 + $0xa08] sm:$0xff]  ;;  %v1664_v24 = vld [vmem:[#allocation11 + $0xa00] sm:$0xff] }
 0x3c9   : > { %v1137_v29 = vadd.f32 %v3418_v26, %v1072_v63  ;;  %v1128_v30 = vpop.f32.mrb[19].mxu1  ;;  %v1142_v32 = vmax.f32 %v1134_v40, 0.0  ;;  %v3621_v40 = vpack.c.bf16 %v1697_v23, %v1665_v22  ;;  %3586 = vmatprep.subr.bf16.mxu0 %v3585_v57  ;;  %v1260_v63 = vld [vmem:[#allocation10 + $0x50] sm:$0xff]  ;;  %v1509_v21 = vld [vmem:[#allocation11 + $0x528] sm:$0xff]  ;;  %v3671_v22 = vpack.c.bf16 %v1444_v56, %v1412_v14  ;;  %v1732_v14 = vld [vmem:[#allocation11 + $0xc20] sm:$0xff] }
 0x3ca   : > { %v1129_v31 = vadd.f32 %v1128_v30, %v1062_v28  ;;  %v1140_v35 = vmax.f32 %v1126_v25, 0.0  ;;  %v1696_v25 = vld [vmem:[#allocation11 + $0xb00] sm:$0xff]  ;;  %3588 = vmatpush3.bf16.msra.mxu0 %v3585_v57  ;;  %v1261_v28 = vld [vmem:[#allocation10 + $0x58] sm:$0xff]  ;;  %v1729_v30 = vld [vmem:[#allocation11 + $0xc08] sm:$0xff] }
 0x3cb   : > { %v1143_v33 = vmax.f32 %v1137_v29, 0.0  ;;  %v3623_v26 = vpack.c.bf16 %v1696_v25, %v1664_v24  ;;  %v3589_v29 = vpack.c.bf16 %v1261_v28, %v1260_v63  ;;  %v1442_v24 = vld [vmem:[#allocation11 + $0x310] sm:$0xff]  ;;  %v1476_v25 = vld [vmem:[#allocation11 + $0x420] sm:$0xff]  ;;  %v1475_v28 = vld [vmem:[#allocation11 + $0x418] sm:$0xff] }
 0x3cc   : > { %v1141_v36 = vmax.f32 %v1129_v31, 0.0  ;;  %v1761_v31 = vld [vmem:[#allocation11 + $0xd08] sm:$0xff]  ;;  %v1508_v63 = vld [vmem:[#allocation11 + $0x520] sm:$0xff]  ;;  %v1731_v56 = vld [vmem:[#allocation11 + $0xc18] sm:$0xff] }
 0x3cd   : > { %v3565_v37 = vpack.c.bf16 %v1143_v33, %v1142_v32  ;;  %v1728_v32 = vld [vmem:[#allocation11 + $0xc00] sm:$0xff]  ;;  %v3625_v33 = vpack.c.bf16 %v1761_v31, %v1729_v30  ;;  %3590 = vmatprep.subr.bf16.mxu0 %v3589_v29  ;;  %v1541_v30 = vld [vmem:[#allocation11 + $0x628] sm:$0xff] }
 0x3ce   : > { %v3561_v6 = vpack.c.bf16 %v1141_v36, %v1140_v35  ;;  %v1760_v35 = vld [vmem:[#allocation11 + $0xd00] sm:$0xff]  ;;  %3592 = vmatpush3.bf16.msra.mxu0 %v3589_v29  ;;  %v1507_v29 = vld [vmem:[#allocation11 + $0x518] sm:$0xff]  ;;  %v1573_v31 = vld [vmem:[#allocation11 + $0x728] sm:$0xff] }
 0x3cf   : > { %v1262_v36 = vld [vmem:[#allocation10 + $0x60] sm:$0xff] }
 0x3d0   : > { %3562 = vmatprep.subr.bf16.mxu1 %v3561_v6 }
 0x3d1   : > { %3564 = vmatpush3.bf16.msra.mxu1 %v3561_v6  ;;  %v3627_v6 = vpack.c.bf16 %v1760_v35, %v1728_v32  ;;  %v3641_v35 = vpack.c.bf16 %v1507_v29, %v1475_v28  ;;  %v1353_v28 = vld [vmem:[#allocation11 + $0x48] sm:$0xff] }
 0x3d2   : > { %3566 = vmatprep.subr.bf16.mxu1 %v3565_v37  ;;  %v1385_v29 = vld [vmem:[#allocation11 + $0x148] sm:$0xff] }
 0x3d5   : > { %3568 = vmatpush3.bf16.msra.mxu1 %v3565_v37  ;;  %v1263_v37 = vld [vmem:[#allocation10 + $0x68] sm:$0xff] }
 0x3d6   : > { %3602 = vmatprep.subr.bf16.mxu1 %v3601_v41  ;;  %v3593_v38 = vpack.c.bf16 %v1263_v37, %v1262_v36  ;;  %v1825_v41 = vld [vmem:[#allocation11 + $0xf08] sm:$0xff]  ;;  %v1474_v36 = vld [vmem:[#allocation11 + $0x410] sm:$0xff] }
 0x3d7   : > { %v3629_v43 = vpack.c.bf16 %v1825_v41, %v1793_v39  ;;  %v1506_v37 = vld [vmem:[#allocation11 + $0x510] sm:$0xff]  ;;  %v1572_v39 = vld [vmem:[#allocation11 + $0x720] sm:$0xff]  ;;  %v1539_v41 = vld [vmem:[#allocation11 + $0x618] sm:$0xff] }
 0x3d8   : > { %3428 = vmatmul.mubr.msk.f32.vlgmr.msra.gmra.mrb[20].mxu1 %vm1158_vm1, %v1145_v44  ;;  %v1824_v44 = vld [vmem:[#allocation11 + $0xf00] sm:$0xff]  ;;  %3594 = vmatprep.subr.bf16.mxu0 %v3593_v38 }
 0x3d9   : > { %3604 = vmatpush1.bf16.msra.mxu1 %v3603_v45  ;;  %1920 = vmatprep.mubr.f32.mxu1 %v4621_v48  ;;  %v1264_v45 = vld [vmem:[#allocation10 + $0x70] sm:$0xff]  ;;  %v3631_v47 = vpack.c.bf16 %v1824_v44, %v1792_v42  ;;  %v1571_v42 = vld [vmem:[#allocation11 + $0x718] sm:$0xff]  ;;  %v1637_v44 = vld [vmem:[#allocation11 + $0x928] sm:$0xff] }
 0x3da   : > { %3606 = vmatprep.subr.bf16.mxu1 %v3605_v51  ;;  %v3597_v13 = vpack.c.bf16 %v1265_v46, %v1264_v45  ;;  %v3665_v51 = vpack.c.bf16 %v1381_v50, %v1349_v49  ;;  %3596 = vmatpush3.bf16.msra.mxu0 %v3593_v38  ;;  %v3677_v38 = vpack.c.bf16 %v1573_v31, %v1541_v30  ;;  %v1570_v49 = vld [vmem:[#allocation11 + $0x710] sm:$0xff]  ;;  %v1604_v50 = vld [vmem:[#allocation11 + $0x820] sm:$0xff] }
 0x3db   : > { %v3643_v45 = vpack.c.bf16 %v1506_v37, %v1474_v36  ;;  %v1352_v36 = vld [vmem:[#allocation11 + $0x40] sm:$0xff]  ;;  %v3729_v37 = vpack.c.bf16 %v1385_v29, %v1353_v28 }
 0x3dc   : > { %3598 = vmatprep.subr.bf16.mxu0 %v3597_v13 }
 0x3dd   : > { %3608 = vmatpush1.bf16.msra.mxu1 %v3607_v54  ;;  %v3633_v54 = vpack.c.bf16 %v1379_v53, %v1347_v52  ;;  %v1636_v52 = vld [vmem:[#allocation11 + $0x920] sm:$0xff]  ;;  %v1603_v53 = vld [vmem:[#allocation11 + $0x818] sm:$0xff] }
 0x3de   : > { %3610 = vmatprep.subr.bf16.mxu1 %v3609_v62  ;;  %3600 = vmatpush3.bf16.msra.mxu0 %v3597_v13  ;;  %v1538_v13 = vld [vmem:[#allocation11 + $0x610] sm:$0xff] }
 0x3df   : > { %3634 = vmatprep.subr.bf16.mxu0 %v3633_v54  ;;  %v1635_v54 = vld [vmem:[#allocation11 + $0x918] sm:$0xff] }
 0x3e1   : > { %3612 = vmatpush1.bf16.msra.mxu1 %v3611_v2 }
 0x3e2   : > { %3614 = vmatprep.subr.bf16.mxu1 %v3613_v27  ;;  %v1413_v27 = vld [vmem:[#allocation11 + $0x228] sm:$0xff] }
 0x3e3   : > { %v3669_v16 = vpack.c.bf16 %v1445_v9, %v1413_v27 }
 0x3e5   : > { %3616 = vmatpush1.bf16.msra.mxu1 %v3615_v11  ;;  %v1346_v11 = vld [vmem:[#allocation11 + $0x10] sm:$0xff] }
 0x3e6   : > { %3618 = vmatprep.subr.bf16.mxu1 %v3617_v17  ;;  %v1411_v17 = vld [vmem:[#allocation11 + $0x218] sm:$0xff]  ;;  %v3635_v57 = vpack.c.bf16 %v1378_v12, %v1346_v11  ;;  %v1666_v11 = vld [vmem:[#allocation11 + $0xa10] sm:$0xff] }
 0x3e7   : > { %v3637_v23 = vpack.c.bf16 %v1443_v18, %v1411_v17  ;;  %v1698_v12 = vld [vmem:[#allocation11 + $0xb10] sm:$0xff]  ;;  %v1763_v17 = vld [vmem:[#allocation11 + $0xd18] sm:$0xff]  ;;  %v1797_v18 = vld [vmem:[#allocation11 + $0xe28] sm:$0xff] }
 0x3e9   : > { %3620 = vmatpush1.bf16.msra.mxu1 %v3619_v19  ;;  %v1477_v19 = vld [vmem:[#allocation11 + $0x428] sm:$0xff] }
 0x3ea   : > { %3622 = vmatprep.subr.bf16.mxu1 %v3621_v40  ;;  %v1410_v40 = vld [vmem:[#allocation11 + $0x210] sm:$0xff] }
 0x3eb   : > { %v3639_v32 = vpack.c.bf16 %v1442_v24, %v1410_v40  ;;  %v1796_v40 = vld [vmem:[#allocation11 + $0xe20] sm:$0xff] }
 0x3ed   : > { %3624 = vmatpush1.bf16.msra.mxu1 %v3623_v26  ;;  %v3673_v26 = vpack.c.bf16 %v1509_v21, %v1477_v19  ;;  %v1829_v19 = vld [vmem:[#allocation11 + $0xf28] sm:$0xff]  ;;  %v3655_v21 = vpack.c.bf16 %v1698_v12, %v1666_v11  ;;  %v1544_v11 = vld [vmem:[#allocation11 + $0x640] sm:$0xff] }
 0x3ee   : > { %3626 = vmatprep.subr.bf16.mxu1 %v3625_v33  ;;  %v3675_v33 = vpack.c.bf16 %v1508_v63, %v1476_v25  ;;  %v3693_v24 = vpack.c.bf16 %v1829_v19, %v1797_v18  ;;  %v1828_v25 = vld [vmem:[#allocation11 + $0xf20] sm:$0xff]  ;;  %v1827_v63 = vld [vmem:[#allocation11 + $0xf18] sm:$0xff] }
 0x3ef   : > { %v3695_v31 = vpack.c.bf16 %v1828_v25, %v1796_v40  ;;  %v1640_v40 = vld [vmem:[#allocation11 + $0x940] sm:$0xff]  ;;  %v1639_v25 = vld [vmem:[#allocation11 + $0x938] sm:$0xff] }
 0x3f1   : > { %3628 = vmatpush1.bf16.msra.mxu1 %v3627_v6  ;;  %v1540_v6 = vld [vmem:[#allocation11 + $0x620] sm:$0xff] }
 0x3f2   : > { %3630 = vmatprep.subr.bf16.mxu1 %v3629_v43  ;;  %v1605_v43 = vld [vmem:[#allocation11 + $0x828] sm:$0xff]  ;;  %v3679_v46 = vpack.c.bf16 %v1572_v39, %v1540_v6  ;;  %v1384_v6 = vld [vmem:[#allocation11 + $0x140] sm:$0xff]  ;;  %v1383_v39 = vld [vmem:[#allocation11 + $0x138] sm:$0xff] }
 0x3f5   : > { %3632 = vmatpush1.bf16.msra.mxu1 %v3631_v47  ;;  %v3645_v47 = vpack.c.bf16 %v1571_v42, %v1539_v41  ;;  %v1417_v41 = vld [vmem:[#allocation11 + $0x248] sm:$0xff] }
 0x3f6   : > { %3666 = vmatprep.subr.bf16.mxu1 %v3665_v51  ;;  %v3681_v51 = vpack.c.bf16 %v1637_v44, %v1605_v43  ;;  %v1449_v42 = vld [vmem:[#allocation11 + $0x348] sm:$0xff]  ;;  %v3731_v44 = vpack.c.bf16 %v1384_v6, %v1352_v36  ;;  %v1704_v36 = vld [vmem:[#allocation11 + $0xb40] sm:$0xff]  ;;  %v1703_v6 = vld [vmem:[#allocation11 + $0xb38] sm:$0xff] }
 0x4ab   : > { %v3429_v59 = vpop.f32.mrb[20].mxu1 }
 0x4ac   : > { %v1237_v61 = vadd.f32 %v3429_v59, %v1156_v58  ;;  %v1231_v20 = vpop.f32.mrb[21].mxu1  ;;  %v1669_v58 = vld [vmem:[#allocation11 + $0xa28] sm:$0xff] }
 0x4ad   : > { %v1232_v62 = vadd.f32 %v1231_v20, %v1151_v60  ;;  %v1701_v59 = vld [vmem:[#allocation11 + $0xb28] sm:$0xff]  ;;  %v3647_v60 = vpack.c.bf16 %v1570_v49, %v1538_v13  ;;  %v3649_v20 = vpack.c.bf16 %v1635_v54, %v1603_v53  ;;  %v1416_v13 = vld [vmem:[#allocation11 + $0x240] sm:$0xff]  ;;  %v3733_v49 = vpack.c.bf16 %v1449_v42, %v1417_v41 }
 0x4ae   : > { %v1243_v0 = vsub.f32 0.0, %v1237_v61  ;;  %v3683_v61 = vpack.c.bf16 %v1636_v52, %v1604_v50  ;;  %v1448_v50 = vld [vmem:[#allocation11 + $0x340] sm:$0xff]  ;;  %v1447_v52 = vld [vmem:[#allocation11 + $0x338] sm:$0xff]  ;;  %v1481_v53 = vld [vmem:[#allocation11 + $0x448] sm:$0xff] }
 0x4af   : > { %4251 = vtanh.f32 %v1232_v62  ;;  %v1602_v62 = vld [vmem:[#allocation11 + $0x810] sm:$0xff]  ;;  %v1513_v54 = vld [vmem:[#allocation11 + $0x548] sm:$0xff] }
 0x4b0   : > { %v1244_v1 = vmul.f32 1.442695, %v1243_v0  ;;  %v1634_v0 = vld [vmem:[#allocation11 + $0x910] sm:$0xff] }
 0x4b1   : > { %v3651_v27 = vpack.c.bf16 %v1634_v0, %v1602_v62  ;;  %v1480_v62 = vld [vmem:[#allocation11 + $0x440] sm:$0xff]  ;;  %v3737_v0 = vpack.c.bf16 %v1513_v54, %v1481_v53 }
 0x4b2   : > { %4253 = vpow2.f32 %v1244_v1  ;;  %v1668_v1 = vld [vmem:[#allocation11 + $0xa20] sm:$0xff] }
 0x4b9   : > { %v4252_v2 = vpop.eup %4251 }
 0x4ba   : > { %v1241_v3 = vmul.f32 1.442695, %v4252_v2  ;;  %v3685_v2 = vpack.c.bf16 %v1701_v59, %v1669_v58  ;;  %v3735_v59 = vpack.c.bf16 %v1448_v50, %v1416_v13  ;;  %v1768_v13 = vld [vmem:[#allocation11 + $0xd40] sm:$0xff]  ;;  %v1767_v50 = vld [vmem:[#allocation11 + $0xd38] sm:$0xff] }
 0x4bc   : > { %v4254_v4 = vpop.eup %4253  ;;  %4255 = vpow2.f32 %v1241_v3  ;;  %v1700_v3 = vld [vmem:[#allocation11 + $0xb20] sm:$0xff] }
 0x4bd   : > { %v1246_v5 = vadd.f32 1.0, %v4254_v4  ;;  %v1667_v4 = vld [vmem:[#allocation11 + $0xa18] sm:$0xff]  ;;  %v3687_v9 = vpack.c.bf16 %v1700_v3, %v1668_v1  ;;  %v1512_v1 = vld [vmem:[#allocation11 + $0x540] sm:$0xff] }
 0x4be   : > { %v1511_v3 = vld [vmem:[#allocation11 + $0x538] sm:$0xff] }
 0x4bf   : > { %4257 = vrcp.f32 %v1246_v5  ;;  %v1699_v5 = vld [vmem:[#allocation11 + $0xb18] sm:$0xff] }
 0x4c6   : > { %v4256_v15 = vpop.eup %4255 }
 0x4c9   : > { %v5114_v34 = vpop.eup %4257 }
 0x4ca   : > { %1921 = vmatmul.mubr.f32.vlgmr.msra.gmra.mrb[22].mxu1 %v5114_v34  ;;  %v1249_v55 = vmul.f32 %v5114_v34, %v4256_v15 }
 0x4cb   : > { %3668 = vmatpush1.bf16.msra.mxu1 %v3667_v10  ;;  %2062 = vmatprep.mubr.f32.mxu1 %v4621_v48  ;;  %v3653_v10 = vpack.c.bf16 %v1699_v5, %v1667_v4  ;;  %v1545_v4 = vld [vmem:[#allocation11 + $0x648] sm:$0xff] }
 0x4cc   : > { %3462 = vmatprep.mubr.f32.mxu0 %v1249_v55  ;;  %3670 = vmatprep.subr.bf16.mxu1 %v3669_v16  ;;  %v1764_v16 = vld [vmem:[#allocation11 + $0xd20] sm:$0xff]  ;;  %v1577_v5 = vld [vmem:[#allocation11 + $0x748] sm:$0xff] }
 0x4cd   : > { %3463 = vmatmul.mubr.f32.vlgmr.msra.gmra.mrb[32].mxu0 %v4256_v15  ;;  %v3689_v15 = vpack.c.bf16 %v1765_v8, %v1733_v7  ;;  %v3691_v55 = vpack.c.bf16 %v1764_v16, %v1732_v14  ;;  %v3739_v8 = vpack.c.bf16 %v1512_v1, %v1480_v62  ;;  %v3741_v12 = vpack.c.bf16 %v1577_v5, %v1545_v4  ;;  %v1576_v14 = vld [vmem:[#allocation11 + $0x740] sm:$0xff]  ;;  %v1575_v16 = vld [vmem:[#allocation11 + $0x738] sm:$0xff] }
 0x4ce   : > { %3636 = vmatpush1.bf16.msra.mxu0 %v3635_v57  ;;  %1991 = vmatprep.mubr.f32.mxu0 %v4621_v48  ;;  %v3657_v57 = vpack.c.bf16 %v1763_v17, %v1731_v56  ;;  %v1609_v56 = vld [vmem:[#allocation11 + $0x848] sm:$0xff]  ;;  %v3743_v19 = vpack.c.bf16 %v1576_v14, %v1544_v11  ;;  %v1832_v62 = vld [vmem:[#allocation11 + $0xf40] sm:$0xff]  ;;  %v1831_v1 = vld [vmem:[#allocation11 + $0xf38] sm:$0xff] }
 0x4cf   : > { %3672 = vmatpush1.bf16.msra.mxu1 %v3671_v22  ;;  %3638 = vmatprep.subr.bf16.mxu0 %v3637_v23  ;;  %v1730_v22 = vld [vmem:[#allocation11 + $0xc10] sm:$0xff]  ;;  %v1641_v17 = vld [vmem:[#allocation11 + $0x948] sm:$0xff]  ;;  %v1388_v11 = vld [vmem:[#allocation11 + $0x160] sm:$0xff] }
 0x4d0   : > { %3674 = vmatprep.subr.bf16.mxu1 %v3673_v26  ;;  %v1762_v23 = vld [vmem:[#allocation11 + $0xd10] sm:$0xff]  ;;  %v1795_v26 = vld [vmem:[#allocation11 + $0xe18] sm:$0xff] }
 0x4d1   : > { %v3659_v30 = vpack.c.bf16 %v1762_v23, %v1730_v22  ;;  %v1608_v22 = vld [vmem:[#allocation11 + $0x840] sm:$0xff]  ;;  %v3745_v23 = vpack.c.bf16 %v1641_v17, %v1609_v56  ;;  %v1387_v14 = vld [vmem:[#allocation11 + $0x158] sm:$0xff] }
 0x4d2   : > { %3640 = vmatpush1.bf16.msra.mxu0 %v3639_v32  ;;  %v3661_v32 = vpack.c.bf16 %v1827_v63, %v1795_v26  ;;  %v1673_v26 = vld [vmem:[#allocation11 + $0xa48] sm:$0xff]  ;;  %v3747_v29 = vpack.c.bf16 %v1640_v40, %v1608_v22  ;;  %v1452_v22 = vld [vmem:[#allocation11 + $0x360] sm:$0xff]  ;;  %v1451_v40 = vld [vmem:[#allocation11 + $0x358] sm:$0xff] }
 0x4d3   : > { %3676 = vmatpush1.bf16.msra.mxu1 %v3675_v33  ;;  %3642 = vmatprep.subr.bf16.mxu0 %v3641_v35  ;;  %v1794_v33 = vld [vmem:[#allocation11 + $0xe10] sm:$0xff]  ;;  %v1705_v63 = vld [vmem:[#allocation11 + $0xb48] sm:$0xff] }
 0x4d4   : > { %3678 = vmatprep.subr.bf16.mxu1 %v3677_v38  ;;  %v1826_v35 = vld [vmem:[#allocation11 + $0xf10] sm:$0xff]  ;;  %v1351_v38 = vld [vmem:[#allocation11 + $0x38] sm:$0xff] }
 0x4d5   : > { %v3663_v43 = vpack.c.bf16 %v1826_v35, %v1794_v33  ;;  %v1672_v33 = vld [vmem:[#allocation11 + $0xa40] sm:$0xff]  ;;  %v3749_v35 = vpack.c.bf16 %v1705_v63, %v1673_v26 }
 0x4d6   : > { %3644 = vmatpush1.bf16.msra.mxu0 %v3643_v45  ;;  %v3697_v45 = vpack.c.bf16 %v1383_v39, %v1351_v38  ;;  %v1737_v38 = vld [vmem:[#allocation11 + $0xc48] sm:$0xff]  ;;  %v3751_v42 = vpack.c.bf16 %v1704_v36, %v1672_v33  ;;  %v1516_v33 = vld [vmem:[#allocation11 + $0x560] sm:$0xff]  ;;  %v1515_v36 = vld [vmem:[#allocation11 + $0x558] sm:$0xff] }
 0x4d7   : > { %3680 = vmatpush1.bf16.msra.mxu1 %v3679_v46  ;;  %3646 = vmatprep.subr.bf16.mxu0 %v3645_v47  ;;  %v1350_v46 = vld [vmem:[#allocation11 + $0x30] sm:$0xff]  ;;  %v1769_v39 = vld [vmem:[#allocation11 + $0xd48] sm:$0xff] }
 0x4d8   : > { %3682 = vmatprep.subr.bf16.mxu1 %v3681_v51  ;;  %v1382_v47 = vld [vmem:[#allocation11 + $0x130] sm:$0xff]  ;;  %v1415_v51 = vld [vmem:[#allocation11 + $0x238] sm:$0xff] }
 0x4d9   : > { %v3699_v58 = vpack.c.bf16 %v1382_v47, %v1350_v46  ;;  %v1736_v46 = vld [vmem:[#allocation11 + $0xc40] sm:$0xff]  ;;  %v3753_v47 = vpack.c.bf16 %v1769_v39, %v1737_v38 }
 0x4da   : > { %3648 = vmatpush1.bf16.msra.mxu0 %v3647_v60  ;;  %v3701_v60 = vpack.c.bf16 %v1447_v52, %v1415_v51  ;;  %v1801_v51 = vld [vmem:[#allocation11 + $0xe48] sm:$0xff]  ;;  %v3755_v54 = vpack.c.bf16 %v1768_v13, %v1736_v46  ;;  %v1580_v46 = vld [vmem:[#allocation11 + $0x760] sm:$0xff]  ;;  %v1579_v13 = vld [vmem:[#allocation11 + $0x758] sm:$0xff] }
 0x4db   : > { %3684 = vmatpush1.bf16.msra.mxu1 %v3683_v61  ;;  %3650 = vmatprep.subr.bf16.mxu0 %v3649_v20  ;;  %v1414_v61 = vld [vmem:[#allocation11 + $0x230] sm:$0xff]  ;;  %v1833_v52 = vld [vmem:[#allocation11 + $0xf48] sm:$0xff] }
 0x4dc   : > { %3686 = vmatprep.subr.bf16.mxu1 %v3685_v2  ;;  %v1446_v20 = vld [vmem:[#allocation11 + $0x330] sm:$0xff]  ;;  %v1479_v2 = vld [vmem:[#allocation11 + $0x438] sm:$0xff] }
 0x4dd   : > { %v3703_v7 = vpack.c.bf16 %v1446_v20, %v1414_v61  ;;  %v1800_v61 = vld [vmem:[#allocation11 + $0xe40] sm:$0xff]  ;;  %v3757_v20 = vpack.c.bf16 %v1833_v52, %v1801_v51 }
 0x4de   : > { %3652 = vmatpush1.bf16.msra.mxu0 %v3651_v27  ;;  %v3705_v27 = vpack.c.bf16 %v1511_v3, %v1479_v2  ;;  %v1357_v2 = vld [vmem:[#allocation11 + $0x68] sm:$0xff]  ;;  %v3759_v5 = vpack.c.bf16 %v1832_v62, %v1800_v61  ;;  %v1644_v61 = vld [vmem:[#allocation11 + $0x960] sm:$0xff]  ;;  %v1643_v62 = vld [vmem:[#allocation11 + $0x958] sm:$0xff] }
 0x4df   : > { %3688 = vmatpush1.bf16.msra.mxu1 %v3687_v9  ;;  %3654 = vmatprep.subr.bf16.mxu0 %v3653_v10  ;;  %v1478_v9 = vld [vmem:[#allocation11 + $0x430] sm:$0xff]  ;;  %v1389_v3 = vld [vmem:[#allocation11 + $0x168] sm:$0xff] }
 0x4e0   : > { %3690 = vmatprep.subr.bf16.mxu1 %v3689_v15  ;;  %v1510_v10 = vld [vmem:[#allocation11 + $0x530] sm:$0xff]  ;;  %v1543_v15 = vld [vmem:[#allocation11 + $0x638] sm:$0xff] }
 0x4e1   : > { %v3707_v18 = vpack.c.bf16 %v1510_v10, %v1478_v9  ;;  %v1356_v9 = vld [vmem:[#allocation11 + $0x60] sm:$0xff]  ;;  %v3793_v10 = vpack.c.bf16 %v1389_v3, %v1357_v2 }
 0x4e2   : > { %3656 = vmatpush1.bf16.msra.mxu0 %v3655_v21  ;;  %v3709_v21 = vpack.c.bf16 %v1575_v16, %v1543_v15  ;;  %v1421_v15 = vld [vmem:[#allocation11 + $0x268] sm:$0xff]  ;;  %v3795_v17 = vpack.c.bf16 %v1388_v11, %v1356_v9  ;;  %v1708_v9 = vld [vmem:[#allocation11 + $0xb60] sm:$0xff]  ;;  %v1707_v11 = vld [vmem:[#allocation11 + $0xb58] sm:$0xff] }
 0x4e3   : > { %3692 = vmatpush1.bf16.msra.mxu1 %v3691_v55  ;;  %3658 = vmatprep.subr.bf16.mxu0 %v3657_v57  ;;  %v1542_v55 = vld [vmem:[#allocation11 + $0x630] sm:$0xff]  ;;  %v1453_v16 = vld [vmem:[#allocation11 + $0x368] sm:$0xff] }
 0x4e4   : > { %3694 = vmatprep.subr.bf16.mxu1 %v3693_v24  ;;  %v1574_v57 = vld [vmem:[#allocation11 + $0x730] sm:$0xff]  ;;  %v1607_v24 = vld [vmem:[#allocation11 + $0x838] sm:$0xff] }
 0x4e5   : > { %v3711_v28 = vpack.c.bf16 %v1574_v57, %v1542_v55  ;;  %v1420_v55 = vld [vmem:[#allocation11 + $0x260] sm:$0xff]  ;;  %v3797_v57 = vpack.c.bf16 %v1453_v16, %v1421_v15 }
 0x4e6   : > { %3660 = vmatpush1.bf16.msra.mxu0 %v3659_v30  ;;  %v3713_v30 = vpack.c.bf16 %v1639_v25, %v1607_v24  ;;  %v1485_v24 = vld [vmem:[#allocation11 + $0x468] sm:$0xff]  ;;  %v3799_v63 = vpack.c.bf16 %v1452_v22, %v1420_v55  ;;  %v1772_v55 = vld [vmem:[#allocation11 + $0xd60] sm:$0xff]  ;;  %v1771_v22 = vld [vmem:[#allocation11 + $0xd58] sm:$0xff] }
 0x4e7   : > { %3696 = vmatpush1.bf16.msra.mxu1 %v3695_v31  ;;  %3662 = vmatprep.subr.bf16.mxu0 %v3661_v32  ;;  %v1606_v31 = vld [vmem:[#allocation11 + $0x830] sm:$0xff]  ;;  %v1517_v25 = vld [vmem:[#allocation11 + $0x568] sm:$0xff] }
 0x4e8   : > { %3730 = vmatprep.subr.bf16.mxu1 %v3729_v37  ;;  %v1638_v32 = vld [vmem:[#allocation11 + $0x930] sm:$0xff]  ;;  %v1671_v37 = vld [vmem:[#allocation11 + $0xa38] sm:$0xff] }
 0x4e9   : > { %v3715_v41 = vpack.c.bf16 %v1638_v32, %v1606_v31  ;;  %v1484_v31 = vld [vmem:[#allocation11 + $0x460] sm:$0xff]  ;;  %v3801_v32 = vpack.c.bf16 %v1517_v25, %v1485_v24 }
 0x4ea   : > { %3664 = vmatpush1.bf16.msra.mxu0 %v3663_v43  ;;  %2063 = vmatmul.mubr.f32.vlgmr.msra.gmra.mrb[24].mxu1 %v5114_v34  ;;  %v3717_v43 = vpack.c.bf16 %v1703_v6, %v1671_v37  ;;  %v1549_v37 = vld [vmem:[#allocation11 + $0x668] sm:$0xff]  ;;  %v3803_v39 = vpack.c.bf16 %v1516_v33, %v1484_v31  ;;  %v1836_v31 = vld [vmem:[#allocation11 + $0xf60] sm:$0xff]  ;;  %v1835_v33 = vld [vmem:[#allocation11 + $0xf58] sm:$0xff] }
 0x4eb   : > { %3732 = vmatpush1.bf16.msra.mxu1 %v3731_v44  ;;  %3698 = vmatprep.subr.bf16.mxu0 %v3697_v45  ;;  %v1670_v44 = vld [vmem:[#allocation11 + $0xa30] sm:$0xff]  ;;  %v1581_v6 = vld [vmem:[#allocation11 + $0x768] sm:$0xff] }
 0x4ec   : > { %3734 = vmatprep.subr.bf16.mxu1 %v3733_v49  ;;  %2204 = vmatprep.mubr.f32.mxu1 %v4621_v48  ;;  %v1702_v45 = vld [vmem:[#allocation11 + $0xb30] sm:$0xff]  ;;  %v1735_v49 = vld [vmem:[#allocation11 + $0xc38] sm:$0xff] }
 0x4ed   : > { %1992 = vmatmul.mubr.f32.vlgmr.msra.gmra.mrb[34].mxu0 %v5114_v34  ;;  %v3719_v53 = vpack.c.bf16 %v1702_v45, %v1670_v44  ;;  %v1548_v44 = vld [vmem:[#allocation11 + $0x660] sm:$0xff]  ;;  %v3805_v45 = vpack.c.bf16 %v1581_v6, %v1549_v37 }
 0x4ee   : > { %3700 = vmatpush1.bf16.msra.mxu0 %v3699_v58  ;;  %2133 = vmatprep.mubr.f32.mxu0 %v4621_v48  ;;  %v3721_v58 = vpack.c.bf16 %v1767_v50, %v1735_v49  ;;  %v1613_v49 = vld [vmem:[#allocation11 + $0x868] sm:$0xff]  ;;  %v3807_v52 = vpack.c.bf16 %v1580_v46, %v1548_v44  ;;  %v1392_v44 = vld [vmem:[#allocation11 + $0x180] sm:$0xff]  ;;  %v1391_v46 = vld [vmem:[#allocation11 + $0x178] sm:$0xff] }
 0x4ef   : > { %3736 = vmatpush1.bf16.msra.mxu1 %v3735_v59  ;;  %3702 = vmatprep.subr.bf16.mxu0 %v3701_v60  ;;  %v1734_v59 = vld [vmem:[#allocation11 + $0xc30] sm:$0xff]  ;;  %v1645_v50 = vld [vmem:[#allocation11 + $0x968] sm:$0xff] }
 0x4f0   : > { %3738 = vmatprep.subr.bf16.mxu1 %v3737_v0  ;;  %v1766_v60 = vld [vmem:[#allocation11 + $0xd30] sm:$0xff]  ;;  %v1799_v0 = vld [vmem:[#allocation11 + $0xe38] sm:$0xff] }
 0x4f1   : > { %v3723_v4 = vpack.c.bf16 %v1766_v60, %v1734_v59  ;;  %v1612_v59 = vld [vmem:[#allocation11 + $0x860] sm:$0xff]  ;;  %v3809_v60 = vpack.c.bf16 %v1645_v50, %v1613_v49 }
 0x4f2   : > { %3704 = vmatpush1.bf16.msra.mxu0 %v3703_v7  ;;  %v3725_v7 = vpack.c.bf16 %v1831_v1, %v1799_v0  ;;  %v1677_v0 = vld [vmem:[#allocation11 + $0xa68] sm:$0xff]  ;;  %v3811_v3 = vpack.c.bf16 %v1644_v61, %v1612_v59  ;;  %v1456_v59 = vld [vmem:[#allocation11 + $0x380] sm:$0xff]  ;;  %v1455_v61 = vld [vmem:[#allocation11 + $0x378] sm:$0xff] }
 0x4f3   : > { %3740 = vmatpush1.bf16.msra.mxu1 %v3739_v8  ;;  %3706 = vmatprep.subr.bf16.mxu0 %v3705_v27  ;;  %v1798_v8 = vld [vmem:[#allocation11 + $0xe30] sm:$0xff]  ;;  %v1709_v1 = vld [vmem:[#allocation11 + $0xb68] sm:$0xff] }
 0x4f4   : > { %3742 = vmatprep.subr.bf16.mxu1 %v3741_v12  ;;  %v1830_v27 = vld [vmem:[#allocation11 + $0xf30] sm:$0xff]  ;;  %v1355_v12 = vld [vmem:[#allocation11 + $0x58] sm:$0xff] }
 0x4f5   : > { %v3727_v56 = vpack.c.bf16 %v1830_v27, %v1798_v8  ;;  %v1676_v8 = vld [vmem:[#allocation11 + $0xa60] sm:$0xff]  ;;  %v3813_v27 = vpack.c.bf16 %v1709_v1, %v1677_v0 }
 0x4f6   : > { %3708 = vmatpush1.bf16.msra.mxu0 %v3707_v18  ;;  %v3761_v18 = vpack.c.bf16 %v1387_v14, %v1355_v12  ;;  %v1741_v12 = vld [vmem:[#allocation11 + $0xc68] sm:$0xff]  ;;  %v3815_v16 = vpack.c.bf16 %v1708_v9, %v1676_v8  ;;  %v1520_v8 = vld [vmem:[#allocation11 + $0x580] sm:$0xff]  ;;  %v1519_v9 = vld [vmem:[#allocation11 + $0x578] sm:$0xff] }
 0x4f7   : > { %3744 = vmatpush1.bf16.msra.mxu1 %v3743_v19  ;;  %3710 = vmatprep.subr.bf16.mxu0 %v3709_v21  ;;  %v1354_v19 = vld [vmem:[#allocation11 + $0x50] sm:$0xff]  ;;  %v1773_v14 = vld [vmem:[#allocation11 + $0xd68] sm:$0xff] }
 0x4f8   : > { %3746 = vmatprep.subr.bf16.mxu1 %v3745_v23  ;;  %v1386_v21 = vld [vmem:[#allocation11 + $0x150] sm:$0xff]  ;;  %v1419_v23 = vld [vmem:[#allocation11 + $0x258] sm:$0xff] }
 0x4f9   : > { %v3763_v26 = vpack.c.bf16 %v1386_v21, %v1354_v19  ;;  %v1740_v19 = vld [vmem:[#allocation11 + $0xc60] sm:$0xff]  ;;  %v3817_v21 = vpack.c.bf16 %v1773_v14, %v1741_v12 }
 0x4fa   : > { %3712 = vmatpush1.bf16.msra.mxu0 %v3711_v28  ;;  %v3765_v28 = vpack.c.bf16 %v1451_v40, %v1419_v23  ;;  %v1805_v23 = vld [vmem:[#allocation11 + $0xe68] sm:$0xff]  ;;  %v3819_v25 = vpack.c.bf16 %v1772_v55, %v1740_v19  ;;  %v1584_v19 = vld [vmem:[#allocation11 + $0x780] sm:$0xff]  ;;  %v1583_v55 = vld [vmem:[#allocation11 + $0x778] sm:$0xff] }
 0x4fb   : > { %3748 = vmatpush1.bf16.msra.mxu1 %v3747_v29  ;;  %3714 = vmatprep.subr.bf16.mxu0 %v3713_v30  ;;  %v1418_v29 = vld [vmem:[#allocation11 + $0x250] sm:$0xff]  ;;  %v1837_v40 = vld [vmem:[#allocation11 + $0xf68] sm:$0xff] }
 0x4fc   : > { %3750 = vmatprep.subr.bf16.mxu1 %v3749_v35  ;;  %v1450_v30 = vld [vmem:[#allocation11 + $0x350] sm:$0xff]  ;;  %v1483_v35 = vld [vmem:[#allocation11 + $0x458] sm:$0xff] }
 0x4fd   : > { %v3767_v38 = vpack.c.bf16 %v1450_v30, %v1418_v29  ;;  %v1804_v29 = vld [vmem:[#allocation11 + $0xe60] sm:$0xff]  ;;  %v3821_v30 = vpack.c.bf16 %v1837_v40, %v1805_v23 }
 0x4fe   : > { %3716 = vmatpush1.bf16.msra.mxu0 %v3715_v41  ;;  %v3769_v41 = vpack.c.bf16 %v1515_v36, %v1483_v35  ;;  %v1361_v35 = vld [vmem:[#allocation11 + $0x88] sm:$0xff]  ;;  %v3823_v6 = vpack.c.bf16 %v1836_v31, %v1804_v29  ;;  %v1648_v29 = vld [vmem:[#allocation11 + $0x980] sm:$0xff]  ;;  %v1647_v31 = vld [vmem:[#allocation11 + $0x978] sm:$0xff] }
 0x4ff   : > { %3752 = vmatpush1.bf16.msra.mxu1 %v3751_v42  ;;  %3718 = vmatprep.subr.bf16.mxu0 %v3717_v43  ;;  %v1482_v42 = vld [vmem:[#allocation11 + $0x450] sm:$0xff]  ;;  %v1393_v36 = vld [vmem:[#allocation11 + $0x188] sm:$0xff] }
 0x500   : > { %3754 = vmatprep.subr.bf16.mxu1 %v3753_v47  ;;  %v1514_v43 = vld [vmem:[#allocation11 + $0x550] sm:$0xff]  ;;  %v1547_v47 = vld [vmem:[#allocation11 + $0x658] sm:$0xff] }
 0x501   : > { %v3771_v51 = vpack.c.bf16 %v1514_v43, %v1482_v42  ;;  %v1360_v42 = vld [vmem:[#allocation11 + $0x80] sm:$0xff]  ;;  %v3857_v43 = vpack.c.bf16 %v1393_v36, %v1361_v35 }
 0x502   : > { %3720 = vmatpush1.bf16.msra.mxu0 %v3719_v53  ;;  %v3773_v53 = vpack.c.bf16 %v1579_v13, %v1547_v47  ;;  %v1425_v47 = vld [vmem:[#allocation11 + $0x288] sm:$0xff]  ;;  %v3859_v50 = vpack.c.bf16 %v1392_v44, %v1360_v42  ;;  %v1712_v42 = vld [vmem:[#allocation11 + $0xb80] sm:$0xff]  ;;  %v1711_v44 = vld [vmem:[#allocation11 + $0xb78] sm:$0xff] }
 0x503   : > { %3756 = vmatpush1.bf16.msra.mxu1 %v3755_v54  ;;  %3722 = vmatprep.subr.bf16.mxu0 %v3721_v58  ;;  %v1546_v54 = vld [vmem:[#allocation11 + $0x650] sm:$0xff]  ;;  %v1457_v13 = vld [vmem:[#allocation11 + $0x388] sm:$0xff] }
 0x504   : > { %3758 = vmatprep.subr.bf16.mxu1 %v3757_v20  ;;  %v1578_v58 = vld [vmem:[#allocation11 + $0x750] sm:$0xff]  ;;  %v1611_v20 = vld [vmem:[#allocation11 + $0x858] sm:$0xff] }
 0x505   : > { %v3775_v2 = vpack.c.bf16 %v1578_v58, %v1546_v54  ;;  %v1424_v54 = vld [vmem:[#allocation11 + $0x280] sm:$0xff]  ;;  %v3861_v58 = vpack.c.bf16 %v1457_v13, %v1425_v47 }
 0x506   : > { %3724 = vmatpush1.bf16.msra.mxu0 %v3723_v4  ;;  %v3777_v4 = vpack.c.bf16 %v1643_v62, %v1611_v20  ;;  %v1489_v20 = vld [vmem:[#allocation11 + $0x488] sm:$0xff]  ;;  %v3863_v1 = vpack.c.bf16 %v1456_v59, %v1424_v54  ;;  %v1776_v54 = vld [vmem:[#allocation11 + $0xd80] sm:$0xff]  ;;  %v1775_v59 = vld [vmem:[#allocation11 + $0xd78] sm:$0xff] }
 0x507   : > { %3760 = vmatpush1.bf16.msra.mxu1 %v3759_v5  ;;  %3726 = vmatprep.subr.bf16.mxu0 %v3725_v7  ;;  %v1610_v5 = vld [vmem:[#allocation11 + $0x850] sm:$0xff]  ;;  %v1521_v62 = vld [vmem:[#allocation11 + $0x588] sm:$0xff] }
 0x508   : > { %3794 = vmatprep.subr.bf16.mxu1 %v3793_v10  ;;  %v1642_v7 = vld [vmem:[#allocation11 + $0x950] sm:$0xff]  ;;  %v1675_v10 = vld [vmem:[#allocation11 + $0xa58] sm:$0xff] }
 0x509   : > { %v3779_v15 = vpack.c.bf16 %v1642_v7, %v1610_v5  ;;  %v1488_v5 = vld [vmem:[#allocation11 + $0x480] sm:$0xff]  ;;  %v3865_v7 = vpack.c.bf16 %v1521_v62, %v1489_v20 }
 0x50a   : > { %3728 = vmatpush1.bf16.msra.mxu0 %v3727_v56  ;;  %2205 = vmatmul.mubr.f32.vlgmr.msra.gmra.mrb[26].mxu1 %v5114_v34  ;;  %v3781_v56 = vpack.c.bf16 %v1707_v11, %v1675_v10  ;;  %v1553_v10 = vld [vmem:[#allocation11 + $0x688] sm:$0xff]  ;;  %v3867_v14 = vpack.c.bf16 %v1520_v8, %v1488_v5  ;;  %v1840_v5 = vld [vmem:[#allocation11 + $0xf80] sm:$0xff]  ;;  %v1839_v8 = vld [vmem:[#allocation11 + $0xf78] sm:$0xff] }
 0x50b   : > { %3796 = vmatpush1.bf16.msra.mxu1 %v3795_v17  ;;  %3762 = vmatprep.subr.bf16.mxu0 %v3761_v18  ;;  %v1674_v17 = vld [vmem:[#allocation11 + $0xa50] sm:$0xff]  ;;  %v1585_v11 = vld [vmem:[#allocation11 + $0x788] sm:$0xff] }
 0x50c   : > { %3798 = vmatprep.subr.bf16.mxu1 %v3797_v57  ;;  %2346 = vmatprep.mubr.f32.mxu1 %v4621_v48  ;;  %v1706_v18 = vld [vmem:[#allocation11 + $0xb50] sm:$0xff]  ;;  %v1739_v57 = vld [vmem:[#allocation11 + $0xc58] sm:$0xff] }
 0x50d   : > { %2134 = vmatmul.mubr.f32.vlgmr.msra.gmra.mrb[36].mxu0 %v5114_v34  ;;  %v3783_v24 = vpack.c.bf16 %v1706_v18, %v1674_v17  ;;  %v1552_v17 = vld [vmem:[#allocation11 + $0x680] sm:$0xff]  ;;  %v3869_v18 = vpack.c.bf16 %v1585_v11, %v1553_v10 }
 0x50e   : > { %3764 = vmatpush1.bf16.msra.mxu0 %v3763_v26  ;;  %2275 = vmatprep.mubr.f32.mxu0 %v4621_v48  ;;  %v3785_v26 = vpack.c.bf16 %v1771_v22, %v1739_v57  ;;  %v1617_v57 = vld [vmem:[#allocation11 + $0x888] sm:$0xff]  ;;  %v3871_v40 = vpack.c.bf16 %v1584_v19, %v1552_v17  ;;  %v1396_v17 = vld [vmem:[#allocation11 + $0x1a0] sm:$0xff]  ;;  %v1395_v19 = vld [vmem:[#allocation11 + $0x198] sm:$0xff] }
 0x50f   : > { %3800 = vmatpush1.bf16.msra.mxu1 %v3799_v63  ;;  %3766 = vmatprep.subr.bf16.mxu0 %v3765_v28  ;;  %v1738_v63 = vld [vmem:[#allocation11 + $0xc50] sm:$0xff]  ;;  %v1649_v22 = vld [vmem:[#allocation11 + $0x988] sm:$0xff] }
 0x510   : > { %3802 = vmatprep.subr.bf16.mxu1 %v3801_v32  ;;  %v1770_v28 = vld [vmem:[#allocation11 + $0xd50] sm:$0xff]  ;;  %v1803_v32 = vld [vmem:[#allocation11 + $0xe58] sm:$0xff] }
 0x511   : > { %v3787_v37 = vpack.c.bf16 %v1770_v28, %v1738_v63  ;;  %v1616_v63 = vld [vmem:[#allocation11 + $0x880] sm:$0xff]  ;;  %v3873_v28 = vpack.c.bf16 %v1649_v22, %v1617_v57 }
 0x512   : > { %3768 = vmatpush1.bf16.msra.mxu0 %v3767_v38  ;;  %v3789_v38 = vpack.c.bf16 %v1835_v33, %v1803_v32  ;;  %v1681_v32 = vld [vmem:[#allocation11 + $0xa88] sm:$0xff]  ;;  %v3875_v36 = vpack.c.bf16 %v1648_v29, %v1616_v63  ;;  %v1460_v63 = vld [vmem:[#allocation11 + $0x3a0] sm:$0xff]  ;;  %v1459_v29 = vld [vmem:[#allocation11 + $0x398] sm:$0xff] }
 0x513   : > { %3804 = vmatpush1.bf16.msra.mxu1 %v3803_v39  ;;  %3770 = vmatprep.subr.bf16.mxu0 %v3769_v41  ;;  %v1802_v39 = vld [vmem:[#allocation11 + $0xe50] sm:$0xff]  ;;  %v1713_v33 = vld [vmem:[#allocation11 + $0xb88] sm:$0xff] }
 0x514   : > { %3806 = vmatprep.subr.bf16.mxu1 %v3805_v45  ;;  %v1834_v41 = vld [vmem:[#allocation11 + $0xf50] sm:$0xff]  ;;  %v1359_v45 = vld [vmem:[#allocation11 + $0x78] sm:$0xff] }
 0x515   : > { %v3791_v49 = vpack.c.bf16 %v1834_v41, %v1802_v39  ;;  %v1680_v39 = vld [vmem:[#allocation11 + $0xa80] sm:$0xff]  ;;  %v3877_v41 = vpack.c.bf16 %v1713_v33, %v1681_v32 }
 0x516   : > { %3772 = vmatpush1.bf16.msra.mxu0 %v3771_v51  ;;  %v3825_v51 = vpack.c.bf16 %v1391_v46, %v1359_v45  ;;  %v1745_v45 = vld [vmem:[#allocation11 + $0xc88] sm:$0xff]  ;;  %v3879_v13 = vpack.c.bf16 %v1712_v42, %v1680_v39  ;;  %v1524_v39 = vld [vmem:[#allocation11 + $0x5a0] sm:$0xff]  ;;  %v1523_v42 = vld [vmem:[#allocation11 + $0x598] sm:$0xff] }
 0x517   : > { %3808 = vmatpush1.bf16.msra.mxu1 %v3807_v52  ;;  %3774 = vmatprep.subr.bf16.mxu0 %v3773_v53  ;;  %v1358_v52 = vld [vmem:[#allocation11 + $0x70] sm:$0xff]  ;;  %v1777_v46 = vld [vmem:[#allocation11 + $0xd88] sm:$0xff] }
 0x518   : > { %3810 = vmatprep.subr.bf16.mxu1 %v3809_v60  ;;  %v1390_v53 = vld [vmem:[#allocation11 + $0x170] sm:$0xff]  ;;  %v1423_v60 = vld [vmem:[#allocation11 + $0x278] sm:$0xff] }
 0x519   : > { %v3827_v0 = vpack.c.bf16 %v1390_v53, %v1358_v52  ;;  %v1744_v52 = vld [vmem:[#allocation11 + $0xc80] sm:$0xff]  ;;  %v3881_v53 = vpack.c.bf16 %v1777_v46, %v1745_v45 }
 0x51a   : > { %3776 = vmatpush1.bf16.msra.mxu0 %v3775_v2  ;;  %v3829_v2 = vpack.c.bf16 %v1455_v61, %v1423_v60  ;;  %v1809_v60 = vld [vmem:[#allocation11 + $0xe88] sm:$0xff]  ;;  %v3883_v62 = vpack.c.bf16 %v1776_v54, %v1744_v52  ;;  %v1588_v52 = vld [vmem:[#allocation11 + $0x7a0] sm:$0xff]  ;;  %v1587_v54 = vld [vmem:[#allocation11 + $0x798] sm:$0xff] }
 0x51b   : > { %3812 = vmatpush1.bf16.msra.mxu1 %v3811_v3  ;;  %3778 = vmatprep.subr.bf16.mxu0 %v3777_v4  ;;  %v1422_v3 = vld [vmem:[#allocation11 + $0x270] sm:$0xff]  ;;  %v1841_v61 = vld [vmem:[#allocation11 + $0xf88] sm:$0xff] }
 0x51c   : > { %3814 = vmatprep.subr.bf16.mxu1 %v3813_v27  ;;  %v1454_v4 = vld [vmem:[#allocation11 + $0x370] sm:$0xff]  ;;  %v1487_v27 = vld [vmem:[#allocation11 + $0x478] sm:$0xff] }
 0x51d   : > { %v3831_v12 = vpack.c.bf16 %v1454_v4, %v1422_v3  ;;  %v1808_v3 = vld [vmem:[#allocation11 + $0xe80] sm:$0xff]  ;;  %v3885_v4 = vpack.c.bf16 %v1841_v61, %v1809_v60 }
 0x51e   : > { %3780 = vmatpush1.bf16.msra.mxu0 %v3779_v15  ;;  %v3833_v15 = vpack.c.bf16 %v1519_v9, %v1487_v27  ;;  %v1365_v27 = vld [vmem:[#allocation11 + $0xa8] sm:$0xff]  ;;  %v3887_v11 = vpack.c.bf16 %v1840_v5, %v1808_v3  ;;  %v1652_v3 = vld [vmem:[#allocation11 + $0x9a0] sm:$0xff]  ;;  %v1651_v5 = vld [vmem:[#allocation11 + $0x998] sm:$0xff] }
 0x51f   : > { %3816 = vmatpush1.bf16.msra.mxu1 %v3815_v16  ;;  %3782 = vmatprep.subr.bf16.mxu0 %v3781_v56  ;;  %v1486_v16 = vld [vmem:[#allocation11 + $0x470] sm:$0xff]  ;;  %v1397_v9 = vld [vmem:[#allocation11 + $0x1a8] sm:$0xff] }
 0x520   : > { %3818 = vmatprep.subr.bf16.mxu1 %v3817_v21  ;;  %v1518_v56 = vld [vmem:[#allocation11 + $0x570] sm:$0xff]  ;;  %v1551_v21 = vld [vmem:[#allocation11 + $0x678] sm:$0xff] }
 0x521   : > { %v3835_v23 = vpack.c.bf16 %v1518_v56, %v1486_v16  ;;  %v1364_v16 = vld [vmem:[#allocation11 + $0xa0] sm:$0xff]  ;;  %v3921_v56 = vpack.c.bf16 %v1397_v9, %v1365_v27 }
 0x522   : > { %3784 = vmatpush1.bf16.msra.mxu0 %v3783_v24  ;;  %v3837_v24 = vpack.c.bf16 %v1583_v55, %v1551_v21  ;;  %v1429_v21 = vld [vmem:[#allocation11 + $0x2a8] sm:$0xff]  ;;  %v3923_v22 = vpack.c.bf16 %v1396_v17, %v1364_v16  ;;  %v1716_v16 = vld [vmem:[#allocation11 + $0xba0] sm:$0xff]  ;;  %v1715_v17 = vld [vmem:[#allocation11 + $0xb98] sm:$0xff] }
 0x523   : > { %3820 = vmatpush1.bf16.msra.mxu1 %v3819_v25  ;;  %3786 = vmatprep.subr.bf16.mxu0 %v3785_v26  ;;  %v1550_v25 = vld [vmem:[#allocation11 + $0x670] sm:$0xff]  ;;  %v1461_v55 = vld [vmem:[#allocation11 + $0x3a8] sm:$0xff] }
 0x524   : > { %3822 = vmatprep.subr.bf16.mxu1 %v3821_v30  ;;  %v1582_v26 = vld [vmem:[#allocation11 + $0x770] sm:$0xff]  ;;  %v1615_v30 = vld [vmem:[#allocation11 + $0x878] sm:$0xff] }
 0x525   : > { %v3839_v35 = vpack.c.bf16 %v1582_v26, %v1550_v25  ;;  %v1428_v25 = vld [vmem:[#allocation11 + $0x2a0] sm:$0xff]  ;;  %v3925_v26 = vpack.c.bf16 %v1461_v55, %v1429_v21 }
 0x526   : > { %3788 = vmatpush1.bf16.msra.mxu0 %v3787_v37  ;;  %v3841_v37 = vpack.c.bf16 %v1647_v31, %v1615_v30  ;;  %v1493_v30 = vld [vmem:[#allocation11 + $0x4a8] sm:$0xff]  ;;  %v3927_v33 = vpack.c.bf16 %v1460_v63, %v1428_v25  ;;  %v1780_v25 = vld [vmem:[#allocation11 + $0xda0] sm:$0xff]  ;;  %v1779_v63 = vld [vmem:[#allocation11 + $0xd98] sm:$0xff] }
 0x527   : > { %3824 = vmatpush1.bf16.msra.mxu1 %v3823_v6  ;;  %3790 = vmatprep.subr.bf16.mxu0 %v3789_v38  ;;  %v1614_v6 = vld [vmem:[#allocation11 + $0x870] sm:$0xff]  ;;  %v1525_v31 = vld [vmem:[#allocation11 + $0x5a8] sm:$0xff] }
 0x528   : > { %3858 = vmatprep.subr.bf16.mxu1 %v3857_v43  ;;  %v1646_v38 = vld [vmem:[#allocation11 + $0x970] sm:$0xff]  ;;  %v1679_v43 = vld [vmem:[#allocation11 + $0xa78] sm:$0xff] }
 0x529   : > { %v3843_v47 = vpack.c.bf16 %v1646_v38, %v1614_v6  ;;  %v1492_v6 = vld [vmem:[#allocation11 + $0x4a0] sm:$0xff]  ;;  %v3929_v38 = vpack.c.bf16 %v1525_v31, %v1493_v30 }
 0x52a   : > { %3792 = vmatpush1.bf16.msra.mxu0 %v3791_v49  ;;  %2347 = vmatmul.mubr.f32.vlgmr.msra.gmra.mrb[28].mxu1 %v5114_v34  ;;  %v3845_v49 = vpack.c.bf16 %v1711_v44, %v1679_v43  ;;  %v1557_v43 = vld [vmem:[#allocation11 + $0x6a8] sm:$0xff]  ;;  %v3931_v46 = vpack.c.bf16 %v1524_v39, %v1492_v6  ;;  %v1844_v6 = vld [vmem:[#allocation11 + $0xfa0] sm:$0xff]  ;;  %v1843_v39 = vld [vmem:[#allocation11 + $0xf98] sm:$0xff] }
 0x52b   : > { %3860 = vmatpush1.bf16.msra.mxu1 %v3859_v50  ;;  %3826 = vmatprep.subr.bf16.mxu0 %v3825_v51  ;;  %v1678_v50 = vld [vmem:[#allocation11 + $0xa70] sm:$0xff]  ;;  %v1589_v44 = vld [vmem:[#allocation11 + $0x7a8] sm:$0xff] }
 0x52c   : > { %3862 = vmatprep.subr.bf16.mxu1 %v3861_v58  ;;  %2488 = vmatprep.mubr.f32.mxu1 %v4621_v48  ;;  %v1710_v51 = vld [vmem:[#allocation11 + $0xb70] sm:$0xff]  ;;  %v1743_v58 = vld [vmem:[#allocation11 + $0xc78] sm:$0xff] }
 0x52d   : > { %2276 = vmatmul.mubr.f32.vlgmr.msra.gmra.mrb[38].mxu0 %v5114_v34  ;;  %v3847_v20 = vpack.c.bf16 %v1710_v51, %v1678_v50  ;;  %v1556_v50 = vld [vmem:[#allocation11 + $0x6a0] sm:$0xff]  ;;  %v3933_v51 = vpack.c.bf16 %v1589_v44, %v1557_v43 }
 0x52e   : > { %3828 = vmatpush1.bf16.msra.mxu0 %v3827_v0  ;;  %2417 = vmatprep.mubr.f32.mxu0 %v4621_v48  ;;  %v3849_v0 = vpack.c.bf16 %v1775_v59, %v1743_v58  ;;  %v1621_v58 = vld [vmem:[#allocation11 + $0x8a8] sm:$0xff]  ;;  %v3935_v61 = vpack.c.bf16 %v1588_v52, %v1556_v50  ;;  %v1400_v50 = vld [vmem:[#allocation11 + $0x1c0] sm:$0xff]  ;;  %v1399_v52 = vld [vmem:[#allocation11 + $0x1b8] sm:$0xff] }
 0x52f   : > { %3864 = vmatpush1.bf16.msra.mxu1 %v3863_v1  ;;  %3830 = vmatprep.subr.bf16.mxu0 %v3829_v2  ;;  %v1742_v1 = vld [vmem:[#allocation11 + $0xc70] sm:$0xff]  ;;  %v1653_v59 = vld [vmem:[#allocation11 + $0x9a8] sm:$0xff] }
 0x530   : > { %3866 = vmatprep.subr.bf16.mxu1 %v3865_v7  ;;  %v1774_v2 = vld [vmem:[#allocation11 + $0xd70] sm:$0xff]  ;;  %v1807_v7 = vld [vmem:[#allocation11 + $0xe78] sm:$0xff] }
 0x531   : > { %v3851_v10 = vpack.c.bf16 %v1774_v2, %v1742_v1  ;;  %v1620_v1 = vld [vmem:[#allocation11 + $0x8a0] sm:$0xff]  ;;  %v3937_v2 = vpack.c.bf16 %v1653_v59, %v1621_v58 }
 0x532   : > { %3832 = vmatpush1.bf16.msra.mxu0 %v3831_v12  ;;  %v3853_v12 = vpack.c.bf16 %v1839_v8, %v1807_v7  ;;  %v1685_v7 = vld [vmem:[#allocation11 + $0xaa8] sm:$0xff]  ;;  %v3939_v9 = vpack.c.bf16 %v1652_v3, %v1620_v1  ;;  %v1464_v1 = vld [vmem:[#allocation11 + $0x3c0] sm:$0xff]  ;;  %v1463_v3 = vld [vmem:[#allocation11 + $0x3b8] sm:$0xff] }
 0x533   : > { %3868 = vmatpush1.bf16.msra.mxu1 %v3867_v14  ;;  %3834 = vmatprep.subr.bf16.mxu0 %v3833_v15  ;;  %v1806_v14 = vld [vmem:[#allocation11 + $0xe70] sm:$0xff]  ;;  %v1717_v8 = vld [vmem:[#allocation11 + $0xba8] sm:$0xff] }
 0x534   : > { %3870 = vmatprep.subr.bf16.mxu1 %v3869_v18  ;;  %v1838_v15 = vld [vmem:[#allocation11 + $0xf70] sm:$0xff]  ;;  %v1363_v18 = vld [vmem:[#allocation11 + $0x98] sm:$0xff] }
 0x535   : > { %v3855_v57 = vpack.c.bf16 %v1838_v15, %v1806_v14  ;;  %v1684_v14 = vld [vmem:[#allocation11 + $0xaa0] sm:$0xff]  ;;  %v3941_v15 = vpack.c.bf16 %v1717_v8, %v1685_v7 }
 0x536   : > { %3836 = vmatpush1.bf16.msra.mxu0 %v3835_v23  ;;  %v3889_v23 = vpack.c.bf16 %v1395_v19, %v1363_v18  ;;  %v1749_v18 = vld [vmem:[#allocation11 + $0xca8] sm:$0xff]  ;;  %v3943_v55 = vpack.c.bf16 %v1716_v16, %v1684_v14  ;;  %v1528_v14 = vld [vmem:[#allocation11 + $0x5c0] sm:$0xff]  ;;  %v1527_v16 = vld [vmem:[#allocation11 + $0x5b8] sm:$0xff] }
 0x537   : > { %3872 = vmatpush1.bf16.msra.mxu1 %v3871_v40  ;;  %3838 = vmatprep.subr.bf16.mxu0 %v3837_v24  ;;  %v1362_v40 = vld [vmem:[#allocation11 + $0x90] sm:$0xff]  ;;  %v1781_v19 = vld [vmem:[#allocation11 + $0xda8] sm:$0xff] }
 0x538   : > { %3874 = vmatprep.subr.bf16.mxu1 %v3873_v28  ;;  %v1394_v24 = vld [vmem:[#allocation11 + $0x190] sm:$0xff]  ;;  %v1427_v28 = vld [vmem:[#allocation11 + $0x298] sm:$0xff] }
 0x539   : > { %v3891_v32 = vpack.c.bf16 %v1394_v24, %v1362_v40  ;;  %v1748_v40 = vld [vmem:[#allocation11 + $0xca0] sm:$0xff]  ;;  %v3945_v24 = vpack.c.bf16 %v1781_v19, %v1749_v18 }
 0x53a   : > { %3840 = vmatpush1.bf16.msra.mxu0 %v3839_v35  ;;  %v3893_v35 = vpack.c.bf16 %v1459_v29, %v1427_v28  ;;  %v1813_v28 = vld [vmem:[#allocation11 + $0xea8] sm:$0xff]  ;;  %v3947_v31 = vpack.c.bf16 %v1780_v25, %v1748_v40  ;;  %v1592_v40 = vld [vmem:[#allocation11 + $0x7c0] sm:$0xff]  ;;  %v1591_v25 = vld [vmem:[#allocation11 + $0x7b8] sm:$0xff] }
 0x53b   : > { %3876 = vmatpush1.bf16.msra.mxu1 %v3875_v36  ;;  %3842 = vmatprep.subr.bf16.mxu0 %v3841_v37  ;;  %v1426_v36 = vld [vmem:[#allocation11 + $0x290] sm:$0xff]  ;;  %v1845_v29 = vld [vmem:[#allocation11 + $0xfa8] sm:$0xff] }
 0x53c   : > { %3878 = vmatprep.subr.bf16.mxu1 %v3877_v41  ;;  %v1458_v37 = vld [vmem:[#allocation11 + $0x390] sm:$0xff]  ;;  %v1491_v41 = vld [vmem:[#allocation11 + $0x498] sm:$0xff] }
 0x53d   : > { %v3895_v45 = vpack.c.bf16 %v1458_v37, %v1426_v36  ;;  %v1812_v36 = vld [vmem:[#allocation11 + $0xea0] sm:$0xff]  ;;  %v3949_v37 = vpack.c.bf16 %v1845_v29, %v1813_v28 }
 0x53e   : > { %3844 = vmatpush1.bf16.msra.mxu0 %v3843_v47  ;;  %v3897_v47 = vpack.c.bf16 %v1523_v42, %v1491_v41  ;;  %v1369_v41 = vld [vmem:[#allocation11 + $0xc8] sm:$0xff]  ;;  %v3951_v44 = vpack.c.bf16 %v1844_v6, %v1812_v36  ;;  %v1656_v36 = vld [vmem:[#allocation11 + $0x9c0] sm:$0xff]  ;;  %v1655_v6 = vld [vmem:[#allocation11 + $0x9b8] sm:$0xff] }
 0x53f   : > { %3880 = vmatpush1.bf16.msra.mxu1 %v3879_v13  ;;  %3846 = vmatprep.subr.bf16.mxu0 %v3845_v49  ;;  %v1490_v13 = vld [vmem:[#allocation11 + $0x490] sm:$0xff]  ;;  %v1401_v42 = vld [vmem:[#allocation11 + $0x1c8] sm:$0xff] }
 0x540   : > { %3882 = vmatprep.subr.bf16.mxu1 %v3881_v53  ;;  %v1522_v49 = vld [vmem:[#allocation11 + $0x590] sm:$0xff]  ;;  %v1555_v53 = vld [vmem:[#allocation11 + $0x698] sm:$0xff] }
 0x541   : > { %v3899_v60 = vpack.c.bf16 %v1522_v49, %v1490_v13  ;;  %v1368_v13 = vld [vmem:[#allocation11 + $0xc0] sm:$0xff]  ;;  %v3985_v49 = vpack.c.bf16 %v1401_v42, %v1369_v41 }
 0x542   : > { %3848 = vmatpush1.bf16.msra.mxu0 %v3847_v20  ;;  %v3901_v20 = vpack.c.bf16 %v1587_v54, %v1555_v53  ;;  %v1433_v53 = vld [vmem:[#allocation11 + $0x2c8] sm:$0xff]  ;;  %v3987_v59 = vpack.c.bf16 %v1400_v50, %v1368_v13  ;;  %v1720_v13 = vld [vmem:[#allocation11 + $0xbc0] sm:$0xff]  ;;  %v1719_v50 = vld [vmem:[#allocation11 + $0xbb8] sm:$0xff] }
 0x543   : > { %3884 = vmatpush1.bf16.msra.mxu1 %v3883_v62  ;;  %3850 = vmatprep.subr.bf16.mxu0 %v3849_v0  ;;  %v1554_v62 = vld [vmem:[#allocation11 + $0x690] sm:$0xff]  ;;  %v1465_v54 = vld [vmem:[#allocation11 + $0x3c8] sm:$0xff] }
 0x544   : > { %3886 = vmatprep.subr.bf16.mxu1 %v3885_v4  ;;  %v1586_v0 = vld [vmem:[#allocation11 + $0x790] sm:$0xff]  ;;  %v1619_v4 = vld [vmem:[#allocation11 + $0x898] sm:$0xff] }
 0x545   : > { %v3903_v27 = vpack.c.bf16 %v1586_v0, %v1554_v62  ;;  %v1432_v62 = vld [vmem:[#allocation11 + $0x2c0] sm:$0xff]  ;;  %v3989_v0 = vpack.c.bf16 %v1465_v54, %v1433_v53 }
 0x546   : > { %3852 = vmatpush1.bf16.msra.mxu0 %v3851_v10  ;;  %v3905_v10 = vpack.c.bf16 %v1651_v5, %v1619_v4  ;;  %v1497_v4 = vld [vmem:[#allocation11 + $0x4c8] sm:$0xff]  ;;  %v3991_v8 = vpack.c.bf16 %v1464_v1, %v1432_v62  ;;  %v1784_v62 = vld [vmem:[#allocation11 + $0xdc0] sm:$0xff]  ;;  %v1783_v1 = vld [vmem:[#allocation11 + $0xdb8] sm:$0xff] }
 0x547   : > { %3888 = vmatpush1.bf16.msra.mxu1 %v3887_v11  ;;  %3854 = vmatprep.subr.bf16.mxu0 %v3853_v12  ;;  %v1618_v11 = vld [vmem:[#allocation11 + $0x890] sm:$0xff]  ;;  %v1529_v5 = vld [vmem:[#allocation11 + $0x5c8] sm:$0xff] }
 0x548   : > { %3922 = vmatprep.subr.bf16.mxu1 %v3921_v56  ;;  %v1650_v12 = vld [vmem:[#allocation11 + $0x990] sm:$0xff]  ;;  %v1683_v56 = vld [vmem:[#allocation11 + $0xa98] sm:$0xff] }
 0x549   : > { %v3907_v21 = vpack.c.bf16 %v1650_v12, %v1618_v11  ;;  %v1496_v11 = vld [vmem:[#allocation11 + $0x4c0] sm:$0xff]  ;;  %v3993_v12 = vpack.c.bf16 %v1529_v5, %v1497_v4 }
 0x54a   : > { %3856 = vmatpush1.bf16.msra.mxu0 %v3855_v57  ;;  %2489 = vmatmul.mubr.f32.vlgmr.msra.gmra.mrb[30].mxu1 %v5114_v34  ;;  %v3909_v57 = vpack.c.bf16 %v1715_v17, %v1683_v56  ;;  %v1561_v56 = vld [vmem:[#allocation11 + $0x6c8] sm:$0xff]  ;;  %v3995_v19 = vpack.c.bf16 %v1528_v14, %v1496_v11  ;;  %v1848_v11 = vld [vmem:[#allocation11 + $0xfc0] sm:$0xff]  ;;  %v1847_v14 = vld [vmem:[#allocation11 + $0xfb8] sm:$0xff] }
 0x54b   : > { %3924 = vmatpush1.bf16.msra.mxu1 %v3923_v22  ;;  %3890 = vmatprep.subr.bf16.mxu0 %v3889_v23  ;;  %v1682_v22 = vld [vmem:[#allocation11 + $0xa90] sm:$0xff]  ;;  %v1593_v17 = vld [vmem:[#allocation11 + $0x7c8] sm:$0xff] }
 0x54c   : > { %3926 = vmatprep.subr.bf16.mxu1 %v3925_v26  ;;  %2630 = vmatprep.mubr.f32.mxu1 %v4621_v48  ;;  %v1714_v23 = vld [vmem:[#allocation11 + $0xb90] sm:$0xff]  ;;  %v1747_v26 = vld [vmem:[#allocation11 + $0xc98] sm:$0xff] }
 0x54d   : > { %2418 = vmatmul.mubr.f32.vlgmr.msra.gmra.mrb[40].mxu0 %v5114_v34  ;;  %v3911_v30 = vpack.c.bf16 %v1714_v23, %v1682_v22  ;;  %v1560_v22 = vld [vmem:[#allocation11 + $0x6c0] sm:$0xff]  ;;  %v3997_v23 = vpack.c.bf16 %v1593_v17, %v1561_v56 }
 0x54e   : > { %3892 = vmatpush1.bf16.msra.mxu0 %v3891_v32  ;;  %2559 = vmatprep.mubr.f32.mxu0 %v4621_v48  ;;  %v3913_v32 = vpack.c.bf16 %v1779_v63, %v1747_v26  ;;  %v1625_v26 = vld [vmem:[#allocation11 + $0x8c8] sm:$0xff]  ;;  %v3999_v29 = vpack.c.bf16 %v1592_v40, %v1560_v22  ;;  %v1404_v22 = vld [vmem:[#allocation11 + $0x1e0] sm:$0xff]  ;;  %v1403_v40 = vld [vmem:[#allocation11 + $0x1d8] sm:$0xff] }
 0x54f   : > { %3928 = vmatpush1.bf16.msra.mxu1 %v3927_v33  ;;  %3894 = vmatprep.subr.bf16.mxu0 %v3893_v35  ;;  %v1746_v33 = vld [vmem:[#allocation11 + $0xc90] sm:$0xff]  ;;  %v1657_v63 = vld [vmem:[#allocation11 + $0x9c8] sm:$0xff] }
 0x550   : > { %3930 = vmatprep.subr.bf16.mxu1 %v3929_v38  ;;  %v1778_v35 = vld [vmem:[#allocation11 + $0xd90] sm:$0xff]  ;;  %v1811_v38 = vld [vmem:[#allocation11 + $0xe98] sm:$0xff] }
 0x551   : > { %v3915_v43 = vpack.c.bf16 %v1778_v35, %v1746_v33  ;;  %v1624_v33 = vld [vmem:[#allocation11 + $0x8c0] sm:$0xff]  ;;  %v4001_v35 = vpack.c.bf16 %v1657_v63, %v1625_v26 }
 0x552   : > { %3896 = vmatpush1.bf16.msra.mxu0 %v3895_v45  ;;  %v3917_v45 = vpack.c.bf16 %v1843_v39, %v1811_v38  ;;  %v1689_v38 = vld [vmem:[#allocation11 + $0xac8] sm:$0xff]  ;;  %v4003_v42 = vpack.c.bf16 %v1656_v36, %v1624_v33  ;;  %v1468_v33 = vld [vmem:[#allocation11 + $0x3e0] sm:$0xff]  ;;  %v1467_v36 = vld [vmem:[#allocation11 + $0x3d8] sm:$0xff] }
 0x553   : > { %3932 = vmatpush1.bf16.msra.mxu1 %v3931_v46  ;;  %3898 = vmatprep.subr.bf16.mxu0 %v3897_v47  ;;  %v1810_v46 = vld [vmem:[#allocation11 + $0xe90] sm:$0xff]  ;;  %v1721_v39 = vld [vmem:[#allocation11 + $0xbc8] sm:$0xff] }
 0x554   : > { %3934 = vmatprep.subr.bf16.mxu1 %v3933_v51  ;;  %v1842_v47 = vld [vmem:[#allocation11 + $0xf90] sm:$0xff]  ;;  %v1367_v51 = vld [vmem:[#allocation11 + $0xb8] sm:$0xff] }
 0x555   : > { %v3919_v58 = vpack.c.bf16 %v1842_v47, %v1810_v46  ;;  %v1688_v46 = vld [vmem:[#allocation11 + $0xac0] sm:$0xff]  ;;  %v4005_v47 = vpack.c.bf16 %v1721_v39, %v1689_v38 }
 0x556   : > { %3900 = vmatpush1.bf16.msra.mxu0 %v3899_v60  ;;  %v3953_v60 = vpack.c.bf16 %v1399_v52, %v1367_v51  ;;  %v1753_v51 = vld [vmem:[#allocation11 + $0xcc8] sm:$0xff]  ;;  %v4007_v54 = vpack.c.bf16 %v1720_v13, %v1688_v46  ;;  %v1532_v46 = vld [vmem:[#allocation11 + $0x5e0] sm:$0xff]  ;;  %v1531_v13 = vld [vmem:[#allocation11 + $0x5d8] sm:$0xff] }
 0x557   : > { %3936 = vmatpush1.bf16.msra.mxu1 %v3935_v61  ;;  %3902 = vmatprep.subr.bf16.mxu0 %v3901_v20  ;;  %v1366_v61 = vld [vmem:[#allocation11 + $0xb0] sm:$0xff]  ;;  %v1785_v52 = vld [vmem:[#allocation11 + $0xdc8] sm:$0xff] }
 0x558   : > { %3938 = vmatprep.subr.bf16.mxu1 %v3937_v2  ;;  %v1398_v20 = vld [vmem:[#allocation11 + $0x1b0] sm:$0xff]  ;;  %v1431_v2 = vld [vmem:[#allocation11 + $0x2b8] sm:$0xff] }
 0x559   : > { %v3955_v7 = vpack.c.bf16 %v1398_v20, %v1366_v61  ;;  %v1752_v61 = vld [vmem:[#allocation11 + $0xcc0] sm:$0xff]  ;;  %v4009_v20 = vpack.c.bf16 %v1785_v52, %v1753_v51 }
 0x55a   : > { %3904 = vmatpush1.bf16.msra.mxu0 %v3903_v27  ;;  %v3957_v27 = vpack.c.bf16 %v1463_v3, %v1431_v2  ;;  %v1817_v2 = vld [vmem:[#allocation11 + $0xec8] sm:$0xff]  ;;  %v4011_v5 = vpack.c.bf16 %v1784_v62, %v1752_v61  ;;  %v1596_v61 = vld [vmem:[#allocation11 + $0x7e0] sm:$0xff]  ;;  %v1595_v62 = vld [vmem:[#allocation11 + $0x7d8] sm:$0xff] }
 0x55b   : > { %3940 = vmatpush1.bf16.msra.mxu1 %v3939_v9  ;;  %3906 = vmatprep.subr.bf16.mxu0 %v3905_v10  ;;  %v1430_v9 = vld [vmem:[#allocation11 + $0x2b0] sm:$0xff]  ;;  %v1849_v3 = vld [vmem:[#allocation11 + $0xfc8] sm:$0xff] }
 0x55c   : > { %3942 = vmatprep.subr.bf16.mxu1 %v3941_v15  ;;  %v1462_v10 = vld [vmem:[#allocation11 + $0x3b0] sm:$0xff]  ;;  %v1495_v15 = vld [vmem:[#allocation11 + $0x4b8] sm:$0xff] }
 0x55d   : > { %v3959_v18 = vpack.c.bf16 %v1462_v10, %v1430_v9  ;;  %v1816_v9 = vld [vmem:[#allocation11 + $0xec0] sm:$0xff]  ;;  %v4013_v10 = vpack.c.bf16 %v1849_v3, %v1817_v2 }
 0x55e   : > { %3908 = vmatpush1.bf16.msra.mxu0 %v3907_v21  ;;  %v3961_v21 = vpack.c.bf16 %v1527_v16, %v1495_v15  ;;  %v1373_v15 = vld [vmem:[#allocation11 + $0xe8] sm:$0xff]  ;;  %v4015_v17 = vpack.c.bf16 %v1848_v11, %v1816_v9  ;;  %v1660_v9 = vld [vmem:[#allocation11 + $0x9e0] sm:$0xff]  ;;  %v1659_v11 = vld [vmem:[#allocation11 + $0x9d8] sm:$0xff] }
 0x55f   : > { %3944 = vmatpush1.bf16.msra.mxu1 %v3943_v55  ;;  %3910 = vmatprep.subr.bf16.mxu0 %v3909_v57  ;;  %v1494_v55 = vld [vmem:[#allocation11 + $0x4b0] sm:$0xff]  ;;  %v1405_v16 = vld [vmem:[#allocation11 + $0x1e8] sm:$0xff] }
 0x560   : > { %3946 = vmatprep.subr.bf16.mxu1 %v3945_v24  ;;  %v1526_v57 = vld [vmem:[#allocation11 + $0x5b0] sm:$0xff]  ;;  %v1559_v24 = vld [vmem:[#allocation11 + $0x6b8] sm:$0xff] }
 0x561   : > { %v3963_v28 = vpack.c.bf16 %v1526_v57, %v1494_v55  ;;  %v1372_v55 = vld [vmem:[#allocation11 + $0xe0] sm:$0xff]  ;;  %v4049_v57 = vpack.c.bf16 %v1405_v16, %v1373_v15 }
 0x562   : > { %3912 = vmatpush1.bf16.msra.mxu0 %v3911_v30  ;;  %v3965_v30 = vpack.c.bf16 %v1591_v25, %v1559_v24  ;;  %v1437_v24 = vld [vmem:[#allocation11 + $0x2e8] sm:$0xff]  ;;  %v4051_v63 = vpack.c.bf16 %v1404_v22, %v1372_v55  ;;  %v1724_v55 = vld [vmem:[#allocation11 + $0xbe0] sm:$0xff]  ;;  %v1723_v22 = vld [vmem:[#allocation11 + $0xbd8] sm:$0xff] }
 0x563   : > { %3948 = vmatpush1.bf16.msra.mxu1 %v3947_v31  ;;  %3914 = vmatprep.subr.bf16.mxu0 %v3913_v32  ;;  %v1558_v31 = vld [vmem:[#allocation11 + $0x6b0] sm:$0xff]  ;;  %v1469_v25 = vld [vmem:[#allocation11 + $0x3e8] sm:$0xff] }
 0x564   : > { %3950 = vmatprep.subr.bf16.mxu1 %v3949_v37  ;;  %v1590_v32 = vld [vmem:[#allocation11 + $0x7b0] sm:$0xff]  ;;  %v1623_v37 = vld [vmem:[#allocation11 + $0x8b8] sm:$0xff] }
 0x565   : > { %v3967_v41 = vpack.c.bf16 %v1590_v32, %v1558_v31  ;;  %v1436_v31 = vld [vmem:[#allocation11 + $0x2e0] sm:$0xff]  ;;  %v4053_v32 = vpack.c.bf16 %v1469_v25, %v1437_v24 }
 0x566   : > { %3916 = vmatpush1.bf16.msra.mxu0 %v3915_v43  ;;  %v3969_v43 = vpack.c.bf16 %v1655_v6, %v1623_v37  ;;  %v1501_v37 = vld [vmem:[#allocation11 + $0x4e8] sm:$0xff]  ;;  %v4055_v39 = vpack.c.bf16 %v1468_v33, %v1436_v31  ;;  %v1788_v31 = vld [vmem:[#allocation11 + $0xde0] sm:$0xff]  ;;  %v1787_v33 = vld [vmem:[#allocation11 + $0xdd8] sm:$0xff] }
 0x567   : > { %3952 = vmatpush1.bf16.msra.mxu1 %v3951_v44  ;;  %3918 = vmatprep.subr.bf16.mxu0 %v3917_v45  ;;  %v1622_v44 = vld [vmem:[#allocation11 + $0x8b0] sm:$0xff]  ;;  %v1533_v6 = vld [vmem:[#allocation11 + $0x5e8] sm:$0xff] }
 0x568   : > { %3986 = vmatprep.subr.bf16.mxu1 %v3985_v49  ;;  %v1654_v45 = vld [vmem:[#allocation11 + $0x9b0] sm:$0xff]  ;;  %v1687_v49 = vld [vmem:[#allocation11 + $0xab8] sm:$0xff] }
 0x569   : > { %v3971_v53 = vpack.c.bf16 %v1654_v45, %v1622_v44  ;;  %v1500_v44 = vld [vmem:[#allocation11 + $0x4e0] sm:$0xff]  ;;  %v4057_v45 = vpack.c.bf16 %v1533_v6, %v1501_v37  ;;  %v1853_v37 = vld [vmem:[#allocation11 + $0xfe8] sm:$0xff] }
 0x56a   : > { %3920 = vmatpush1.bf16.msra.mxu0 %v3919_v58  ;;  %2631 = vmatmul.mubr.f32.vlgmr.msra.gmra.mrb[32].mxu1 %v5114_v34  ;;  %v3973_v58 = vpack.c.bf16 %v1719_v50, %v1687_v49  ;;  %v1565_v49 = vld [vmem:[#allocation11 + $0x6e8] sm:$0xff]  ;;  %v4059_v52 = vpack.c.bf16 %v1532_v46, %v1500_v44  ;;  %v1820_v44 = vld [vmem:[#allocation11 + $0xee0] sm:$0xff] }
 0x56b   : > { %3988 = vmatpush1.bf16.msra.mxu1 %v3987_v59  ;;  %3954 = vmatprep.subr.bf16.mxu0 %v3953_v60  ;;  %v1686_v59 = vld [vmem:[#allocation11 + $0xab0] sm:$0xff]  ;;  %v1597_v50 = vld [vmem:[#allocation11 + $0x7e8] sm:$0xff] }
 0x56c   : > { %3990 = vmatprep.subr.bf16.mxu1 %v3989_v0  ;;  %2772 = vmatprep.mubr.f32.mxu1 %v4621_v48  ;;  %v1718_v60 = vld [vmem:[#allocation11 + $0xbb0] sm:$0xff]  ;;  %v1751_v0 = vld [vmem:[#allocation11 + $0xcb8] sm:$0xff] }
 0x56d   : > { %2560 = vmatmul.mubr.f32.vlgmr.msra.gmra.mrb[42].mxu0 %v5114_v34  ;;  %v3975_v4 = vpack.c.bf16 %v1718_v60, %v1686_v59  ;;  %v1564_v59 = vld [vmem:[#allocation11 + $0x6e0] sm:$0xff]  ;;  %v4061_v60 = vpack.c.bf16 %v1597_v50, %v1565_v49  ;;  %v1851_v49 = vld [vmem:[#allocation11 + $0xfd8] sm:$0xff] }
 0x56e   : > { %3956 = vmatpush1.bf16.msra.mxu0 %v3955_v7  ;;  %2701 = vmatprep.mubr.f32.mxu0 %v4621_v48  ;;  %v3977_v7 = vpack.c.bf16 %v1783_v1, %v1751_v0  ;;  %v1629_v0 = vld [vmem:[#allocation11 + $0x8e8] sm:$0xff]  ;;  %v4063_v3 = vpack.c.bf16 %v1596_v61, %v1564_v59  ;;  %v1375_v59 = vld [vmem:[#allocation11 + $0xf8] sm:$0xff] }
 0x56f   : > { %3992 = vmatpush1.bf16.msra.mxu1 %v3991_v8  ;;  %3958 = vmatprep.subr.bf16.mxu0 %v3957_v27  ;;  %v1750_v8 = vld [vmem:[#allocation11 + $0xcb0] sm:$0xff]  ;;  %v1661_v1 = vld [vmem:[#allocation11 + $0x9e8] sm:$0xff] }
 0x570   : > { %3994 = vmatprep.subr.bf16.mxu1 %v3993_v12  ;;  %v1782_v27 = vld [vmem:[#allocation11 + $0xdb0] sm:$0xff]  ;;  %v1815_v12 = vld [vmem:[#allocation11 + $0xeb8] sm:$0xff] }
 0x571   : > { %v3979_v56 = vpack.c.bf16 %v1782_v27, %v1750_v8  ;;  %v1628_v8 = vld [vmem:[#allocation11 + $0x8e0] sm:$0xff]  ;;  %v4065_v27 = vpack.c.bf16 %v1661_v1, %v1629_v0  ;;  %v1406_v0 = vld [vmem:[#allocation11 + $0x1f0] sm:$0xff]  ;;  %v1439_v1 = vld [vmem:[#allocation11 + $0x2f8] sm:$0xff] }
 0x572   : > { %3960 = vmatpush1.bf16.msra.mxu0 %v3959_v18  ;;  %v3981_v18 = vpack.c.bf16 %v1847_v14, %v1815_v12  ;;  %v1693_v12 = vld [vmem:[#allocation11 + $0xae8] sm:$0xff]  ;;  %v4067_v16 = vpack.c.bf16 %v1660_v9, %v1628_v8  ;;  %v1470_v8 = vld [vmem:[#allocation11 + $0x3f0] sm:$0xff]  ;;  %v1503_v9 = vld [vmem:[#allocation11 + $0x4f8] sm:$0xff] }
 0x573   : > { %3996 = vmatpush1.bf16.msra.mxu1 %v3995_v19  ;;  %3962 = vmatprep.subr.bf16.mxu0 %v3961_v21  ;;  %v1814_v19 = vld [vmem:[#allocation11 + $0xeb0] sm:$0xff]  ;;  %v1725_v14 = vld [vmem:[#allocation11 + $0xbe8] sm:$0xff] }
 0x574   : > { %3998 = vmatprep.subr.bf16.mxu1 %v3997_v23  ;;  %v1846_v21 = vld [vmem:[#allocation11 + $0xfb0] sm:$0xff]  ;;  %v1371_v23 = vld [vmem:[#allocation11 + $0xd8] sm:$0xff] }
 0x575   : > { %v3983_v26 = vpack.c.bf16 %v1846_v21, %v1814_v19  ;;  %v1692_v19 = vld [vmem:[#allocation11 + $0xae0] sm:$0xff]  ;;  %v4069_v21 = vpack.c.bf16 %v1725_v14, %v1693_v12  ;;  %v1502_v14 = vld [vmem:[#allocation11 + $0x4f0] sm:$0xff] }
 0x576   : > { %3964 = vmatpush1.bf16.msra.mxu0 %v3963_v28  ;;  %v4017_v28 = vpack.c.bf16 %v1403_v40, %v1371_v23  ;;  %v1757_v23 = vld [vmem:[#allocation11 + $0xce8] sm:$0xff]  ;;  %v4071_v25 = vpack.c.bf16 %v1724_v55, %v1692_v19  ;;  %v1566_v19 = vld [vmem:[#allocation11 + $0x6f0] sm:$0xff]  ;;  %v1631_v55 = vld [vmem:[#allocation11 + $0x8f8] sm:$0xff] }
 0x577   : > { %4000 = vmatpush1.bf16.msra.mxu1 %v3999_v29  ;;  %3966 = vmatprep.subr.bf16.mxu0 %v3965_v30  ;;  %v1370_v29 = vld [vmem:[#allocation11 + $0xd0] sm:$0xff]  ;;  %v1789_v40 = vld [vmem:[#allocation11 + $0xde8] sm:$0xff] }
 0x578   : > { %4002 = vmatprep.subr.bf16.mxu1 %v4001_v35  ;;  %v1402_v30 = vld [vmem:[#allocation11 + $0x1d0] sm:$0xff]  ;;  %v1435_v35 = vld [vmem:[#allocation11 + $0x2d8] sm:$0xff] }
 0x579   : > { %v4019_v38 = vpack.c.bf16 %v1402_v30, %v1370_v29  ;;  %v1756_v29 = vld [vmem:[#allocation11 + $0xce0] sm:$0xff]  ;;  %v4073_v30 = vpack.c.bf16 %v1789_v40, %v1757_v23  ;;  %v1662_v40 = vld [vmem:[#allocation11 + $0x9f0] sm:$0xff] }
 0x57a   : > { %3968 = vmatpush1.bf16.msra.mxu0 %v3967_v41  ;;  %v4021_v41 = vpack.c.bf16 %v1467_v36, %v1435_v35  ;;  %v1821_v36 = vld [vmem:[#allocation11 + $0xee8] sm:$0xff] }
 0x57b   : > { %4004 = vmatpush1.bf16.msra.mxu1 %v4003_v42  ;;  %3970 = vmatprep.subr.bf16.mxu0 %v3969_v43  ;;  %v1434_v42 = vld [vmem:[#allocation11 + $0x2d0] sm:$0xff]  ;;  %v4077_v46 = vpack.c.bf16 %v1853_v37, %v1821_v36 }
 0x57c   : > { %4006 = vmatprep.subr.bf16.mxu1 %v4005_v47  ;;  %v1466_v43 = vld [vmem:[#allocation11 + $0x3d0] sm:$0xff]  ;;  %v1499_v47 = vld [vmem:[#allocation11 + $0x4d8] sm:$0xff] }
 0x57d   : > { %v4023_v51 = vpack.c.bf16 %v1466_v43, %v1434_v42  ;;  %v1754_v42 = vld [vmem:[#allocation11 + $0xcd0] sm:$0xff] }
 0x57e   : > { %3972 = vmatpush1.bf16.msra.mxu0 %v3971_v53  ;;  %v4025_v53 = vpack.c.bf16 %v1531_v13, %v1499_v47  ;;  %v1786_v43 = vld [vmem:[#allocation11 + $0xdd0] sm:$0xff]  ;;  %v1852_v47 = vld [vmem:[#allocation11 + $0xfe0] sm:$0xff]  ;;  %v1819_v13 = vld [vmem:[#allocation11 + $0xed8] sm:$0xff] }
 0x57f   : > { %4008 = vmatpush1.bf16.msra.mxu1 %v4007_v54  ;;  %3974 = vmatprep.subr.bf16.mxu0 %v3973_v58  ;;  %v1498_v54 = vld [vmem:[#allocation11 + $0x4d0] sm:$0xff] }
 0x580   : > { %4010 = vmatprep.subr.bf16.mxu1 %v4009_v20  ;;  %v1530_v58 = vld [vmem:[#allocation11 + $0x5d0] sm:$0xff]  ;;  %v1563_v20 = vld [vmem:[#allocation11 + $0x6d8] sm:$0xff] }
 0x581   : > { %v4027_v2 = vpack.c.bf16 %v1530_v58, %v1498_v54  ;;  %v1818_v54 = vld [vmem:[#allocation11 + $0xed0] sm:$0xff] }
 0x582   : > { %3976 = vmatpush1.bf16.msra.mxu0 %v3975_v4  ;;  %v4029_v4 = vpack.c.bf16 %v1595_v62, %v1563_v20  ;;  %v1850_v58 = vld [vmem:[#allocation11 + $0xfd0] sm:$0xff] }
 0x583   : > { %4012 = vmatpush1.bf16.msra.mxu1 %v4011_v5  ;;  %3978 = vmatprep.subr.bf16.mxu0 %v3977_v7  ;;  %v1562_v5 = vld [vmem:[#allocation11 + $0x6d0] sm:$0xff]  ;;  %v4047_v61 = vpack.c.bf16 %v1850_v58, %v1818_v54 }
 0x584   : > { %4014 = vmatprep.subr.bf16.mxu1 %v4013_v10  ;;  %v1594_v7 = vld [vmem:[#allocation11 + $0x7d0] sm:$0xff]  ;;  %v1627_v10 = vld [vmem:[#allocation11 + $0x8d8] sm:$0xff] }
 0x585   : > { %v4031_v15 = vpack.c.bf16 %v1594_v7, %v1562_v5  ;;  %v1374_v62 = vld [vmem:[#allocation11 + $0xf0] sm:$0xff] }
 0x586   : > { %3980 = vmatpush1.bf16.msra.mxu0 %v3979_v56  ;;  %v4033_v56 = vpack.c.bf16 %v1659_v11, %v1627_v10  ;;  %v1438_v7 = vld [vmem:[#allocation11 + $0x2f0] sm:$0xff]  ;;  %v1535_v10 = vld [vmem:[#allocation11 + $0x5f8] sm:$0xff] }
 0x587   : > { %4016 = vmatpush1.bf16.msra.mxu1 %v4015_v17  ;;  %3982 = vmatprep.subr.bf16.mxu0 %v3981_v18  ;;  %v1626_v17 = vld [vmem:[#allocation11 + $0x8d0] sm:$0xff]  ;;  %v4087_v11 = vpack.c.bf16 %v1470_v8, %v1438_v7  ;;  %v4089_v12 = vpack.c.bf16 %v1535_v10, %v1503_v9 }
 0x588   : > { %4050 = vmatprep.subr.bf16.mxu1 %v4049_v57  ;;  %v1658_v18 = vld [vmem:[#allocation11 + $0x9d0] sm:$0xff]  ;;  %v1691_v57 = vld [vmem:[#allocation11 + $0xad8] sm:$0xff] }
 0x589   : > { %v4035_v24 = vpack.c.bf16 %v1658_v18, %v1626_v17  ;;  %v1758_v37 = vld [vmem:[#allocation11 + $0xcf0] sm:$0xff] }
 0x58a   : > { %3984 = vmatpush1.bf16.msra.mxu0 %v3983_v26  ;;  %2773 = vmatmul.mubr.f32.vlgmr.msra.gmra.mrb[34].mxu1 %v5114_v34  ;;  %v4037_v26 = vpack.c.bf16 %v1723_v22, %v1691_v57  ;;  %v1663_v57 = vld [vmem:[#allocation11 + $0x9f8] sm:$0xff] }
 0x58b   : > { %4052 = vmatpush1.bf16.msra.mxu1 %v4051_v63  ;;  %4018 = vmatprep.subr.bf16.mxu0 %v4017_v28  ;;  %v1690_v63 = vld [vmem:[#allocation11 + $0xad0] sm:$0xff]  ;;  %v4097_v23 = vpack.c.bf16 %v1663_v57, %v1631_v55 }
 0x58c   : > { %4054 = vmatprep.subr.bf16.mxu1 %v4053_v32  ;;  %2914 = vmatprep.mubr.f32.mxu1 %v4621_v48  ;;  %v1722_v28 = vld [vmem:[#allocation11 + $0xbd0] sm:$0xff]  ;;  %v1755_v32 = vld [vmem:[#allocation11 + $0xcd8] sm:$0xff] }
 0x58d   : > { %2702 = vmatmul.mubr.f32.vlgmr.msra.gmra.mrb[44].mxu0 %v5114_v34 }
 0x58e   : > { %4020 = vmatpush1.bf16.msra.mxu0 %v4019_v38  ;;  %2843 = vmatprep.mubr.f32.mxu0 %v4621_v48  ;;  %v4039_v38 = vpack.c.bf16 %v1722_v28, %v1690_v63  ;;  %v1694_v28 = vld [vmem:[#allocation11 + $0xaf0] sm:$0xff] }
 0x58f   : > { %4056 = vmatpush1.bf16.msra.mxu1 %v4055_v39  ;;  %4022 = vmatprep.subr.bf16.mxu0 %v4021_v41  ;;  %v4075_v39 = vpack.c.bf16 %v1788_v31, %v1756_v29  ;;  %v4041_v41 = vpack.c.bf16 %v1787_v33, %v1755_v32  ;;  %v1726_v29 = vld [vmem:[#allocation11 + $0xbf0] sm:$0xff]  ;;  %v1791_v31 = vld [vmem:[#allocation11 + $0xdf8] sm:$0xff] }
 0x590   : > { %4058 = vmatprep.subr.bf16.mxu1 %v4057_v45 }
 0x592   : > { %4024 = vmatpush1.bf16.msra.mxu0 %v4023_v51  ;;  %v4043_v51 = vpack.c.bf16 %v1786_v43, %v1754_v42 }
 0x593   : > { %4060 = vmatpush1.bf16.msra.mxu1 %v4059_v52  ;;  %4026 = vmatprep.subr.bf16.mxu0 %v4025_v53  ;;  %v4079_v52 = vpack.c.bf16 %v1852_v47, %v1820_v44  ;;  %v4045_v53 = vpack.c.bf16 %v1851_v49, %v1819_v13 }
 0x594   : > { %4062 = vmatprep.subr.bf16.mxu1 %v4061_v60  ;;  %v1407_v60 = vld [vmem:[#allocation11 + $0x1f8] sm:$0xff] }
 0x595   : > { %v4081_v20 = vpack.c.bf16 %v1407_v60, %v1375_v59 }
 0x596   : > { %4028 = vmatpush1.bf16.msra.mxu0 %v4027_v2  ;;  %v1471_v2 = vld [vmem:[#allocation11 + $0x3f8] sm:$0xff] }
 0x597   : > { %4064 = vmatpush1.bf16.msra.mxu1 %v4063_v3  ;;  %4030 = vmatprep.subr.bf16.mxu0 %v4029_v4  ;;  %v4083_v3 = vpack.c.bf16 %v1406_v0, %v1374_v62  ;;  %v4085_v5 = vpack.c.bf16 %v1471_v2, %v1439_v1 }
 0x598   : > { %4066 = vmatprep.subr.bf16.mxu1 %v4065_v27 }
 0x59a   : > { %4032 = vmatpush1.bf16.msra.mxu0 %v4031_v15  ;;  %v1534_v15 = vld [vmem:[#allocation11 + $0x5f0] sm:$0xff] }
 0x59b   : > { %4068 = vmatpush1.bf16.msra.mxu1 %v4067_v16  ;;  %4034 = vmatprep.subr.bf16.mxu0 %v4033_v56  ;;  %v1567_v16 = vld [vmem:[#allocation11 + $0x6f8] sm:$0xff]  ;;  %v4091_v17 = vpack.c.bf16 %v1534_v15, %v1502_v14 }
 0x59c   : > { %4070 = vmatprep.subr.bf16.mxu1 %v4069_v21  ;;  %v1599_v56 = vld [vmem:[#allocation11 + $0x7f8] sm:$0xff]  ;;  %v1598_v21 = vld [vmem:[#allocation11 + $0x7f0] sm:$0xff] }
 0x59d   : > { %v1922_v35 = vpop.f32.mrb[22].mxu1  ;;  %v4093_v18 = vpack.c.bf16 %v1599_v56, %v1567_v16  ;;  %v4095_v22 = vpack.c.bf16 %v1598_v21, %v1566_v19 }
 0x59e   : > { %2992 = vst [vmem:[%s5146_s24] sm:$0xff] %v1922_v35  ;;  %4036 = vmatpush1.bf16.msra.mxu0 %v4035_v24  ;;  %v1924_v6 = vpop.f32.mrb[23].mxu1  ;;  %v1695_v24 = vld [vmem:[#allocation11 + $0xaf8] sm:$0xff]  ;;  %v4103_v35 = vpack.c.bf16 %v1726_v29, %v1694_v28 }
 0x59f   : > { %2993 = vst [vmem:[%s5146_s24 + $0x8] sm:$0xff] %v1924_v6  ;;  %4072 = vmatpush1.bf16.msra.mxu1 %v4071_v25  ;;  %4038 = vmatprep.subr.bf16.mxu0 %v4037_v26  ;;  %v1727_v25 = vld [vmem:[#allocation11 + $0xbf8] sm:$0xff]  ;;  %v1790_v6 = vld [vmem:[#allocation11 + $0xdf0] sm:$0xff] }
 0x5a0   : > { %v3464_v45 = vpop.f32.mrb[32].mxu0  ;;  %4074 = vmatprep.subr.bf16.mxu1 %v4073_v30  ;;  %v4101_v63 = vpack.c.bf16 %v1727_v25, %v1695_v24  ;;  %v1759_v30 = vld [vmem:[#allocation11 + $0xcf8] sm:$0xff]  ;;  %v4107_v43 = vpack.c.bf16 %v1790_v6, %v1758_v37 }
 0x5a1   : > { %4259 = vrcp.f32 %v3464_v45  ;;  %v1332_v50 = vpop.f32.mrb[33].mxu0  ;;  %v4105_v36 = vpack.c.bf16 %v1791_v31, %v1759_v30  ;;  %v1822_v45 = vld [vmem:[#allocation11 + $0xef0] sm:$0xff] }
 0x5a2   : > { %4040 = vmatpush1.bf16.msra.mxu0 %v4039_v38 }
 0x5a3   : > { %4076 = vmatpush1.bf16.msra.mxu1 %v4075_v39  ;;  %4042 = vmatprep.subr.bf16.mxu0 %v4041_v41  ;;  %v1823_v39 = vld [vmem:[#allocation11 + $0xef8] sm:$0xff] }
 0x5a4   : > { %4078 = vmatprep.subr.bf16.mxu1 %v4077_v46  ;;  %v1855_v41 = vld [vmem:[#allocation11 + $0xff8] sm:$0xff]  ;;  %v1854_v46 = vld [vmem:[#allocation11 + $0xff0] sm:$0xff] }
 0x5a5   : > { %v4109_v44 = vpack.c.bf16 %v1855_v41, %v1823_v39  ;;  %v4111_v47 = vpack.c.bf16 %v1854_v46, %v1822_v45 }
 0x5a6   : > { %4044 = vmatpush1.bf16.msra.mxu0 %v4043_v51 }
 0x5a7   : > { %4080 = vmatpush1.bf16.msra.mxu1 %v4079_v52  ;;  %4046 = vmatprep.subr.bf16.mxu0 %v4045_v53 }
 0x5aa   : > { %4048 = vmatpush1.bf16.msra.mxu0 %v4047_v61  ;;  %2915 = vmatmul.mubr.f32.vlgmr.msra.gmra.mrb[36].mxu1 %v5114_v34 }
 0x5ab   : > { %v4260_v4 = vpop.eup %4259  ;;  %4082 = vmatprep.subr.bf16.mxu0 %v4081_v20 }
 0x5ac   : > { %v1342_v27 = vmul.f32 %v4260_v4, %v1332_v50 }
 0x5ad   : > { %2844 = vmatmul.mubr.f32.vlgmr.msra.gmra.mrb[46].mxu0 %v5114_v34 }
 0x5ae   : > { %1343 = vst [vmem:[%s5153_s14] sm:$0xff] %v1342_v27  ;;  %4084 = vmatpush1.bf16.msra.mxu0 %v4083_v3  ;;  %2985 = vmatprep.mubr.f32.mxu0 %v4621_v48  ;;  %v1630_v48 = vld [vmem:[#allocation11 + $0x8f0] sm:$0xff] }
 0x5af   : > { %4086 = vmatprep.subr.bf16.mxu0 %v4085_v5  ;;  %v4099_v26 = vpack.c.bf16 %v1662_v40, %v1630_v48 }
 0x5b2   : > { %4088 = vmatpush1.bf16.msra.mxu0 %v4087_v11 }
 0x5b3   : > { %4090 = vmatprep.subr.bf16.mxu0 %v4089_v12 }
 0x5b6   : > { %4092 = vmatpush1.bf16.msra.mxu0 %v4091_v17 }
 0x5b7   : > { %4094 = vmatprep.subr.bf16.mxu0 %v4093_v18 }
 0x5ba   : > { %4096 = vmatpush1.bf16.msra.mxu0 %v4095_v22 }
 0x5bb   : > { %4098 = vmatprep.subr.bf16.mxu0 %v4097_v23 }
 0x5bd   : > { %v2064_v32 = vpop.f32.mrb[24].mxu1 }
 0x5be   : > { %2996 = vst [vmem:[%s5146_s24 + $0x20] sm:$0xff] %v2064_v32  ;;  %v2066_v33 = vpop.f32.mrb[25].mxu1  ;;  %4100 = vmatpush1.bf16.msra.mxu0 %v4099_v26 }
 0x5bf   : > { %2997 = vst [vmem:[%s5146_s24 + $0x28] sm:$0xff] %v2066_v33  ;;  %4102 = vmatprep.subr.bf16.mxu0 %v4101_v63 }
 0x5c0   : > { %v1993_v38 = vpop.f32.mrb[34].mxu0 }
 0x5c1   : > { %2994 = vst [vmem:[%s5146_s24 + $0x10] sm:$0xff] %v1993_v38  ;;  %v1995_v42 = vpop.f32.mrb[35].mxu0 }
 0x5c2   : > { %2995 = vst [vmem:[%s5146_s24 + $0x18] sm:$0xff] %v1995_v42  ;;  %4104 = vmatpush1.bf16.msra.mxu0 %v4103_v35 }
 0x5c3   : > { %4106 = vmatprep.subr.bf16.mxu0 %v4105_v36 }
 0x5c6   : > { %4108 = vmatpush1.bf16.msra.mxu0 %v4107_v43 }
 0x5c7   : > { %4110 = vmatprep.subr.bf16.mxu0 %v4109_v44 }
 0x5ca   : > { %4112 = vmatpush1.bf16.msra.mxu0 %v4111_v47 }
 0x5cd   : > { %2986 = vmatmul.mubr.f32.vlgmr.msra.gmra.mrb[48].mxu0 %v5114_v34 }
 0x5dd   : > { %v2206_v13 = vpop.f32.mrb[26].mxu1 }
 0x5de   : > { %3000 = vst [vmem:[%s5146_s24 + $0x40] sm:$0xff] %v2206_v13  ;;  %v2208_v49 = vpop.f32.mrb[27].mxu1 }
 0x5df   : > { %3001 = vst [vmem:[%s5146_s24 + $0x48] sm:$0xff] %v2208_v49 }
 0x5e0   : > { %v2135_v50 = vpop.f32.mrb[36].mxu0 }
 0x5e1   : > { %2998 = vst [vmem:[%s5146_s24 + $0x30] sm:$0xff] %v2135_v50  ;;  %v2137_v51 = vpop.f32.mrb[37].mxu0 }
 0x5e2   : > { %2999 = vst [vmem:[%s5146_s24 + $0x38] sm:$0xff] %v2137_v51 }
 0x5fd   : > { %v2348_v52 = vpop.f32.mrb[28].mxu1 }
 0x5fe   : > { %3004 = vst [vmem:[%s5146_s24 + $0x60] sm:$0xff] %v2348_v52  ;;  %v2350_v53 = vpop.f32.mrb[29].mxu1 }
 0x5ff   : > { %3005 = vst [vmem:[%s5146_s24 + $0x68] sm:$0xff] %v2350_v53 }
 0x600   : > { %v2277_v34 = vpop.f32.mrb[38].mxu0 }
 0x601   : > { %3002 = vst [vmem:[%s5146_s24 + $0x50] sm:$0xff] %v2277_v34  ;;  %v2279_v54 = vpop.f32.mrb[39].mxu0 }
 0x602   : > { %3003 = vst [vmem:[%s5146_s24 + $0x58] sm:$0xff] %v2279_v54 }
 0x61d   : > { %v2490_v58 = vpop.f32.mrb[30].mxu1 }
 0x61e   : > { %3008 = vst [vmem:[%s5146_s24 + $0x80] sm:$0xff] %v2490_v58  ;;  %v2492_v59 = vpop.f32.mrb[31].mxu1 }
 0x61f   : > { %3009 = vst [vmem:[%s5146_s24 + $0x88] sm:$0xff] %v2492_v59 }
 0x620   : > { %v2419_v60 = vpop.f32.mrb[40].mxu0 }
 0x621   : > { %3006 = vst [vmem:[%s5146_s24 + $0x70] sm:$0xff] %v2419_v60  ;;  %v2421_v61 = vpop.f32.mrb[41].mxu0 }
 0x622   : > { %3007 = vst [vmem:[%s5146_s24 + $0x78] sm:$0xff] %v2421_v61 }
 0x623   : > { %4500 = shalt.err (!%p4497_p9)
}
 0x624   : > { %s4501_s14 = scalar_lea.hbm %s5179_s1, 128  ;;  %s4505_s27 = scalar_lea.hbm %s5312_s15, 256 }
 0x625   : > { %p4502_p4 = scmp.ne.s32.totalorder %s5179_s1, %s4501_s14  ;;  %p4506_p2 = scmp.lt.u32.totalorder %s5179_s1, %s5312_s15 }
 0x626   : > { %p4507_p6 = scmp.lt.u32.totalorder %s4505_s27, %s4501_s14  ;;  %p4509_p10 = scmp.lt.u32.totalorder %s4501_s14, %s5179_s1 }
 0x627   : > { %p4503_p3 = pnand %p4502_p4, %p5313_p1 }
 0x628   : > { %p4508_p5 = por %p4507_p6, %p4506_p2 }
 0x629   : > { %p4504_p0 = pneg %p4503_p3 }
 0x62a   : > { %p4510_p11 = por %p4509_p10, %p4508_p5 }
 0x62c   : > { %p4511_p12 = pnand %p4510_p11, %p4504_p0 }
 0x62e   : > { %4514 = shalt.err (!%p4511_p12)
}
 0x62f   : > { %4143 = dma.vmem_to_hbm [thread:$0]  (%p5313_p1), %s3044_s2, 128, %s5179_s1, %s3025_s9  }
 0x630   : > { %s3264_s2 = sshll.u32 %s4706_s23, 12  ;;  %s3057_s1 = sshll.u32 %s5146_s24, 4  ;;  %s5218_s1 = int_to_ptr.vmem [resolvable:$true] %s3057_s1 }
 0x631   : > { %s5314_s22 = sld [smem:[#allocation30_spill]]  ;;  %s3030_s10 = scalar_lea.sflag [#allocation18], %s4963_s28 }
 0x632   : > { %s4515_s12 = scalar_lea.vmem %s5218_s1, 4096  ;;  %s4624_s23 = smov [#allocation17]  }
 0x633   : > { %p4516_p13 = scmp.ne.s32.totalorder %s5218_s1, %s4515_s12  ;;  %s4519_s27 = sshll.u32 %s4624_s23, 4  ;;  %s4520_s27 = int_to_ptr.vmem [resolvable:$false] %s4519_s27 }
 0x634   : > { %s4521_s26 = scalar_lea.vmem %s4520_s27, 8192  ;;  %p4522_p9 = scmp.lt.s32.totalorder %s5218_s1, %s4520_s27 }
 0x635   : > { %p4517_p8 = pnand %p4516_p13, %p5313_p1  ;;  %p4523_p4 = scmp.lt.s32.totalorder %s4521_s26, %s4515_s12 }
 0x637   : > { %s5216_s14 = scalar_lea.hbm %s5314_s22, %s3264_s2  ;;  %p4518_p7 = pneg %p4517_p8 }
 0x638   : > { %p4524_p3 = por %p4523_p4, %p4522_p9 }
 0x63a   : > { %p4525_p0 = pnand %p4524_p3, %p4518_p7 }
 0x63d   : > { %v2632_v20 = vpop.f32.mrb[32].mxu1 }
 0x63e   : > { %3012 = vst [vmem:[%s5146_s24 + $0xa0] sm:$0xff] %v2632_v20  ;;  %v2634_v62 = vpop.f32.mrb[33].mxu1 }
 0x63f   : > { %3013 = vst [vmem:[%s5146_s24 + $0xa8] sm:$0xff] %v2634_v62 }
 0x640   : > { %v2561_v0 = vpop.f32.mrb[42].mxu0 }
 0x641   : > { %3010 = vst [vmem:[%s5146_s24 + $0x90] sm:$0xff] %v2561_v0  ;;  %v2563_v1 = vpop.f32.mrb[43].mxu0 }
 0x642   : > { %3011 = vst [vmem:[%s5146_s24 + $0x98] sm:$0xff] %v2563_v1 }
 0x65d   : > { %v2774_v2 = vpop.f32.mrb[34].mxu1 }
 0x65e   : > { %3016 = vst [vmem:[%s5146_s24 + $0xc0] sm:$0xff] %v2774_v2  ;;  %v2776_v3 = vpop.f32.mrb[35].mxu1 }
 0x65f   : > { %3017 = vst [vmem:[%s5146_s24 + $0xc8] sm:$0xff] %v2776_v3 }
 0x660   : > { %v2703_v4 = vpop.f32.mrb[44].mxu0 }
 0x661   : > { %3014 = vst [vmem:[%s5146_s24 + $0xb0] sm:$0xff] %v2703_v4  ;;  %v2705_v5 = vpop.f32.mrb[45].mxu0 }
 0x662   : > { %3015 = vst [vmem:[%s5146_s24 + $0xb8] sm:$0xff] %v2705_v5 }
 0x67d   : > { %v2916_v7 = vpop.f32.mrb[36].mxu1 }
 0x67e   : > { %3020 = vst [vmem:[%s5146_s24 + $0xe0] sm:$0xff] %v2916_v7  ;;  %v2918_v8 = vpop.f32.mrb[37].mxu1 }
 0x67f   : > { %3021 = vst [vmem:[%s5146_s24 + $0xe8] sm:$0xff] %v2918_v8 }
 0x680   : > { %v2845_v27 = vpop.f32.mrb[46].mxu0 }
 0x681   : > { %3018 = vst [vmem:[%s5146_s24 + $0xd0] sm:$0xff] %v2845_v27  ;;  %v2847_v9 = vpop.f32.mrb[47].mxu0 }
 0x682   : > { %3019 = vst [vmem:[%s5146_s24 + $0xd8] sm:$0xff] %v2847_v9 }
 0x6a0   : > { %v2987_v10 = vpop.f32.mrb[48].mxu0 }
 0x6a1   : > { %3022 = vst [vmem:[%s5146_s24 + $0xf0] sm:$0xff] %v2987_v10  ;;  %v2989_v11 = vpop.f32.mrb[49].mxu0 }
 0x6a2   : > { %3023 = vst [vmem:[%s5146_s24 + $0xf8] sm:$0xff] %v2989_v11 }
 0x6a3   : > { %4528 = shalt.err (!%p4525_p0)
}
 0x6a4   : > { %s4529_s28 = scalar_lea.hbm %s5216_s14, 4096  ;;  %s4533_s2 = scalar_lea.hbm %s5314_s22, 8192 }
 0x6a5   : > { %p4530_p2 = scmp.ne.s32.totalorder %s5216_s14, %s4529_s28  ;;  %p4534_p10 = scmp.lt.u32.totalorder %s5216_s14, %s5314_s22 }
 0x6a6   : > { %p4535_p11 = scmp.lt.u32.totalorder %s4533_s2, %s4529_s28  ;;  %p4537_p13 = scmp.lt.u32.totalorder %s4529_s28, %s5216_s14 }
 0x6a7   : > { %p4531_p6 = pnand %p4530_p2, %p5313_p1 }
 0x6a8   : > { %p4536_p12 = por %p4535_p11, %p4534_p10 }
 0x6a9   : > { %p4532_p5 = pneg %p4531_p6 }
 0x6aa   : > { %p4538_p8 = por %p4537_p13, %p4536_p12 }
 0x6ac   : > { %p4539_p7 = pnand %p4538_p8, %p4532_p5 }
 0x6ae   : > { %4542 = shalt.err (!%p4539_p7)
}
 0x6af   : > { %4144 = dma.vmem_to_hbm [thread:$0]  (%p5313_p1), %s5218_s1, 4096, %s5216_s14, %s3030_s10  }
 0x6b0 PF: > { %s3069_s12 = sand.u32 1, %s4589_s17   ;;  %p5315_p9 = scmp.ne.s32.totalorder %s5300_s21, 0 }
 0x6b1   : > { %p5316_p4 = scmp.ge.s32.totalorder %s4601_s20, 2  ;;  %s3070_s23 = scalar_lea.sflag [#allocation4], %s3069_s12 }
 0x6b3   : > { %p4174_p3 = pnand %p5316_p4, %p5315_p9 }
 0x6b5   : > { %4580 = dma.done.wait (!%p4174_p3), %s3070_s23, 128  }
 0x6b6   : > { %4582 = vsyncadd (!%p4174_p3), %s3070_s23, 4294967168  ;;  %s3079_s27 = scalar_lea.sflag [#allocation18], %s3069_s12 }
 0x6b7   : > { %4584 = dma.done.wait (!%p4174_p3), %s3079_s27, 4096  }
 0x6b8   : > { %4586 = vsyncadd (!%p4174_p3), %s3079_s27, 4294963200  ;;  %p32_p1 = scmp.ge.s32.totalorder %s4884_s16, 4   ;;  %s5317_s17 = smov %s4593_s18 }
 0x6b9   : > { %s5318_s18 = smov %s4597_s19  ;;  %s5319_s19 = smov %s4895_s11 }
 0x6ba   : > { %s5320_s20 = smov %s4884_s16  ;;  %34 = sbr.rel (!%p32_p1) target bundleno = 17 (0x11), region = 150 }
 0x6c1   :  { %3084 = vsyncpa [#allocation3], 1 }
 0x6c2   :  { %3086 = vsyncpa [#allocation3 + $0x1], 1 }
 0x6c3   :  { %3087 = vsyncpa [#allocation6], 1 }
 0x6c4   :  { %3088 = vsyncpa [#allocation9], 1 }
 0x6c5   :  { %3089 = vsyncpa [#allocation12], 1 }
 0x6c6   :  { %3090 = vsyncpa [#allocation15], 1 }
 0x6c7   :  { %3091 = vsyncpa [#allocation4], 1 }
 0x6c8   :  { %3093 = vsyncpa [#allocation4 + $0x1], 1 }
 0x6c9   :  { %3094 = vsyncpa [#allocation18], 1 }
 0x6ca   :  { %3096 = vsyncpa [#allocation18 + $0x1], 1 }

</bundles_post_ra>
